<compile_context>
chip_gen: v6e
topology: v6e:2x2x1
jax: 0.10.0
libtpu: 0.0.40
codegen_flags: <defaults>
</compile_context>

<pallas_src>
import math

import jax
import jax.numpy as jnp
from jax import lax
from jax.experimental import pallas as pl
from jax.experimental.pallas import tpu as pltpu

NHEAD = 8
LN_EPS = 1e-5  # PyTorch LayerNorm default

# packed per-layer (1, E) vectors, in this order:
VEC_ORDER = ("bq", "bk", "bv", "bo", "g1", "be1", "bf2", "g2", "be2")
_V = {name: i for i, name in enumerate(VEC_ORDER)}
NVEC = len(VEC_ORDER)


def _layer_norm(y, gamma, beta):
    mean = jnp.mean(y, axis=-1, keepdims=True)
    cent = y - mean
    var = jnp.mean(cent * cent, axis=-1, keepdims=True)
    return cent * lax.rsqrt(var + LN_EPS) * gamma + beta


# ------------------------------- kernel ---------------------------------------
def fused_encoder_kernel(x_ref, mask_ref, attw_ref, w1s_ref, w2s_ref,
                         vecs_ref, bf1s_ref, o_ref):
    """Both encoder layers for one label set (tile of S rows), fully fused."""
    S, E = x_ref.shape
    H = NHEAD
    F = w1s_ref.shape[-1]
    num_layers = w1s_ref.shape[0] // E
    M = H * S

    head_mask = mask_ref[...]                    # (H*S, E) f32 {0,1}: block-diag head mask
    x = x_ref[...].astype(jnp.float32)           # (S, E)

    for l in range(num_layers):
        def attw(j, l=l):                        # (E, E) f32, pre-transposed on host
            r = (l * 4 + j) * E
            return attw_ref[r:r + E, :]

        def vec(name, l=l):                      # (1, E) f32
            r = l * NVEC + _V[name]
            return vecs_ref[r:r + 1, :]

        # ---- multi-head self-attention (f32, all heads in dense matmuls) ----
        q = jnp.dot(x, attw(0), preferred_element_type=jnp.float32) + vec("bq")  # pre-scaled by 1/sqrt(Dh)
        k = jnp.dot(x, attw(1), preferred_element_type=jnp.float32) + vec("bk")
        v = jnp.dot(x, attw(2), preferred_element_type=jnp.float32) + vec("bv")

        # expand K/V to (H*S, E) with only head-h feature columns kept per row block
        k_exp = jnp.concatenate([k] * H, axis=0) * head_mask                      # (H*S, E)
        v_exp = jnp.concatenate([v] * H, axis=0) * head_mask                      # (H*S, E)

        # scores[i, h*S+j] = q_h[i] . k_h[j]   (one matmul for all heads)
        scores = jnp.einsum('se,me->sm', q, k_exp,
                            preferred_element_type=jnp.float32)                  # (S, H*S)

        # segmented softmax over each head's S keys
        s3 = scores.reshape(S, H, S)
        s3 = s3 - jnp.max(s3, axis=-1, keepdims=True)
        p3 = jnp.exp(s3)
        p3 = p3 * pl.reciprocal(jnp.sum(p3, axis=-1, keepdims=True), approx=False)
        p = p3.reshape(S, M)                                                      # (S, H*S)

        # p @ v_exp directly yields the concatenated per-head outputs (S, E);
        # the head-sum is then part of the single output-projection contraction.
        o = jnp.dot(p, v_exp, preferred_element_type=jnp.float32)                 # (S, E)
        attn = jnp.dot(o, attw(3), preferred_element_type=jnp.float32) + vec("bo")

        y = _layer_norm(x + attn, vec("g1"), vec("be1"))

        # ---- feed-forward (relu) on the native bf16 MXU path ----
        w1 = w1s_ref[l * E:(l + 1) * E, :]                                         # (E, F) bf16
        w2 = w2s_ref[l * F:(l + 1) * F, :]                                         # (F, E) bf16
        h1 = jnp.dot(y.astype(jnp.bfloat16), w1,
                     preferred_element_type=jnp.float32) + bf1s_ref[l:l + 1, :]
        h1 = jnp.maximum(h1, 0.0)
        h2 = jnp.dot(h1.astype(jnp.bfloat16), w2,
                     preferred_element_type=jnp.float32) + vec("bf2")

        x = _layer_norm(y + h2, vec("g2"), vec("be2"))

    o_ref[...] = x            # lane-dense (S, E) store; (E, S) transpose done in wrapper


# ------------------------ host-side parameter packing -------------------------
def make_head_mask(S, E):
    """mask[h*S + j, e] = 1 iff feature e belongs to head h."""
    Dh = E // NHEAD
    row_head = jnp.arange(NHEAD * S)[:, None] // S
    col_head = jnp.arange(E)[None, :] // Dh
    return (row_head == col_head).astype(jnp.float32)


def pack_params(layer_params, ff_weight_dtype=jnp.bfloat16):
    """Pre-transpose, pre-scale and pack all parameters into 5 dense arrays."""
    E = layer_params[0]["wo"].shape[0]
    Dh = E // NHEAD
    scale = 1.0 / math.sqrt(Dh)
    attw, vecs, w1s, w2s, bf1s = [], [], [], [], []
    for p in layer_params:
        attw += [p["wqkv"][:E, :].T * scale,       # Wq^T with 1/sqrt(Dh) folded in
                 p["wqkv"][E:2 * E, :].T,          # Wk^T
                 p["wqkv"][2 * E:, :].T,           # Wv^T
                 p["wo"].T]                        # Wo^T
        vecs += [p["bqkv"][:, :E] * scale, p["bqkv"][:, E:2 * E], p["bqkv"][:, 2 * E:],
                 p["bo"], p["g1"], p["be1"], p["bf2"], p["g2"], p["be2"]]
        w1s.append(p["w1"].T.astype(ff_weight_dtype))   # (E, F)
        w2s.append(p["w2"].T.astype(ff_weight_dtype))   # (F, E)
        bf1s.append(p["bf1"])
    return (jnp.concatenate(attw, axis=0).astype(jnp.float32),   # (L*4*E, E)
            jnp.concatenate(vecs, axis=0).astype(jnp.float32),   # (L*NVEC, E)
            jnp.concatenate(w1s, axis=0),                        # (L*E, F)   bf16
            jnp.concatenate(w2s, axis=0),                        # (L*F, E)   bf16
            jnp.concatenate(bf1s, axis=0).astype(jnp.float32))   # (L, F)


# --------------------------------- wrappers ------------------------------------
def _run_encoder(x_flat, packed, num_sets, tile_s):
    attw, vecs, w1s, w2s, bf1s = packed
    E = x_flat.shape[-1]
    head_mask = make_head_mask(tile_s, E)
    const = lambda b: (0, 0)
    return pl.pallas_call(
        fused_encoder_kernel,
        out_shape=jax.ShapeDtypeStruct(x_flat.shape, jnp.float32),
        grid=(num_sets,),
        in_specs=[
            pl.BlockSpec((tile_s, E), lambda b: (b, 0)),   # x: one label set per step
            pl.BlockSpec(head_mask.shape, const),
            pl.BlockSpec(attw.shape, const),
            pl.BlockSpec(w1s.shape, const),
            pl.BlockSpec(w2s.shape, const),
            pl.BlockSpec(vecs.shape, const),
            pl.BlockSpec(bf1s.shape, const),
        ],
        out_specs=pl.BlockSpec((tile_s, E), lambda b: (b, 0)),
        compiler_params=pltpu.CompilerParams(dimension_semantics=("parallel",)),
    )(x_flat, head_mask, attw, w1s, w2s, vecs, bf1s)


def label_transformer_forward(word_embedding, layer_params):
    """Matches LabelTransformer.forward (eval mode): (S, E) -> (E, S)."""
    x = jnp.asarray(word_embedding, jnp.float32)
    S, E = x.shape
    packed = pack_params(layer_params)
    out = _run_encoder(x, packed, num_sets=1, tile_s=S)    # (S, E) lane-dense
    return out.T                                           # tiny transpose in XLA wrapper


def label_transformer_forward_batched(word_embeddings, layer_params):
    """Throughput path: (B, S, E) -> (B, E, S).  One launch, grid over B,
    "parallel" so the batch shards across v7x's two TensorCores.  Needs S % 8 == 0."""
    x = jnp.asarray(word_embeddings, jnp.float32)
    B, S, E = x.shape
    packed = pack_params(layer_params)
    out = _run_encoder(x.reshape(B * S, E), packed, num_sets=B, tile_s=S)
    return out.reshape(B, S, E).transpose(0, 2, 1)


# ----------------------- pure-JAX reference (PyTorch layout) -------------------
def _ref_layer(x, p, ff_dtype):
    E = x.shape[1]
    Dh = E // NHEAD
    qkv = x @ p["wqkv"].T + p["bqkv"]
    q, k, v = qkv[:, :E], qkv[:, E:2 * E], qkv[:, 2 * E:]
    heads = []
    for h in range(NHEAD):
        sl = slice(h * Dh, (h + 1) * Dh)
        s = (q[:, sl] @ k[:, sl].T) / math.sqrt(Dh)
        heads.append(jax.nn.softmax(s, axis=-1) @ v[:, sl])
    attn = jnp.concatenate(heads, axis=-1) @ p["wo"].T + p["bo"]
    y = _layer_norm(x + attn, p["g1"], p["be1"])
    w1t, w2t = p["w1"].T, p["w2"].T
    if ff_dtype == jnp.float32:
        h1 = jnp.maximum(y @ w1t + p["bf1"], 0.0)
        h2 = h1 @ w2t + p["bf2"]
    else:  # mimic the kernel's native-bf16 MXU feed-forward path
        h1 = jnp.dot(y.astype(ff_dtype), w1t.astype(ff_dtype),
                     preferred_element_type=jnp.float32) + p["bf1"]
        h1 = jnp.maximum(h1, 0.0)
        h2 = jnp.dot(h1.astype(ff_dtype), w2t.astype(ff_dtype),
                     preferred_element_type=jnp.float32) + p["bf2"]
    return _layer_norm(y + h2, p["g2"], p["be2"])


def _ref_forward(word_embedding, layer_params, ff_dtype=jnp.float32):
    x = jnp.asarray(word_embedding, jnp.float32)
    for p in layer_params:
        x = _ref_layer(x, p, ff_dtype)
    return x.T


# ---------------------- deterministic parameter construction -------------------
def init_params(key, d_in, dim_ff=2048, num_layers=2):
    layers = []
    for l in range(num_layers):
        ks = jax.random.split(jax.random.fold_in(key, l), 8)
        rnd = lambda k, shape, s=0.05: s * jax.random.normal(k, shape, dtype=jnp.float32)
        layers.append(dict(
            wqkv=rnd(ks[0], (3 * d_in, d_in)),
            bqkv=rnd(ks[1], (1, 3 * d_in)),
            wo=rnd(ks[2], (d_in, d_in)),
            bo=rnd(ks[3], (1, d_in)),
            g1=jnp.ones((1, d_in), jnp.float32),
            be1=jnp.zeros((1, d_in), jnp.float32),
            w1=rnd(ks[4], (dim_ff, d_in)),
            bf1=rnd(ks[5], (1, dim_ff)),
            w2=rnd(ks[6], (d_in, dim_ff)),
            bf2=rnd(ks[7], (1, d_in)),
            g2=jnp.ones((1, d_in), jnp.float32),
            be2=jnp.zeros((1, d_in), jnp.float32),
        ))
    return layers


if __name__ == "__main__":
    key = jax.random.PRNGKey(0)
    S, D_IN, DIM_FF = 8, 32, 2048        # 8 labels, d_model=32 (divisible by nhead=8)

    k_emb, k_par, k_bat = jax.random.split(key, 3)
    word_embedding = jax.random.normal(k_emb, (S, D_IN), dtype=jnp.float32)
    params = init_params(k_par, D_IN, DIM_FF, num_layers=2)

    # ---- module-faithful single call: (S, E) -> (E, S) ----
    out = jax.block_until_ready(label_transformer_forward(word_embedding, params))
    assert out.shape == (D_IN, S), out.shape

    # tight check vs. a reference that mirrors the kernel's bf16-MXU FF path
    ref_bf16 = _ref_forward(word_embedding, params, ff_dtype=jnp.bfloat16)
    assert jnp.allclose(out, ref_bf16, rtol=1e-3, atol=1e-3), \
        float(jnp.max(jnp.abs(out - ref_bf16)))
    # loose check vs. the full-f32 PyTorch-semantics reference (bf16 FF drift)
    ref_f32 = _ref_forward(word_embedding, params, ff_dtype=jnp.float32)
    assert jnp.allclose(out, ref_f32, rtol=2e-2, atol=2e-2), \
        float(jnp.max(jnp.abs(out - ref_f32)))

    # ---- batched throughput path: B label sets, "parallel" grid over B ----
    B = 4
    word_embeddings = jax.random.normal(k_bat, (B, S, D_IN), dtype=jnp.float32)
    out_b = jax.block_until_ready(label_transformer_forward_batched(word_embeddings, params))
    assert out_b.shape == (B, D_IN, S), out_b.shape
    for b in range(B):
        rb = _ref_forward(word_embeddings[b], params, ff_dtype=jnp.bfloat16)
        assert jnp.allclose(out_b[b], rb, rtol=1e-3, atol=1e-3), \
            (b, float(jnp.max(jnp.abs(out_b[b] - rb))))

    print("KERNEL_OK")
</pallas_src>

<mosaic_0001>
module attributes {stable_mosaic.version = 11 : i64} {
  func.func @fused_encoder_kernel(%arg0: i32, %arg1: memref<8x32xf32, #tpu.memory_space<vmem>>, %arg2: memref<64x32xf32, #tpu.memory_space<vmem>>, %arg3: memref<256x32xf32, #tpu.memory_space<vmem>>, %arg4: memref<64x2048xbf16, #tpu.memory_space<vmem>>, %arg5: memref<4096x32xbf16, #tpu.memory_space<vmem>>, %arg6: memref<18x32xf32, #tpu.memory_space<vmem>>, %arg7: memref<2x2048xf32, #tpu.memory_space<vmem>>, %arg8: memref<8x32xf32, #tpu.memory_space<vmem>>) attributes {dimension_semantics = [#tpu.dimension_semantics<parallel>], iteration_bounds = array<i64: 1>, scalar_prefetch = 0 : i64, scratch_operands = 0 : i64, tpu.core_type = #tpu.core_type<tc>, window_params = [{transform_indices = @transform_0, window_bounds = array<i64: 8, 32>}, {pipeline_mode = #tpu.pipeline_mode<synchronous>, transform_indices = @transform_1, window_bounds = array<i64: 64, 32>}, {pipeline_mode = #tpu.pipeline_mode<synchronous>, transform_indices = @transform_2, window_bounds = array<i64: 256, 32>}, {pipeline_mode = #tpu.pipeline_mode<synchronous>, transform_indices = @transform_3, window_bounds = array<i64: 64, 2048>}, {pipeline_mode = #tpu.pipeline_mode<synchronous>, transform_indices = @transform_4, window_bounds = array<i64: 4096, 32>}, {pipeline_mode = #tpu.pipeline_mode<synchronous>, transform_indices = @transform_5, window_bounds = array<i64: 18, 32>}, {pipeline_mode = #tpu.pipeline_mode<synchronous>, transform_indices = @transform_6, window_bounds = array<i64: 2, 2048>}, {transform_indices = @transform_7, window_bounds = array<i64: 8, 32>}]} {
    %c0 = arith.constant 0 : index
    %c0_0 = arith.constant 0 : index
    %0 = vector.load %arg2[%c0, %c0_0] : memref<64x32xf32, #tpu.memory_space<vmem>>, vector<64x32xf32>
    %c0_1 = arith.constant 0 : index
    %c0_2 = arith.constant 0 : index
    %1 = vector.load %arg1[%c0_1, %c0_2] : memref<8x32xf32, #tpu.memory_space<vmem>>, vector<8x32xf32>
    %c0_3 = arith.constant 0 : index
    %c0_4 = arith.constant 0 : index
    %2 = vector.load %arg3[%c0_3, %c0_4] : memref<256x32xf32, #tpu.memory_space<vmem>>, vector<32x32xf32>
    %cst = arith.constant dense<0.000000e+00> : vector<8x32xf32>
    %3 = tpu.matmul %1, %2, %cst {dimension_numbers = #tpu.dot_dimension_numbers<[1], [0], [0], [1], [0, 0, 1, 1], [], []>} : vector<8x32xf32>, vector<32x32xf32>, vector<8x32xf32> -> vector<8x32xf32>
    %c0_5 = arith.constant 0 : index
    %c0_6 = arith.constant 0 : index
    %4 = vector.load %arg6[%c0_5, %c0_6] : memref<18x32xf32, #tpu.memory_space<vmem>>, vector<1x32xf32>
    %5 = vector.broadcast %4 : vector<1x32xf32> to vector<8x32xf32>
    %6 = arith.addf %3, %5 : vector<8x32xf32>
    %c32 = arith.constant 32 : index
    %c0_7 = arith.constant 0 : index
    %7 = vector.load %arg3[%c32, %c0_7] : memref<256x32xf32, #tpu.memory_space<vmem>>, vector<32x32xf32>
    %cst_8 = arith.constant dense<0.000000e+00> : vector<8x32xf32>
    %8 = tpu.matmul %1, %7, %cst_8 {dimension_numbers = #tpu.dot_dimension_numbers<[1], [0], [0], [1], [0, 0, 1, 1], [], []>} : vector<8x32xf32>, vector<32x32xf32>, vector<8x32xf32> -> vector<8x32xf32>
    %c1 = arith.constant 1 : index
    %c0_9 = arith.constant 0 : index
    %9 = vector.load %arg6[%c1, %c0_9] : memref<18x32xf32, #tpu.memory_space<vmem>>, vector<1x32xf32>
    %10 = vector.broadcast %9 : vector<1x32xf32> to vector<8x32xf32>
    %11 = arith.addf %8, %10 : vector<8x32xf32>
    %c64 = arith.constant 64 : index
    %c0_10 = arith.constant 0 : index
    %12 = vector.load %arg3[%c64, %c0_10] : memref<256x32xf32, #tpu.memory_space<vmem>>, vector<32x32xf32>
    %cst_11 = arith.constant dense<0.000000e+00> : vector<8x32xf32>
    %13 = tpu.matmul %1, %12, %cst_11 {dimension_numbers = #tpu.dot_dimension_numbers<[1], [0], [0], [1], [0, 0, 1, 1], [], []>} : vector<8x32xf32>, vector<32x32xf32>, vector<8x32xf32> -> vector<8x32xf32>
    %c2 = arith.constant 2 : index
    %c0_12 = arith.constant 0 : index
    %14 = vector.load %arg6[%c2, %c0_12] : memref<18x32xf32, #tpu.memory_space<vmem>>, vector<1x32xf32>
    %15 = vector.broadcast %14 : vector<1x32xf32> to vector<8x32xf32>
    %16 = arith.addf %13, %15 : vector<8x32xf32>
    %17 = tpu.concatenate %11, %11, %11, %11, %11, %11, %11, %11 in 0 : vector<8x32xf32>, vector<8x32xf32>, vector<8x32xf32>, vector<8x32xf32>, vector<8x32xf32>, vector<8x32xf32>, vector<8x32xf32>, vector<8x32xf32> -> vector<64x32xf32>
    %18 = arith.mulf %17, %0 : vector<64x32xf32>
    %19 = tpu.concatenate %16, %16, %16, %16, %16, %16, %16, %16 in 0 : vector<8x32xf32>, vector<8x32xf32>, vector<8x32xf32>, vector<8x32xf32>, vector<8x32xf32>, vector<8x32xf32>, vector<8x32xf32>, vector<8x32xf32> -> vector<64x32xf32>
    %20 = arith.mulf %19, %0 : vector<64x32xf32>
    "tpu.trace_start"() <{level = 10 : i32, message = "se,me->sm"}> : () -> ()
    %cst_13 = arith.constant dense<0.000000e+00> : vector<8x64xf32>
    %21 = tpu.matmul %6, %18, %cst_13 {dimension_numbers = #tpu.dot_dimension_numbers<[1], [1], [0], [0], [0, 0, 1, 0], [], []>} : vector<8x32xf32>, vector<64x32xf32>, vector<8x64xf32> -> vector<8x64xf32>
    "tpu.trace_stop"() : () -> ()
    %22 = vector.shape_cast %21 : vector<8x64xf32> to vector<8x8x8xf32>
    %cst_14 = arith.constant dense<0xFF800000> : vector<8x8xf32>
    %23 = vector.multi_reduction <maximumf>, %22, %cst_14 [2] : vector<8x8x8xf32> to vector<8x8xf32>
    %24 = vector.shape_cast %23 : vector<8x8xf32> to vector<8x8x1xf32>
    %25 = vector.broadcast %24 : vector<8x8x1xf32> to vector<8x8x8xf32>
    %26 = arith.subf %22, %25 : vector<8x8x8xf32>
    %27 = math.exp %26 : vector<8x8x8xf32>
    %cst_15 = arith.constant dense<0.000000e+00> : vector<8x8xf32>
    %28 = vector.multi_reduction <add>, %27, %cst_15 [2] : vector<8x8x8xf32> to vector<8x8xf32>
    %29 = vector.shape_cast %28 : vector<8x8xf32> to vector<8x8x1xf32>
    %30 = tpu.reciprocal %29 : vector<8x8x1xf32> -> vector<8x8x1xf32>
    %31 = vector.broadcast %30 : vector<8x8x1xf32> to vector<8x8x8xf32>
    %32 = arith.mulf %27, %31 : vector<8x8x8xf32>
    %33 = vector.shape_cast %32 : vector<8x8x8xf32> to vector<8x64xf32>
    %cst_16 = arith.constant dense<0.000000e+00> : vector<8x32xf32>
    %34 = tpu.matmul %33, %20, %cst_16 {dimension_numbers = #tpu.dot_dimension_numbers<[1], [0], [0], [1], [0, 0, 1, 1], [], []>} : vector<8x64xf32>, vector<64x32xf32>, vector<8x32xf32> -> vector<8x32xf32>
    %c96 = arith.constant 96 : index
    %c0_17 = arith.constant 0 : index
    %35 = vector.load %arg3[%c96, %c0_17] : memref<256x32xf32, #tpu.memory_space<vmem>>, vector<32x32xf32>
    %cst_18 = arith.constant dense<0.000000e+00> : vector<8x32xf32>
    %36 = tpu.matmul %34, %35, %cst_18 {dimension_numbers = #tpu.dot_dimension_numbers<[1], [0], [0], [1], [0, 0, 1, 1], [], []>} : vector<8x32xf32>, vector<32x32xf32>, vector<8x32xf32> -> vector<8x32xf32>
    %c3 = arith.constant 3 : index
    %c0_19 = arith.constant 0 : index
    %37 = vector.load %arg6[%c3, %c0_19] : memref<18x32xf32, #tpu.memory_space<vmem>>, vector<1x32xf32>
    %38 = vector.broadcast %37 : vector<1x32xf32> to vector<8x32xf32>
    %39 = arith.addf %36, %38 : vector<8x32xf32>
    %40 = arith.addf %1, %39 : vector<8x32xf32>
    %c4 = arith.constant 4 : index
    %c0_20 = arith.constant 0 : index
    %41 = vector.load %arg6[%c4, %c0_20] : memref<18x32xf32, #tpu.memory_space<vmem>>, vector<1x32xf32>
    %c5 = arith.constant 5 : index
    %c0_21 = arith.constant 0 : index
    %42 = vector.load %arg6[%c5, %c0_21] : memref<18x32xf32, #tpu.memory_space<vmem>>, vector<1x32xf32>
    %cst_22 = arith.constant dense<0.000000e+00> : vector<8xf32>
    %43 = vector.multi_reduction <add>, %40, %cst_22 [1] : vector<8x32xf32> to vector<8xf32>
    %44 = vector.shape_cast %43 : vector<8xf32> to vector<8x1xf32>
    %cst_23 = arith.constant 3.200000e+01 : f32
    %45 = vector.broadcast %cst_23 : f32 to vector<8x1xf32>
    %46 = arith.divf %44, %45 : vector<8x1xf32>
    %47 = vector.broadcast %46 : vector<8x1xf32> to vector<8x32xf32>
    %48 = arith.subf %40, %47 : vector<8x32xf32>
    %49 = arith.mulf %48, %48 : vector<8x32xf32>
    %cst_24 = arith.constant dense<0.000000e+00> : vector<8xf32>
    %50 = vector.multi_reduction <add>, %49, %cst_24 [1] : vector<8x32xf32> to vector<8xf32>
    %51 = vector.shape_cast %50 : vector<8xf32> to vector<8x1xf32>
    %cst_25 = arith.constant 3.200000e+01 : f32
    %52 = vector.broadcast %cst_25 : f32 to vector<8x1xf32>
    %53 = arith.divf %51, %52 : vector<8x1xf32>
    %cst_26 = arith.constant 9.99999974E-6 : f32
    %54 = vector.broadcast %cst_26 : f32 to vector<8x1xf32>
    %55 = arith.addf %53, %54 : vector<8x1xf32>
    %56 = math.rsqrt %55 : vector<8x1xf32>
    %57 = vector.broadcast %56 : vector<8x1xf32> to vector<8x32xf32>
    %58 = arith.mulf %48, %57 : vector<8x32xf32>
    %59 = vector.broadcast %41 : vector<1x32xf32> to vector<8x32xf32>
    %60 = arith.mulf %58, %59 : vector<8x32xf32>
    %61 = vector.broadcast %42 : vector<1x32xf32> to vector<8x32xf32>
    %62 = arith.addf %60, %61 : vector<8x32xf32>
    %c0_27 = arith.constant 0 : index
    %c0_28 = arith.constant 0 : index
    %63 = vector.load %arg4[%c0_27, %c0_28] : memref<64x2048xbf16, #tpu.memory_space<vmem>>, vector<32x2048xbf16>
    %c0_29 = arith.constant 0 : index
    %c0_30 = arith.constant 0 : index
    %64 = vector.load %arg5[%c0_29, %c0_30] : memref<4096x32xbf16, #tpu.memory_space<vmem>>, vector<2048x32xbf16>
    %65 = arith.truncf %62 : vector<8x32xf32> to vector<8x32xbf16>
    %cst_31 = arith.constant dense<0.000000e+00> : vector<8x2048xf32>
    %66 = tpu.matmul %65, %63, %cst_31 {dimension_numbers = #tpu.dot_dimension_numbers<[1], [0], [0], [1], [0, 0, 1, 1], [], []>} : vector<8x32xbf16>, vector<32x2048xbf16>, vector<8x2048xf32> -> vector<8x2048xf32>
    %c0_32 = arith.constant 0 : index
    %c0_33 = arith.constant 0 : index
    %67 = vector.load %arg7[%c0_32, %c0_33] : memref<2x2048xf32, #tpu.memory_space<vmem>>, vector<1x2048xf32>
    %68 = vector.broadcast %67 : vector<1x2048xf32> to vector<8x2048xf32>
    %69 = arith.addf %66, %68 : vector<8x2048xf32>
    %cst_34 = arith.constant 0.000000e+00 : f32
    %70 = vector.broadcast %cst_34 : f32 to vector<8x2048xf32>
    %71 = arith.maximumf %69, %70 : vector<8x2048xf32>
    %72 = arith.truncf %71 : vector<8x2048xf32> to vector<8x2048xbf16>
    %cst_35 = arith.constant dense<0.000000e+00> : vector<8x32xf32>
    %73 = tpu.matmul %72, %64, %cst_35 {dimension_numbers = #tpu.dot_dimension_numbers<[1], [0], [0], [1], [0, 0, 1, 1], [], []>} : vector<8x2048xbf16>, vector<2048x32xbf16>, vector<8x32xf32> -> vector<8x32xf32>
    %c6 = arith.constant 6 : index
    %c0_36 = arith.constant 0 : index
    %74 = vector.load %arg6[%c6, %c0_36] : memref<18x32xf32, #tpu.memory_space<vmem>>, vector<1x32xf32>
    %75 = vector.broadcast %74 : vector<1x32xf32> to vector<8x32xf32>
    %76 = arith.addf %73, %75 : vector<8x32xf32>
    %77 = arith.addf %62, %76 : vector<8x32xf32>
    %c7 = arith.constant 7 : index
    %c0_37 = arith.constant 0 : index
    %78 = vector.load %arg6[%c7, %c0_37] : memref<18x32xf32, #tpu.memory_space<vmem>>, vector<1x32xf32>
    %c8 = arith.constant 8 : index
    %c0_38 = arith.constant 0 : index
    %79 = vector.load %arg6[%c8, %c0_38] : memref<18x32xf32, #tpu.memory_space<vmem>>, vector<1x32xf32>
    %cst_39 = arith.constant dense<0.000000e+00> : vector<8xf32>
    %80 = vector.multi_reduction <add>, %77, %cst_39 [1] : vector<8x32xf32> to vector<8xf32>
    %81 = vector.shape_cast %80 : vector<8xf32> to vector<8x1xf32>
    %cst_40 = arith.constant 3.200000e+01 : f32
    %82 = vector.broadcast %cst_40 : f32 to vector<8x1xf32>
    %83 = arith.divf %81, %82 : vector<8x1xf32>
    %84 = vector.broadcast %83 : vector<8x1xf32> to vector<8x32xf32>
    %85 = arith.subf %77, %84 : vector<8x32xf32>
    %86 = arith.mulf %85, %85 : vector<8x32xf32>
    %cst_41 = arith.constant dense<0.000000e+00> : vector<8xf32>
    %87 = vector.multi_reduction <add>, %86, %cst_41 [1] : vector<8x32xf32> to vector<8xf32>
    %88 = vector.shape_cast %87 : vector<8xf32> to vector<8x1xf32>
    %cst_42 = arith.constant 3.200000e+01 : f32
    %89 = vector.broadcast %cst_42 : f32 to vector<8x1xf32>
    %90 = arith.divf %88, %89 : vector<8x1xf32>
    %cst_43 = arith.constant 9.99999974E-6 : f32
    %91 = vector.broadcast %cst_43 : f32 to vector<8x1xf32>
    %92 = arith.addf %90, %91 : vector<8x1xf32>
    %93 = math.rsqrt %92 : vector<8x1xf32>
    %94 = vector.broadcast %93 : vector<8x1xf32> to vector<8x32xf32>
    %95 = arith.mulf %85, %94 : vector<8x32xf32>
    %96 = vector.broadcast %78 : vector<1x32xf32> to vector<8x32xf32>
    %97 = arith.mulf %95, %96 : vector<8x32xf32>
    %98 = vector.broadcast %79 : vector<1x32xf32> to vector<8x32xf32>
    %99 = arith.addf %97, %98 : vector<8x32xf32>
    %c128 = arith.constant 128 : index
    %c0_44 = arith.constant 0 : index
    %100 = vector.load %arg3[%c128, %c0_44] : memref<256x32xf32, #tpu.memory_space<vmem>>, vector<32x32xf32>
    %cst_45 = arith.constant dense<0.000000e+00> : vector<8x32xf32>
    %101 = tpu.matmul %99, %100, %cst_45 {dimension_numbers = #tpu.dot_dimension_numbers<[1], [0], [0], [1], [0, 0, 1, 1], [], []>} : vector<8x32xf32>, vector<32x32xf32>, vector<8x32xf32> -> vector<8x32xf32>
    %c9 = arith.constant 9 : index
    %c0_46 = arith.constant 0 : index
    %102 = vector.load %arg6[%c9, %c0_46] : memref<18x32xf32, #tpu.memory_space<vmem>>, vector<1x32xf32>
    %103 = vector.broadcast %102 : vector<1x32xf32> to vector<8x32xf32>
    %104 = arith.addf %101, %103 : vector<8x32xf32>
    %c160 = arith.constant 160 : index
    %c0_47 = arith.constant 0 : index
    %105 = vector.load %arg3[%c160, %c0_47] : memref<256x32xf32, #tpu.memory_space<vmem>>, vector<32x32xf32>
    %cst_48 = arith.constant dense<0.000000e+00> : vector<8x32xf32>
    %106 = tpu.matmul %99, %105, %cst_48 {dimension_numbers = #tpu.dot_dimension_numbers<[1], [0], [0], [1], [0, 0, 1, 1], [], []>} : vector<8x32xf32>, vector<32x32xf32>, vector<8x32xf32> -> vector<8x32xf32>
    %c10 = arith.constant 10 : index
    %c0_49 = arith.constant 0 : index
    %107 = vector.load %arg6[%c10, %c0_49] : memref<18x32xf32, #tpu.memory_space<vmem>>, vector<1x32xf32>
    %108 = vector.broadcast %107 : vector<1x32xf32> to vector<8x32xf32>
    %109 = arith.addf %106, %108 : vector<8x32xf32>
    %c192 = arith.constant 192 : index
    %c0_50 = arith.constant 0 : index
    %110 = vector.load %arg3[%c192, %c0_50] : memref<256x32xf32, #tpu.memory_space<vmem>>, vector<32x32xf32>
    %cst_51 = arith.constant dense<0.000000e+00> : vector<8x32xf32>
    %111 = tpu.matmul %99, %110, %cst_51 {dimension_numbers = #tpu.dot_dimension_numbers<[1], [0], [0], [1], [0, 0, 1, 1], [], []>} : vector<8x32xf32>, vector<32x32xf32>, vector<8x32xf32> -> vector<8x32xf32>
    %c11 = arith.constant 11 : index
    %c0_52 = arith.constant 0 : index
    %112 = vector.load %arg6[%c11, %c0_52] : memref<18x32xf32, #tpu.memory_space<vmem>>, vector<1x32xf32>
    %113 = vector.broadcast %112 : vector<1x32xf32> to vector<8x32xf32>
    %114 = arith.addf %111, %113 : vector<8x32xf32>
    %115 = tpu.concatenate %109, %109, %109, %109, %109, %109, %109, %109 in 0 : vector<8x32xf32>, vector<8x32xf32>, vector<8x32xf32>, vector<8x32xf32>, vector<8x32xf32>, vector<8x32xf32>, vector<8x32xf32>, vector<8x32xf32> -> vector<64x32xf32>
    %116 = arith.mulf %115, %0 : vector<64x32xf32>
    %117 = tpu.concatenate %114, %114, %114, %114, %114, %114, %114, %114 in 0 : vector<8x32xf32>, vector<8x32xf32>, vector<8x32xf32>, vector<8x32xf32>, vector<8x32xf32>, vector<8x32xf32>, vector<8x32xf32>, vector<8x32xf32> -> vector<64x32xf32>
    %118 = arith.mulf %117, %0 : vector<64x32xf32>
    "tpu.trace_start"() <{level = 10 : i32, message = "se,me->sm"}> : () -> ()
    %cst_53 = arith.constant dense<0.000000e+00> : vector<8x64xf32>
    %119 = tpu.matmul %104, %116, %cst_53 {dimension_numbers = #tpu.dot_dimension_numbers<[1], [1], [0], [0], [0, 0, 1, 0], [], []>} : vector<8x32xf32>, vector<64x32xf32>, vector<8x64xf32> -> vector<8x64xf32>
    "tpu.trace_stop"() : () -> ()
    %120 = vector.shape_cast %119 : vector<8x64xf32> to vector<8x8x8xf32>
    %cst_54 = arith.constant dense<0xFF800000> : vector<8x8xf32>
    %121 = vector.multi_reduction <maximumf>, %120, %cst_54 [2] : vector<8x8x8xf32> to vector<8x8xf32>
    %122 = vector.shape_cast %121 : vector<8x8xf32> to vector<8x8x1xf32>
    %123 = vector.broadcast %122 : vector<8x8x1xf32> to vector<8x8x8xf32>
    %124 = arith.subf %120, %123 : vector<8x8x8xf32>
    %125 = math.exp %124 : vector<8x8x8xf32>
    %cst_55 = arith.constant dense<0.000000e+00> : vector<8x8xf32>
    %126 = vector.multi_reduction <add>, %125, %cst_55 [2] : vector<8x8x8xf32> to vector<8x8xf32>
    %127 = vector.shape_cast %126 : vector<8x8xf32> to vector<8x8x1xf32>
    %128 = tpu.reciprocal %127 : vector<8x8x1xf32> -> vector<8x8x1xf32>
    %129 = vector.broadcast %128 : vector<8x8x1xf32> to vector<8x8x8xf32>
    %130 = arith.mulf %125, %129 : vector<8x8x8xf32>
    %131 = vector.shape_cast %130 : vector<8x8x8xf32> to vector<8x64xf32>
    %cst_56 = arith.constant dense<0.000000e+00> : vector<8x32xf32>
    %132 = tpu.matmul %131, %118, %cst_56 {dimension_numbers = #tpu.dot_dimension_numbers<[1], [0], [0], [1], [0, 0, 1, 1], [], []>} : vector<8x64xf32>, vector<64x32xf32>, vector<8x32xf32> -> vector<8x32xf32>
    %c224 = arith.constant 224 : index
    %c0_57 = arith.constant 0 : index
    %133 = vector.load %arg3[%c224, %c0_57] : memref<256x32xf32, #tpu.memory_space<vmem>>, vector<32x32xf32>
    %cst_58 = arith.constant dense<0.000000e+00> : vector<8x32xf32>
    %134 = tpu.matmul %132, %133, %cst_58 {dimension_numbers = #tpu.dot_dimension_numbers<[1], [0], [0], [1], [0, 0, 1, 1], [], []>} : vector<8x32xf32>, vector<32x32xf32>, vector<8x32xf32> -> vector<8x32xf32>
    %c12 = arith.constant 12 : index
    %c0_59 = arith.constant 0 : index
    %135 = vector.load %arg6[%c12, %c0_59] : memref<18x32xf32, #tpu.memory_space<vmem>>, vector<1x32xf32>
    %136 = vector.broadcast %135 : vector<1x32xf32> to vector<8x32xf32>
    %137 = arith.addf %134, %136 : vector<8x32xf32>
    %138 = arith.addf %99, %137 : vector<8x32xf32>
    %c13 = arith.constant 13 : index
    %c0_60 = arith.constant 0 : index
    %139 = vector.load %arg6[%c13, %c0_60] : memref<18x32xf32, #tpu.memory_space<vmem>>, vector<1x32xf32>
    %c14 = arith.constant 14 : index
    %c0_61 = arith.constant 0 : index
    %140 = vector.load %arg6[%c14, %c0_61] : memref<18x32xf32, #tpu.memory_space<vmem>>, vector<1x32xf32>
    %cst_62 = arith.constant dense<0.000000e+00> : vector<8xf32>
    %141 = vector.multi_reduction <add>, %138, %cst_62 [1] : vector<8x32xf32> to vector<8xf32>
    %142 = vector.shape_cast %141 : vector<8xf32> to vector<8x1xf32>
    %cst_63 = arith.constant 3.200000e+01 : f32
    %143 = vector.broadcast %cst_63 : f32 to vector<8x1xf32>
    %144 = arith.divf %142, %143 : vector<8x1xf32>
    %145 = vector.broadcast %144 : vector<8x1xf32> to vector<8x32xf32>
    %146 = arith.subf %138, %145 : vector<8x32xf32>
    %147 = arith.mulf %146, %146 : vector<8x32xf32>
    %cst_64 = arith.constant dense<0.000000e+00> : vector<8xf32>
    %148 = vector.multi_reduction <add>, %147, %cst_64 [1] : vector<8x32xf32> to vector<8xf32>
    %149 = vector.shape_cast %148 : vector<8xf32> to vector<8x1xf32>
    %cst_65 = arith.constant 3.200000e+01 : f32
    %150 = vector.broadcast %cst_65 : f32 to vector<8x1xf32>
    %151 = arith.divf %149, %150 : vector<8x1xf32>
    %cst_66 = arith.constant 9.99999974E-6 : f32
    %152 = vector.broadcast %cst_66 : f32 to vector<8x1xf32>
    %153 = arith.addf %151, %152 : vector<8x1xf32>
    %154 = math.rsqrt %153 : vector<8x1xf32>
    %155 = vector.broadcast %154 : vector<8x1xf32> to vector<8x32xf32>
    %156 = arith.mulf %146, %155 : vector<8x32xf32>
    %157 = vector.broadcast %139 : vector<1x32xf32> to vector<8x32xf32>
    %158 = arith.mulf %156, %157 : vector<8x32xf32>
    %159 = vector.broadcast %140 : vector<1x32xf32> to vector<8x32xf32>
    %160 = arith.addf %158, %159 : vector<8x32xf32>
    %c32_67 = arith.constant 32 : index
    %c0_68 = arith.constant 0 : index
    %161 = vector.load %arg4[%c32_67, %c0_68] : memref<64x2048xbf16, #tpu.memory_space<vmem>>, vector<32x2048xbf16>
    %c2048 = arith.constant 2048 : index
    %c0_69 = arith.constant 0 : index
    %162 = vector.load %arg5[%c2048, %c0_69] : memref<4096x32xbf16, #tpu.memory_space<vmem>>, vector<2048x32xbf16>
    %163 = arith.truncf %160 : vector<8x32xf32> to vector<8x32xbf16>
    %cst_70 = arith.constant dense<0.000000e+00> : vector<8x2048xf32>
    %164 = tpu.matmul %163, %161, %cst_70 {dimension_numbers = #tpu.dot_dimension_numbers<[1], [0], [0], [1], [0, 0, 1, 1], [], []>} : vector<8x32xbf16>, vector<32x2048xbf16>, vector<8x2048xf32> -> vector<8x2048xf32>
    %c1_71 = arith.constant 1 : index
    %c0_72 = arith.constant 0 : index
    %165 = vector.load %arg7[%c1_71, %c0_72] : memref<2x2048xf32, #tpu.memory_space<vmem>>, vector<1x2048xf32>
    %166 = vector.broadcast %165 : vector<1x2048xf32> to vector<8x2048xf32>
    %167 = arith.addf %164, %166 : vector<8x2048xf32>
    %cst_73 = arith.constant 0.000000e+00 : f32
    %168 = vector.broadcast %cst_73 : f32 to vector<8x2048xf32>
    %169 = arith.maximumf %167, %168 : vector<8x2048xf32>
    %170 = arith.truncf %169 : vector<8x2048xf32> to vector<8x2048xbf16>
    %cst_74 = arith.constant dense<0.000000e+00> : vector<8x32xf32>
    %171 = tpu.matmul %170, %162, %cst_74 {dimension_numbers = #tpu.dot_dimension_numbers<[1], [0], [0], [1], [0, 0, 1, 1], [], []>} : vector<8x2048xbf16>, vector<2048x32xbf16>, vector<8x32xf32> -> vector<8x32xf32>
    %c15 = arith.constant 15 : index
    %c0_75 = arith.constant 0 : index
    %172 = vector.load %arg6[%c15, %c0_75] : memref<18x32xf32, #tpu.memory_space<vmem>>, vector<1x32xf32>
    %173 = vector.broadcast %172 : vector<1x32xf32> to vector<8x32xf32>
    %174 = arith.addf %171, %173 : vector<8x32xf32>
    %175 = arith.addf %160, %174 : vector<8x32xf32>
    %c16 = arith.constant 16 : index
    %c0_76 = arith.constant 0 : index
    %176 = vector.load %arg6[%c16, %c0_76] : memref<18x32xf32, #tpu.memory_space<vmem>>, vector<1x32xf32>
    %c17 = arith.constant 17 : index
    %c0_77 = arith.constant 0 : index
    %177 = vector.load %arg6[%c17, %c0_77] : memref<18x32xf32, #tpu.memory_space<vmem>>, vector<1x32xf32>
    %cst_78 = arith.constant dense<0.000000e+00> : vector<8xf32>
    %178 = vector.multi_reduction <add>, %175, %cst_78 [1] : vector<8x32xf32> to vector<8xf32>
    %179 = vector.shape_cast %178 : vector<8xf32> to vector<8x1xf32>
    %cst_79 = arith.constant 3.200000e+01 : f32
    %180 = vector.broadcast %cst_79 : f32 to vector<8x1xf32>
    %181 = arith.divf %179, %180 : vector<8x1xf32>
    %182 = vector.broadcast %181 : vector<8x1xf32> to vector<8x32xf32>
    %183 = arith.subf %175, %182 : vector<8x32xf32>
    %184 = arith.mulf %183, %183 : vector<8x32xf32>
    %cst_80 = arith.constant dense<0.000000e+00> : vector<8xf32>
    %185 = vector.multi_reduction <add>, %184, %cst_80 [1] : vector<8x32xf32> to vector<8xf32>
    %186 = vector.shape_cast %185 : vector<8xf32> to vector<8x1xf32>
    %cst_81 = arith.constant 3.200000e+01 : f32
    %187 = vector.broadcast %cst_81 : f32 to vector<8x1xf32>
    %188 = arith.divf %186, %187 : vector<8x1xf32>
    %cst_82 = arith.constant 9.99999974E-6 : f32
    %189 = vector.broadcast %cst_82 : f32 to vector<8x1xf32>
    %190 = arith.addf %188, %189 : vector<8x1xf32>
    %191 = math.rsqrt %190 : vector<8x1xf32>
    %192 = vector.broadcast %191 : vector<8x1xf32> to vector<8x32xf32>
    %193 = arith.mulf %183, %192 : vector<8x32xf32>
    %194 = vector.broadcast %176 : vector<1x32xf32> to vector<8x32xf32>
    %195 = arith.mulf %193, %194 : vector<8x32xf32>
    %196 = vector.broadcast %177 : vector<1x32xf32> to vector<8x32xf32>
    %197 = arith.addf %195, %196 : vector<8x32xf32>
    %c0_83 = arith.constant 0 : index
    %c0_84 = arith.constant 0 : index
    %198 = vector.load %arg8[%c0_83, %c0_84] : memref<8x32xf32, #tpu.memory_space<vmem>>, vector<8x32xf32>
    tpu.vector_store %arg8[%c0_83, %c0_84], %197 {strides = array<i32>} : memref<8x32xf32, #tpu.memory_space<vmem>>, vector<8x32xf32>,
    return
  }
  func.func @transform_0(%arg0: i32) -> (i32, i32) {
    %c0_i32 = arith.constant 0 : i32
    %c0_i32_0 = arith.constant 0 : i32
    return %arg0, %c0_i32 : i32, i32
  }
  func.func @transform_1(%arg0: i32) -> (i32, i32) {
    %c0_i32 = arith.constant 0 : i32
    %c0_i32_0 = arith.constant 0 : i32
    %c0_i32_1 = arith.constant 0 : i32
    return %c0_i32, %c0_i32_0 : i32, i32
  }
  func.func @transform_2(%arg0: i32) -> (i32, i32) {
    %c0_i32 = arith.constant 0 : i32
    %c0_i32_0 = arith.constant 0 : i32
    %c0_i32_1 = arith.constant 0 : i32
    return %c0_i32, %c0_i32_0 : i32, i32
  }
  func.func @transform_3(%arg0: i32) -> (i32, i32) {
    %c0_i32 = arith.constant 0 : i32
    %c0_i32_0 = arith.constant 0 : i32
    %c0_i32_1 = arith.constant 0 : i32
    return %c0_i32, %c0_i32_0 : i32, i32
  }
  func.func @transform_4(%arg0: i32) -> (i32, i32) {
    %c0_i32 = arith.constant 0 : i32
    %c0_i32_0 = arith.constant 0 : i32
    %c0_i32_1 = arith.constant 0 : i32
    return %c0_i32, %c0_i32_0 : i32, i32
  }
  func.func @transform_5(%arg0: i32) -> (i32, i32) {
    %c0_i32 = arith.constant 0 : i32
    %c0_i32_0 = arith.constant 0 : i32
    %c0_i32_1 = arith.constant 0 : i32
    return %c0_i32, %c0_i32_0 : i32, i32
  }
  func.func @transform_6(%arg0: i32) -> (i32, i32) {
    %c0_i32 = arith.constant 0 : i32
    %c0_i32_0 = arith.constant 0 : i32
    %c0_i32_1 = arith.constant 0 : i32
    return %c0_i32, %c0_i32_0 : i32, i32
  }
  func.func @transform_7(%arg0: i32) -> (i32, i32) {
    %c0_i32 = arith.constant 0 : i32
    %c0_i32_0 = arith.constant 0 : i32
    return %arg0, %c0_i32 : i32, i32
  }
}

</mosaic_0001>

<bundles_post_ra>
// kernel: tpu_custom_call.1
= control target key start
LH: loop header
LB: loop body
LE: loop exit
PB: predicated region body
PF: predicated region fallthrough
CT: control target
= control target key end

     0   :  { %v7352_v1 = vmov 0.0   ;;  %vm7353_vm0 = vmmov 0   ;;  %vm46_vm1 = vcmask 261120   ;;  %s9145_s0 = inlined_call_operand.vmem [shape: f32[8,32], index: 0, kind: input, shape index: {}]   ;;  %s9146_s1 = inlined_call_operand.vmem [shape: f32[64,32], index: 1, kind: input, shape index: {}]   ;;  %s9147_s2 = inlined_call_operand.vmem [shape: f32[256,32], index: 2, kind: input, shape index: {}]   ;;  %s9148_s3 = inlined_call_operand.vmem [shape: bf16[64,2048], index: 3, kind: input, shape index: {}]   ;;  %s9149_s4 = inlined_call_operand.vmem [shape: bf16[4096,32], index: 4, kind: input, shape index: {}]   ;;  %s9150_s5 = inlined_call_operand.vmem [shape: f32[18,32], index: 5, kind: input, shape index: {}]   ;;  %s9151_s6 = inlined_call_operand.vmem [shape: f32[2,2048], index: 6, kind: input, shape index: {}]   ;;  %s9152_s7 = inlined_call_operand.hbm [shape: f32[8,32], index: 7, kind: output, shape index: {}]  }
   0x1   :  { %v123_v0 = vld [vmem:[%s9147_s2 + $0x38] sm:$0xff]  ;;  %6820 = vmatprep.subr.mxu1 %v7352_v1  ;;  %v122_v2 = vld [vmem:[%s9147_s2 + $0x30] sm:$0xff]  ;;  %6828 = vmatprep.mubr.msk.f32.mxu1 %vm7353_vm0, %v7352_v1  ;;  %v121_v4 = vld [vmem:[%s9147_s2 + $0x28] sm:$0xff] }
   0x2   :  { %v40_v3 = vld [vmem:[%s9147_s2 + $0x18] sm:$0xff]  ;;  %6821 = vmatpush3.msra.mxu1 %v123_v0  ;;  %6809 = vmatprep.subr.mxu0 %v7352_v1  ;;  %v39_v5 = vld [vmem:[%s9147_s2 + $0x10] sm:$0xff]  ;;  %v120_v6 = vld [vmem:[%s9147_s2 + $0x20] sm:$0xff] }
   0x3   :  { %6822 = vmatprep.subr.mxu1 %v7352_v1  ;;  %6810 = vmatpush3.msra.mxu0 %v40_v3  ;;  %v38_v7 = vld [vmem:[%s9147_s2 + $0x8] sm:$0xff]  ;;  %v36_v8 = vld [vmem:[%s9145_s0] sm:$0xff] }
   0x4   :  { %6823 = vmatpush3.msra.mxu1 %v122_v2  ;;  %6811 = vmatprep.subr.mxu0 %v7352_v1  ;;  %v37_v9 = vld [vmem:[%s9147_s2] sm:$0xff] }
   0x5   :  { %6824 = vmatprep.subr.mxu1 %v7352_v1  ;;  %6812 = vmatpush3.msra.mxu0 %v39_v5 }
   0x6   :  { %6825 = vmatpush3.msra.mxu1 %v121_v4  ;;  %6813 = vmatprep.subr.mxu0 %v7352_v1 }
   0x7   :  { %6826 = vmatprep.subr.mxu1 %v7352_v1  ;;  %6814 = vmatpush3.msra.mxu0 %v38_v7 }
   0x8   :  { %6827 = vmatpush3.msra.mxu1 %v120_v6  ;;  %6815 = vmatprep.subr.mxu0 %v7352_v1 }
   0x9   :  { %6829 = vmatmul.mubr.msk.f32.vlgmr.msra.gmra.mxu1 %vm46_vm1, %v36_v8  ;;  %6816 = vmatpush3.msra.mxu0 %v37_v9 }
   0xa   :  { %6817 = vmatprep.mubr.msk.f32.mxu0 %vm7353_vm0, %v7352_v1  ;;  %6842 = vmatprep.subr.mxu1 %v7352_v1 }
   0xb   :  { %6818 = vmatmul.mubr.msk.f32.vlgmr.msra.gmra.mxu0 %vm46_vm1, %v36_v8  ;;  %6858 = vmatprep.mubr.msk.f32.mxu1 %vm7353_vm0, %v7352_v1 }
   0xc   :  { %6831 = vmatprep.subr.mxu0 %v7352_v1  ;;  %6839 = vmatprep.mubr.msk.f32.mxu0 %vm7353_vm0, %v7352_v1 }
   0xd   :  { %12 = vsyncpa [#allocation3], 0  ;;  %v5998_v10 = vld [vmem:[%s9150_s5 + $0x1] ss:$0 sm:$0xff]  ;;  %v7465_v12 = vld [vmem:[%s9146_s1 + $0x38] sm:$0xff]  ;;  %s7354_s16 = smov 104   ;;  %v418_v40 = vlaneseq }
   0xe   :  { %v7471_v17 = vld [vmem:[%s9146_s1 + $0x30] sm:$0xff]  ;;  %v7479_v20 = vld [vmem:[%s9146_s1 + $0x28] sm:$0xff]  ;;  %v7487_v22 = vld [vmem:[%s9146_s1 + $0x20] sm:$0xff]  ;;  %s7355_s17 = smov 120   ;;  %s7356_s18 = smov 96   ;;  %vm549_vm2 = vcmask 64512  }
   0xf   :  { %v7495_v24 = vld [vmem:[%s9146_s1 + $0x18] sm:$0xff]  ;;  %v7503_v26 = vld [vmem:[%s9146_s1 + $0x10] sm:$0xff]  ;;  %v7511_v28 = vld [vmem:[%s9146_s1 + $0x8] sm:$0xff]  ;;  %s7357_s19 = smov 112   ;;  %s7358_s20 = smov 80   ;;  %v7536_v44 = vshrl.u32 %v418_v40, 7 }
  0x10   :  { %v7519_v30 = vld [vmem:[%s9146_s1] sm:$0xff]  ;;  %s7359_s21 = smov 88   ;;  %s7360_s22 = smov 72   ;;  %v7361_v38 = vmov 1983009808   ;;  %vm803_vm3 = vcmask 130048  }
  0x11   :  { %v5996_v31 = vld [vmem:[%s9150_s5] ss:$0 sm:$0xff]  ;;  %v416_v39 = vunpack.c.l.s4 %v7361_v38  ;;  %v7362_v45 = vmov 1934713408   ;;  %s7363_s11 = smov 16   ;;  %s7364_s12 = smov 8  }
  0x12   :  { %v480_v46 = vunpack.c.l.s4 %v7362_v45  ;;  %s7365_s13 = smov 24   ;;  %s7366_s14 = smov 32   ;;  %vm805_vm4 = vcmask 195584   ;;  %vm808_vm5 = vcmask 326656   ;;  %vm810_vm6 = vcmask 392192  }
  0x13   :  { %v417_v43 = vunpack.c.0.s8 %v416_v39  ;;  %s7367_s15 = smov 40   ;;  %s7368_s23 = smov 48   ;;  %vm812_vm7 = vcmask 457728   ;;  %vm814_vm8 = vcmask 523264  }
  0x14   :  { %v481_v52 = vunpack.c.0.s8 %v480_v46  ;;  %s7369_s24 = smov 56  }
  0x15   :  { %v7539_v50 = vsub.s32 %v417_v43, %v7536_v44 }
  0x16   :  { %v7544_v62 = vsub.s32 %v481_v52, %v7536_v44  ;;  %v7586_v52 = vld [vmem:[%s9145_s0] sm:$0xff] }
  0xc9   :  { %v195_v11 = vpop.f32.mrf.mxu1 }
  0xca   :  { %v196_v13 = vadd.f32 %v5998_v10, %v195_v11 }
  0xcb   :  { %v6830_v14 = vpop.f32.mrf.mxu1  ;;  %v116_v15 = vpop.f32.mrf.mxu0 }
  0xcc   :  { %v285_v16 = vmul.f32 %v196_v13, %v7465_v12  ;;  %v284_v19 = vmul.f32 %v196_v13, %v7471_v17  ;;  %v283_v21 = vmul.f32 %v196_v13, %v7479_v20  ;;  %v282_v23 = vmul.f32 %v196_v13, %v7487_v22 }
  0xcd   :  { %v6819_v18 = vpop.f32.mrf.mxu0  ;;  %v281_v25 = vmul.f32 %v196_v13, %v7495_v24  ;;  %v280_v27 = vmul.f32 %v196_v13, %v7503_v26  ;;  %v279_v29 = vmul.f32 %v196_v13, %v7511_v28  ;;  %v278_v32 = vmul.f32 %v196_v13, %v7519_v30 }
  0xce   :  { %6843 = vmatpush3.xpose.msk.msra.mxu1 %vm46_vm1, %v285_v16  ;;  %v117_v33 = vadd.f32 %v5996_v31, %v116_v15 }
  0xcf   :  { %6844 = vmatprep.subr.mxu1 %v7352_v1 }
  0xd2   :  { %6845 = vmatpush3.xpose.msk.msra.mxu1 %vm46_vm1, %v284_v19 }
  0xd3   :  { %6846 = vmatprep.subr.mxu1 %v7352_v1 }
  0xd6   :  { %6847 = vmatpush3.xpose.msk.msra.mxu1 %vm46_vm1, %v283_v21 }
  0xd7   :  { %6848 = vmatprep.subr.mxu1 %v7352_v1 }
  0xda   :  { %6849 = vmatpush3.xpose.msk.msra.mxu1 %vm46_vm1, %v282_v23 }
  0xdb   :  { %6850 = vmatprep.subr.mxu1 %v7352_v1 }
  0xde   :  { %6851 = vmatpush3.xpose.msk.msra.mxu1 %vm46_vm1, %v281_v25 }
  0xdf   :  { %6852 = vmatprep.subr.mxu1 %v7352_v1 }
  0xe2   :  { %6853 = vmatpush3.xpose.msk.msra.mxu1 %vm46_vm1, %v280_v27 }
  0xe3   :  { %6854 = vmatprep.subr.mxu1 %v7352_v1 }
  0xe6   :  { %6855 = vmatpush3.xpose.msk.msra.mxu1 %vm46_vm1, %v279_v29 }
  0xe7   :  { %6856 = vmatprep.subr.mxu1 %v7352_v1 }
  0xea   :  { %6857 = vmatpush3.xpose.msk.msra.mxu1 %vm46_vm1, %v278_v32 }
  0xed   :  { %6859 = vmatmul.mubr.msk.f32.vlgmr.msra.gmra.mxu1 %vm46_vm1, %v117_v33 }
 0x1ad   :  { %v387_v34 = vpop.f32.mrf.mxu1 }
 0x1ae   :  { %398 = vrot.lane.b32.xlu1 %v387_v34, %s7354_s16  ;;  %392 = vrot.lane.b32.xlu0 %v387_v34, %s7355_s17 }
 0x1af   :  { %v6860_v35 = vpop.f32.mrf.mxu1 }
 0x1b2   :  { %401 = vrot.lane.b32.xlu1 %v387_v34, %s7356_s18  ;;  %395 = vrot.lane.b32.xlu0 %v387_v34, %s7357_s19 }
 0x1b6   :  { %407 = vrot.lane.b32.xlu1 %v387_v34, %s7358_s20  ;;  %404 = vrot.lane.b32.xlu0 %v387_v34, %s7359_s21 }
 0x1ba   :  { %410 = vrot.lane.b32.xlu0 %v387_v34, %s7360_s22 }
 0x220   :  { %v399_v36 = vpop.permute.xlu1 %398  ;;  %v393_v37 = vpop.permute.xlu0 %392 }
 0x221   :  { %v429_v51 = vcombine.low %v393_v37, %v399_v36  ;;  %v430_v61 = vcombine.high %v393_v37, %v399_v36 }
 0x223   :  { %v437_v57 = vrot.slane %v429_v51, %v7539_v50  ;;  %v444_v10 = vrot.slane %v430_v61, %v7539_v50  ;;  %v199_v51 = vld [vmem:[%s9147_s2 + $0x40] sm:$0xff] }
 0x224   :  { %v402_v41 = vpop.permute.xlu1 %401  ;;  %v396_v42 = vpop.permute.xlu0 %395 }
 0x225   :  { %v413_v47 = vcombine.low %v387_v34, %v396_v42  ;;  %v414_v58 = vcombine.high %v387_v34, %v396_v42 }
 0x227   :  { %v421_v53 = vrot.slane %v413_v47, %v7539_v50  ;;  %v428_v5 = vrot.slane %v414_v58, %v7539_v50  ;;  %v202_v47 = vld [vmem:[%s9147_s2 + $0x58] sm:$0xff] }
 0x228   :  { %v408_v48 = vpop.permute.xlu1 %407  ;;  %v405_v49 = vpop.permute.xlu0 %404  ;;  %6832 = vmatpush3.msra.mxu0 %v202_v47 }
 0x229   :  { %v445_v54 = vcombine.low %v402_v41, %v408_v48  ;;  %v446_v55 = vcombine.high %v402_v41, %v408_v48  ;;  %v477_v63 = vcombine.low %v421_v53, %v437_v57  ;;  %v478_v6 = vcombine.high %v421_v53, %v437_v57  ;;  %v201_v48 = vld [vmem:[%s9147_s2 + $0x50] sm:$0xff]  ;;  %6833 = vmatprep.subr.mxu0 %v7352_v1 }
 0x22a   :  { %v493_v15 = vcombine.low %v428_v5, %v444_v10  ;;  %v494_v32 = vcombine.high %v428_v5, %v444_v10  ;;  %6834 = vmatpush3.msra.mxu0 %v201_v48 }
 0x22b   :  { %v453_v0 = vrot.slane %v445_v54, %v7539_v50  ;;  %v460_v4 = vrot.slane %v446_v55, %v7539_v50  ;;  %v485_v11 = vrot.slane %v477_v63, %v7544_v62  ;;  %v492_v19 = vrot.slane %v478_v6, %v7544_v62  ;;  %6835 = vmatprep.subr.mxu0 %v7352_v1 }
 0x22c   :  { %v411_v56 = vpop.permute.xlu0 %410  ;;  %v501_v33 = vrot.slane %v493_v15, %v7544_v62  ;;  %v508_v39 = vrot.slane %v494_v32, %v7544_v62 }
 0x22d   :  { %v461_v59 = vcombine.low %v405_v49, %v411_v56  ;;  %v462_v60 = vcombine.high %v405_v49, %v411_v56  ;;  %v200_v49 = vld [vmem:[%s9147_s2 + $0x48] sm:$0xff] }
 0x22e   :  { %6836 = vmatpush3.msra.mxu0 %v200_v49 }
 0x22f   :  { %v469_v2 = vrot.slane %v461_v59, %v7539_v50  ;;  %v476_v3 = vrot.slane %v462_v60, %v7539_v50  ;;  %6837 = vmatprep.subr.mxu0 %v7352_v1 }
 0x230   :  { %6838 = vmatpush3.msra.mxu0 %v199_v51 }
 0x231   :  { %v509_v7 = vcombine.low %v453_v0, %v469_v2  ;;  %v510_v8 = vcombine.high %v453_v0, %v469_v2  ;;  %v525_v9 = vcombine.low %v460_v4, %v476_v3  ;;  %v526_v21 = vcombine.high %v460_v4, %v476_v3  ;;  %6840 = vmatmul.mubr.msk.f32.vlgmr.msra.gmra.mxu0 %vm46_vm1, %v7586_v52 }
 0x232   :  { %6861 = vmatprep.subr.mxu0 %v7352_v1  ;;  %6877 = vmatprep.mubr.msk.f32.mxu0 %vm7353_vm0, %v7352_v1 }
 0x233   :  { %v517_v13 = vrot.slane %v509_v7, %v7544_v62  ;;  %v524_v14 = vrot.slane %v510_v8, %v7544_v62  ;;  %v533_v23 = vrot.slane %v525_v9, %v7544_v62  ;;  %v540_v34 = vrot.slane %v526_v21, %v7544_v62 }
 0x235   :  { %v542_v16 = vcombine.high %v485_v11, %v517_v13  ;;  %v541_v18 = vcombine.low %v485_v11, %v517_v13  ;;  %v543_v29 = vcombine.low %v492_v19, %v524_v14  ;;  %v544_v31 = vcombine.high %v492_v19, %v524_v14 }
 0x236   :  { %v545_v37 = vcombine.low %v501_v33, %v533_v23  ;;  %v546_v38 = vcombine.high %v501_v33, %v533_v23  ;;  %v547_v42 = vcombine.low %v508_v39, %v540_v34  ;;  %v548_v43 = vcombine.high %v508_v39, %v540_v34  ;;  %v6000_v39 = vld [vmem:[%s9150_s5 + $0x2] ss:$0 sm:$0xff] }
 0x237   :  { %v553_v25 = vsel %vm549_vm2, %v542_v16, -inf  ;;  %v550_v27 = vsel %vm549_vm2, %v541_v18, -inf  ;;  %v556_v35 = vsel %vm549_vm2, %v543_v29, -inf  ;;  %v559_v36 = vsel %vm549_vm2, %v544_v31, -inf }
 0x238   :  { %554 = vmax.xlane.f32.xlu0 %v553_v25  ;;  %551 = vmax.xlane.f32.xlu1 %v550_v27  ;;  %v562_v40 = vsel %vm549_vm2, %v545_v37, -inf  ;;  %v565_v41 = vsel %vm549_vm2, %v546_v38, -inf  ;;  %v568_v45 = vsel %vm549_vm2, %v547_v42, -inf  ;;  %v571_v46 = vsel %vm549_vm2, %v548_v43, -inf }
 0x23c   :  { %557 = vmax.xlane.f32.xlu0 %v556_v35  ;;  %560 = vmax.xlane.f32.xlu1 %v559_v36 }
 0x240   :  { %563 = vmax.xlane.f32.xlu0 %v562_v40  ;;  %566 = vmax.xlane.f32.xlu1 %v565_v41 }
 0x244   :  { %569 = vmax.xlane.f32.xlu0 %v568_v45  ;;  %572 = vmax.xlane.f32.xlu1 %v571_v46 }
 0x2c1   :  { %v555_v53 = vpop.xlane.xlu0 %554  ;;  %v552_v54 = vpop.xlane.xlu1 %551 }
 0x2c2   :  { %v575_v55 = vsub.f32 %v542_v16, %v555_v53  ;;  %v574_v56 = vsub.f32 %v541_v18, %v552_v54 }
 0x2c4   :  { %v584_v57 = vmul.f32 1.442695, %v575_v55  ;;  %v582_v58 = vmul.f32 1.442695, %v574_v56 }
 0x2c5   :  { %v558_v59 = vpop.xlane.xlu0 %557  ;;  %v561_v60 = vpop.xlane.xlu1 %560 }
 0x2c6   :  { %7249 = vpow2.f32 %v584_v57  ;;  %v576_v61 = vsub.f32 %v543_v29, %v558_v59  ;;  %v577_v63 = vsub.f32 %v544_v31, %v561_v60 }
 0x2c7   :  { %7251 = vpow2.f32 %v582_v58 }
 0x2c8   :  { %v586_v0 = vmul.f32 1.442695, %v576_v61  ;;  %v588_v2 = vmul.f32 1.442695, %v577_v63 }
 0x2c9   :  { %v564_v3 = vpop.xlane.xlu0 %563  ;;  %v567_v4 = vpop.xlane.xlu1 %566 }
 0x2ca   :  { %7253 = vpow2.f32 %v586_v0  ;;  %v578_v5 = vsub.f32 %v545_v37, %v564_v3  ;;  %v579_v6 = vsub.f32 %v546_v38, %v567_v4 }
 0x2cb   :  { %7255 = vpow2.f32 %v588_v2 }
 0x2cc   :  { %v590_v7 = vmul.f32 1.442695, %v578_v5  ;;  %v592_v8 = vmul.f32 1.442695, %v579_v6 }
 0x2cd   :  { %v570_v9 = vpop.xlane.xlu0 %569  ;;  %v573_v10 = vpop.xlane.xlu1 %572 }
 0x2ce   :  { %7257 = vpow2.f32 %v590_v7  ;;  %v580_v11 = vsub.f32 %v547_v42, %v570_v9  ;;  %v581_v13 = vsub.f32 %v548_v43, %v573_v10 }
 0x2cf   :  { %7259 = vpow2.f32 %v592_v8 }
 0x2d0   :  { %v594_v14 = vmul.f32 1.442695, %v580_v11  ;;  %v596_v15 = vmul.f32 1.442695, %v581_v13 }
 0x2d2   :  { %7261 = vpow2.f32 %v594_v14 }
 0x2d3   :  { %v7593_v16 = vpop.eup %7249  ;;  %7263 = vpow2.f32 %v596_v15 }
 0x2d4   :  { %v7595_v18 = vpop.eup %7251  ;;  %v601_v19 = vsel %vm549_vm2, %v7593_v16, 0.0 }
 0x2d5   :  { %602 = vadd.xlane.f32.xlu1 %v601_v19  ;;  %v598_v21 = vsel %vm549_vm2, %v7595_v18, 0.0 }
 0x2d6   :  { %599 = vadd.xlane.f32.xlu0 %v598_v21 }
 0x2d7   :  { %v7601_v23 = vpop.eup %7253 }
 0x2d8   :  { %v7603_v25 = vpop.eup %7255  ;;  %v604_v27 = vsel %vm549_vm2, %v7601_v23, 0.0 }
 0x2d9   :  { %v607_v29 = vsel %vm549_vm2, %v7603_v25, 0.0 }
 0x2da   :  { %605 = vadd.xlane.f32.xlu0 %v604_v27  ;;  %608 = vadd.xlane.f32.xlu1 %v607_v29 }
 0x2db   :  { %v7609_v31 = vpop.eup %7257 }
 0x2dc   :  { %v7611_v32 = vpop.eup %7259  ;;  %v610_v33 = vsel %vm549_vm2, %v7609_v31, 0.0 }
 0x2dd   :  { %v613_v34 = vsel %vm549_vm2, %v7611_v32, 0.0 }
 0x2de   :  { %611 = vadd.xlane.f32.xlu0 %v610_v33  ;;  %614 = vadd.xlane.f32.xlu1 %v613_v34 }
 0x2df   :  { %v7617_v35 = vpop.eup %7261 }
 0x2e0   :  { %v7619_v36 = vpop.eup %7263  ;;  %v616_v37 = vsel %vm549_vm2, %v7617_v35, 0.0 }
 0x2e1   :  { %v619_v38 = vsel %vm549_vm2, %v7619_v36, 0.0 }
 0x2e2   :  { %617 = vadd.xlane.f32.xlu0 %v616_v37  ;;  %620 = vadd.xlane.f32.xlu1 %v619_v38 }
 0x2f1   :  { %v274_v40 = vpop.f32.mrf.mxu0 }
 0x2f2   :  { %v275_v41 = vadd.f32 %v6000_v39, %v274_v40 }
 0x2f3   :  { %v6841_v42 = vpop.f32.mrf.mxu0 }
 0x2f4   :  { %v293_v43 = vmul.f32 %v275_v41, %v7465_v12  ;;  %v292_v45 = vmul.f32 %v275_v41, %v7471_v17  ;;  %v291_v46 = vmul.f32 %v275_v41, %v7479_v20  ;;  %v290_v47 = vmul.f32 %v275_v41, %v7487_v22 }
 0x2f5   :  { %v289_v48 = vmul.f32 %v275_v41, %v7495_v24  ;;  %v288_v12 = vmul.f32 %v275_v41, %v7503_v26  ;;  %v287_v17 = vmul.f32 %v275_v41, %v7511_v28  ;;  %v286_v20 = vmul.f32 %v275_v41, %v7519_v30 }
 0x2f6   :  { %6862 = vmatpush3.msra.mxu0 %v293_v43 }
 0x2f7   :  { %6863 = vmatprep.subr.mxu0 %v7352_v1 }
 0x2f8   :  { %6864 = vmatpush3.msra.mxu0 %v292_v45 }
 0x2f9   :  { %6865 = vmatprep.subr.mxu0 %v7352_v1 }
 0x2fa   :  { %6866 = vmatpush3.msra.mxu0 %v291_v46 }
 0x2fb   :  { %6867 = vmatprep.subr.mxu0 %v7352_v1 }
 0x2fc   :  { %6868 = vmatpush3.msra.mxu0 %v290_v47 }
 0x2fd   :  { %6869 = vmatprep.subr.mxu0 %v7352_v1 }
 0x2fe   :  { %6870 = vmatpush3.msra.mxu0 %v289_v48 }
 0x2ff   :  { %6871 = vmatprep.subr.mxu0 %v7352_v1 }
 0x300   :  { %6872 = vmatpush3.msra.mxu0 %v288_v12 }
 0x301   :  { %6873 = vmatprep.subr.mxu0 %v7352_v1 }
 0x302   :  { %6874 = vmatpush3.msra.mxu0 %v287_v17 }
 0x303   :  { %6875 = vmatprep.subr.mxu0 %v7352_v1 }
 0x304   :  { %6876 = vmatpush3.msra.mxu0 %v286_v20 }
 0x305   :  { %6880 = vmatprep.subr.mxu0 %v7352_v1 }
 0x35e   :  { %v603_v22 = vpop.xlane.xlu1 %602 }
 0x35f   :  { %v600_v24 = vpop.xlane.xlu0 %599  ;;  %7265 = vrcp.f32 %v603_v22 }
 0x360   :  { %7267 = vrcp.f32 %v600_v24 }
 0x363   :  { %v606_v26 = vpop.xlane.xlu0 %605  ;;  %v609_v49 = vpop.xlane.xlu1 %608 }
 0x364   :  { %7269 = vrcp.f32 %v606_v26 }
 0x365   :  { %7271 = vrcp.f32 %v609_v49 }
 0x367   :  { %v612_v28 = vpop.xlane.xlu0 %611  ;;  %v615_v51 = vpop.xlane.xlu1 %614 }
 0x368   :  { %7273 = vrcp.f32 %v612_v28 }
 0x369   :  { %7275 = vrcp.f32 %v615_v51 }
 0x36b   :  { %v618_v30 = vpop.xlane.xlu0 %617  ;;  %v621_v53 = vpop.xlane.xlu1 %620 }
 0x36c   :  { %7277 = vrcp.f32 %v618_v30  ;;  %v7266_v54 = vpop.eup %7265 }
 0x36d   :  { %7279 = vrcp.f32 %v621_v53  ;;  %v7268_v55 = vpop.eup %7267  ;;  %v631_v61 = vmul.f32 %v7266_v54, %v7593_v16 }
 0x36e   :  { %v630_v60 = vmul.f32 %v7268_v55, %v7595_v18 }
 0x371   :  { %v7270_v56 = vpop.eup %7269 }
 0x372   :  { %v7272_v57 = vpop.eup %7271  ;;  %v632_v58 = vmul.f32 %v7270_v56, %v7601_v23 }
 0x373   :  { %v633_v59 = vmul.f32 %v7272_v57, %v7603_v25 }
 0x374   :  { %v638_v0 = vcombine.low %v630_v60, %v632_v58  ;;  %v639_v8 = vcombine.high %v630_v60, %v632_v58 }
 0x375   :  { %v7274_v63 = vpop.eup %7273  ;;  %v654_v2 = vcombine.low %v631_v61, %v633_v59  ;;  %v655_v9 = vcombine.high %v631_v61, %v633_v59 }
 0x376   :  { %v7276_v3 = vpop.eup %7275  ;;  %v634_v6 = vmul.f32 %v7274_v63, %v7609_v31  ;;  %v646_v13 = vrot.slane %v638_v0, %v7539_v50  ;;  %v653_v23 = vrot.slane %v639_v8, %v7539_v50 }
 0x377   :  { %v635_v10 = vmul.f32 %v7276_v3, %v7611_v32  ;;  %v662_v14 = vrot.slane %v654_v2, %v7539_v50  ;;  %v669_v25 = vrot.slane %v655_v9, %v7539_v50  ;;  %v891_v2 = vld [vmem:[%s9147_s2 + $0x78] sm:$0xff]  ;;  %v6012_v9 = vld [vmem:[%s9150_s5 + $0x3] ss:$0 sm:$0xff] }
 0x379   :  { %v7278_v4 = vpop.eup %7277  ;;  %v703_v31 = vcombine.high %v646_v13, %v662_v14  ;;  %v702_v32 = vcombine.low %v646_v13, %v662_v14  ;;  %v718_v37 = vcombine.low %v653_v23, %v669_v25  ;;  %v719_v12 = vcombine.high %v653_v23, %v669_v25  ;;  %v1013_v25 = vld [vmem:[%s9148_s3 + $0x80] sm:$0xff] }
 0x37a   :  { %v7280_v5 = vpop.eup %7279  ;;  %v636_v7 = vmul.f32 %v7278_v4, %v7617_v35  ;;  %v890_v4 = vld [vmem:[%s9147_s2 + $0x70] sm:$0xff] }
 0x37b   :  { %v637_v11 = vmul.f32 %v7280_v5, %v7619_v36  ;;  %v717_v38 = vrot.slane %v703_v31, %v7544_v62  ;;  %v710_v40 = vrot.slane %v702_v32, %v7544_v62  ;;  %v726_v48 = vrot.slane %v718_v37, %v7544_v62  ;;  %v889_v5 = vld [vmem:[%s9147_s2 + $0x68] sm:$0xff] }
 0x37c   :  { %v670_v15 = vcombine.low %v634_v6, %v636_v7  ;;  %v671_v16 = vcombine.high %v634_v6, %v636_v7  ;;  %v733_v24 = vrot.slane %v719_v12, %v7544_v62  ;;  %v888_v6 = vld [vmem:[%s9147_s2 + $0x60] sm:$0xff]  ;;  %v1022_v31 = vld [vmem:[%s9148_s3 + $0xc8] sm:$0xff]  ;;  %v1024_v12 = vld [vmem:[%s9148_s3 + $0xd8] sm:$0xff] }
 0x37d   :  { %v686_v18 = vcombine.low %v635_v10, %v637_v11  ;;  %v687_v19 = vcombine.high %v635_v10, %v637_v11  ;;  %v998_v37 = vld [vmem:[%s9148_s3 + $0x8] sm:$0xff] }
 0x37e   :  { %v678_v21 = vrot.slane %v670_v15, %v7539_v50  ;;  %v685_v27 = vrot.slane %v671_v16, %v7539_v50 }
 0x37f   :  { %v694_v29 = vrot.slane %v686_v18, %v7539_v50  ;;  %v701_v33 = vrot.slane %v687_v19, %v7539_v50 }
 0x381   :  { %v735_v34 = vcombine.high %v678_v21, %v694_v29  ;;  %v734_v35 = vcombine.low %v678_v21, %v694_v29  ;;  %v750_v36 = vcombine.low %v685_v27, %v701_v33  ;;  %v751_v46 = vcombine.high %v685_v27, %v701_v33  ;;  %v1021_v27 = vld [vmem:[%s9148_s3 + $0xc0] sm:$0xff] }
 0x382   :  { %v6034_v29 = vcombine.high %v1013_v25, %v1021_v27  ;;  %v6033_v32 = vcombine.low %v1013_v25, %v1021_v27  ;;  %v1028_v25 = vld [vmem:[%s9148_s3 + $0xf8] sm:$0xff] }
 0x383   :  { %v749_v39 = vrot.slane %v735_v34, %v7544_v62  ;;  %v742_v41 = vrot.slane %v734_v35, %v7544_v62  ;;  %v758_v45 = vrot.slane %v750_v36, %v7544_v62  ;;  %v765_v22 = vrot.slane %v751_v46, %v7544_v62  ;;  %v997_v35 = vld [vmem:[%s9148_s3] sm:$0xff]  ;;  %v1016_v46 = vld [vmem:[%s9148_s3 + $0x98] sm:$0xff] }
 0x384   :  { %v1005_v36 = vld [vmem:[%s9148_s3 + $0x40] sm:$0xff] }
 0x385   :  { %v768_v42 = vcombine.low %v717_v38, %v749_v39  ;;  %v767_v43 = vcombine.high %v710_v40, %v742_v41  ;;  %v766_v47 = vcombine.low %v710_v40, %v742_v41  ;;  %v769_v17 = vcombine.high %v717_v38, %v749_v39  ;;  %v1006_v39 = vld [vmem:[%s9148_s3 + $0x48] sm:$0xff] }
 0x386   :  { %v770_v20 = vcombine.low %v726_v48, %v758_v45  ;;  %v771_v26 = vcombine.high %v726_v48, %v758_v45  ;;  %v772_v49 = vcombine.low %v733_v24, %v765_v22  ;;  %v773_v28 = vcombine.high %v733_v24, %v765_v22  ;;  %v1023_v45 = vld [vmem:[%s9148_s3 + $0xd0] sm:$0xff] }
 0x387   :  { %779 = vrot.lane.b32.xlu1 %v768_v42, %s7363_s11  ;;  %775 = vrot.lane.b32.xlu0 %v767_v43, %s7364_s12  ;;  %v6018_v38 = vcombine.high %v997_v35, %v1005_v36  ;;  %v6017_v40 = vcombine.low %v997_v35, %v1005_v36  ;;  %v6019_v41 = vcombine.low %v998_v37, %v1006_v39  ;;  %v1015_v43 = vld [vmem:[%s9148_s3 + $0x90] sm:$0xff]  ;;  %v1012_v35 = vld [vmem:[%s9148_s3 + $0x78] sm:$0xff] }
 0x388   :  { %v6020_v42 = vcombine.high %v998_v37, %v1006_v39  ;;  %v6038_v48 = vcombine.high %v1015_v43, %v1023_v45  ;;  %v6040_v22 = vcombine.high %v1016_v46, %v1024_v12 }
 0x38b   :  { %783 = vrot.lane.b32.xlu1 %v769_v17, %s7365_s13  ;;  %787 = vrot.lane.b32.xlu0 %v770_v20, %s7366_s14  ;;  %v6037_v17 = vcombine.low %v1015_v43, %v1023_v45  ;;  %v6039_v20 = vcombine.low %v1016_v46, %v1024_v12  ;;  %v6994_v43 = vld [vmem:[%s9149_s4 + $0xf8] sm:$0xff]   ;;  %v6998_v12 = vld [vmem:[%s9149_s4 + $0xf0] sm:$0xff]  }
 0x38c   :  { %v6995_v45 = vld [vmem:[%s9149_s4 + $0x38] sm:$0xff]  }
 0x38d   :  { %v6996_v46 = vld [vmem:[%s9149_s4 + $0xb8] sm:$0xff]  }
 0x38f   :  { %791 = vrot.lane.b32.xlu1 %v771_v26, %s7367_s15  ;;  %795 = vrot.lane.b32.xlu0 %v772_v49, %s7368_s23 }
 0x393   :  { %799 = vrot.lane.b32.xlu1 %v773_v28, %s7369_s24 }
 0x3f9   :  { %v780_v51 = vpop.permute.xlu1 %779  ;;  %v776_v30 = vpop.permute.xlu0 %775 }
 0x3fa   :  { %v802_v53 = vsel %vm549_vm2, %v766_v47, %v776_v30  ;;  %v7370_v47 = vmov 0  }
 0x3fb   :  { %v804_v55 = vsel %vm803_vm3, %v802_v53, %v780_v51  ;;  %1607 = vmatprep.mubr.bf16.mxu1 %v7370_v47  ;;  %v6014_v51 = vld [vmem:[%s9150_s5 + $0x4] ss:$0 sm:$0xff]  ;;  %v6015_v53 = vld [vmem:[%s9150_s5 + $0x5] ss:$0 sm:$0xff] }
 0x3fd   :  { %v784_v54 = vpop.permute.xlu1 %783  ;;  %v788_v56 = vpop.permute.xlu0 %787 }
 0x3fe   :  { %v806_v57 = vsel %vm805_vm4, %v804_v55, %v784_v54  ;;  %v999_v55 = vld [vmem:[%s9148_s3 + $0x10] sm:$0xff] }
 0x3ff   :  { %v807_v58 = vsel %vm46_vm1, %v806_v57, %v788_v56  ;;  %v1007_v56 = vld [vmem:[%s9148_s3 + $0x50] sm:$0xff]  ;;  %v1000_v57 = vld [vmem:[%s9148_s3 + $0x18] sm:$0xff] }
 0x401   :  { %v792_v59 = vpop.permute.xlu1 %791  ;;  %v796_v61 = vpop.permute.xlu0 %795 }
 0x402   :  { %v809_v60 = vsel %vm808_vm5, %v807_v58, %v792_v59  ;;  %v1008_v58 = vld [vmem:[%s9148_s3 + $0x58] sm:$0xff] }
 0x403   :  { %v811_v63 = vsel %vm810_vm6, %v809_v60, %v796_v61  ;;  %v6022_v61 = vcombine.high %v999_v55, %v1007_v56 }
 0x405   :  { %v800_v0 = vpop.permute.xlu1 %799 }
 0x406   :  { %v813_v3 = vsel %vm812_vm7, %v811_v63, %v800_v0  ;;  %v6024_v63 = vcombine.high %v1000_v57, %v1008_v58  ;;  %v1017_v0 = vld [vmem:[%s9148_s3 + $0xa0] sm:$0xff] }
 0x407   :  { %6878 = vmatmul.mubr.msk.f32.vlgmr.msra.gmra.mxu0 %vm814_vm8, %v813_v3  ;;  %v1018_v3 = vld [vmem:[%s9148_s3 + $0xa8] sm:$0xff] }
 0x408   :  { %6881 = vmatpush3.msra.mxu0 %v891_v2  ;;  %6888 = vmatprep.mubr.msk.f32.mxu0 %vm7353_vm0, %v7352_v1  ;;  %v1025_v2 = vld [vmem:[%s9148_s3 + $0xe0] sm:$0xff] }
 0x409   :  { %6882 = vmatprep.subr.mxu0 %v7352_v1 }
 0x40a   :  { %6883 = vmatpush3.msra.mxu0 %v890_v4  ;;  %v1026_v4 = vld [vmem:[%s9148_s3 + $0xe8] sm:$0xff] }
 0x40b   :  { %6884 = vmatprep.subr.mxu0 %v7352_v1 }
 0x40c   :  { %6885 = vmatpush3.msra.mxu0 %v889_v5  ;;  %v6021_v5 = vcombine.low %v999_v55, %v1007_v56  ;;  %v7010_v55 = vld [vmem:[%s9149_s4 + $0xd8] sm:$0xff]  }
 0x40d   :  { %6886 = vmatprep.subr.mxu0 %v7352_v1  ;;  %v7011_v56 = vld [vmem:[%s9149_s4 + $0x18] sm:$0xff]  }
 0x40e   :  { %6887 = vmatpush3.msra.mxu0 %v888_v6  ;;  %v6023_v6 = vcombine.low %v1000_v57, %v1008_v58  ;;  %v7012_v57 = vld [vmem:[%s9149_s4 + $0x98] sm:$0xff]   ;;  %v7013_v58 = vld [vmem:[%s9149_s4 + $0x50] sm:$0xff]  }
 0x40f   :  { %1546 = vmatprep.subr.bf16.mxu0 %v6034_v29 }
 0x4c7   :  { %v884_v7 = vpop.f32.mrf.mxu0 }
 0x4c8   :  { %6889 = vmatmul.mubr.msk.f32.vlgmr.msra.gmra.mxu0 %vm46_vm1, %v884_v7  ;;  %v6042_v7 = vcombine.high %v1017_v0, %v1025_v2 }
 0x4c9   :  { %v6879_v8 = vpop.f32.mrf.mxu0  ;;  %1547 = vmatpush1.bf16.msra.mxu0 %v6033_v32  ;;  %1566 = vmatprep.mubr.bf16.mxu0 %v7370_v47  ;;  %v1003_v32 = vld [vmem:[%s9148_s3 + $0x30] sm:$0xff] }
 0x4ca   :  { %1548 = vmatprep.subr.bf16.mxu0 %v6018_v38  ;;  %v6044_v8 = vcombine.high %v1018_v3, %v1026_v4 }
 0x4cd   :  { %1549 = vmatpush1.bf16.msra.mxu0 %v6017_v40 }
 0x4ce   :  { %1628 = vmatprep.subr.bf16.mxu0 %v6038_v48  ;;  %v6997_v48 = vld [vmem:[%s9149_s4 + $0x70] sm:$0xff]  }
 0x588   :  { %v966_v10 = vpop.f32.mrf.mxu0 }
 0x589   :  { %v967_v11 = vadd.f32 %v6012_v9, %v966_v10  ;;  %v1001_v9 = vld [vmem:[%s9148_s3 + $0x20] sm:$0xff] }
 0x58a   :  { %v6890_v13 = vpop.f32.mrf.mxu0  ;;  %v1009_v10 = vld [vmem:[%s9148_s3 + $0x60] sm:$0xff] }
 0x58b   :  { %v970_v14 = vadd.f32 %v7586_v52, %v967_v11  ;;  %v1014_v52 = vld [vmem:[%s9148_s3 + $0x88] sm:$0xff]  ;;  %v6025_v27 = vcombine.low %v1001_v9, %v1009_v10 }
 0x58c   :  { %v6035_v33 = vcombine.low %v1014_v52, %v1022_v31  ;;  %v6036_v34 = vcombine.high %v1014_v52, %v1022_v31  ;;  %v1002_v11 = vld [vmem:[%s9148_s3 + $0x28] sm:$0xff] }
 0x58d   :  { %v973_v15 = vsel %vm46_vm1, %v970_v14, 0.0  ;;  %v1010_v13 = vld [vmem:[%s9148_s3 + $0x68] sm:$0xff] }
 0x58e   :  { %974 = vadd.xlane.f32.xlu0 %v973_v15  ;;  %1587 = vmatprep.subr.bf16.mxu1 %v6036_v34  ;;  %v6043_v15 = vcombine.low %v1018_v3, %v1026_v4  ;;  %v6027_v52 = vcombine.low %v1002_v11, %v1010_v13  ;;  %v1004_v34 = vld [vmem:[%s9148_s3 + $0x38] sm:$0xff]  ;;  %v7019_v3 = vld [vmem:[%s9149_s4 + $0x8] sm:$0xff]  }
 0x58f   :  { %1588 = vmatpush1.bf16.msra.mxu1 %v6035_v33  ;;  %v1011_v33 = vld [vmem:[%s9148_s3 + $0x70] sm:$0xff]  ;;  %v6032_v39 = vcombine.high %v1004_v34, %v1012_v35  ;;  %v7020_v4 = vld [vmem:[%s9149_s4 + $0x88] sm:$0xff]  }
 0x590   :  { %1589 = vmatprep.subr.bf16.mxu1 %v6020_v42  ;;  %v6030_v38 = vcombine.high %v1003_v32, %v1011_v33  ;;  %v6029_v40 = vcombine.low %v1003_v32, %v1011_v33  ;;  %v6993_v42 = vld [vmem:[%s9149_s4 + $0x78] sm:$0xff]  }
 0x593   :  { %1590 = vmatpush1.bf16.msra.mxu1 %v6019_v41  ;;  %v6031_v41 = vcombine.low %v1004_v34, %v1012_v35  ;;  %v7967_v35 = vsub.s32 5, %v7536_v44 }
 0x594   :  { %1669 = vmatprep.subr.bf16.mxu1 %v6040_v22  ;;  %v7001_v22 = vld [vmem:[%s9149_s4 + $0x68] sm:$0xff]  }
 0x617   :  { %v975_v16 = vpop.xlane.xlu0 %974 }
 0x618   :  { %v977_v18 = vmul.f32 0.03125, %v975_v16  ;;  %v6026_v16 = vcombine.high %v1001_v9, %v1009_v10  ;;  %v7025_v9 = vld [vmem:[%s9149_s4 + $0x178] sm:$0xff]  }
 0x619   :  { %v7026_v10 = vld [vmem:[%s9149_s4 + $0x1f8] sm:$0xff]  }
 0x61a   :  { %v978_v19 = vsub.f32 %v970_v14, %v977_v18  ;;  %v6041_v14 = vcombine.low %v1017_v0, %v1025_v2  ;;  %v6028_v18 = vcombine.high %v1002_v11, %v1010_v13  ;;  %v7017_v0 = vld [vmem:[%s9149_s4 + $0x48] sm:$0xff]   ;;  %v7942_v11 = vsub.s32 0, %v7536_v44 }
 0x61b   :  { %v7018_v2 = vld [vmem:[%s9149_s4 + $0xc8] sm:$0xff]   ;;  %v7945_v13 = vsub.s32 2, %v7536_v44 }
 0x61c   :  { %v979_v21 = vmul.f32 %v978_v19, %v978_v19 }
 0x61e   :  { %v980_v23 = vsel %vm46_vm1, %v979_v21, 0.0  ;;  %v1027_v21 = vld [vmem:[%s9148_s3 + $0xf0] sm:$0xff] }
 0x61f   :  { %981 = vadd.xlane.f32.xlu1 %v980_v23  ;;  %v1020_v23 = vld [vmem:[%s9148_s3 + $0xb8] sm:$0xff] }
 0x620   :  { %v6048_v31 = vcombine.high %v1020_v23, %v1028_v25  ;;  %v6047_v37 = vcombine.low %v1020_v23, %v1028_v25 }
 0x6a8   :  { %v982_v24 = vpop.xlane.xlu1 %981 }
 0x6a9   :  { %v983_v26 = vmul.f32 0.03125, %v982_v24  ;;  %v7002_v24 = vld [vmem:[%s9149_s4 + $0xe8] sm:$0xff]  }
 0x6ab   :  { %v984_v49 = vadd.f32 1e-05, %v983_v26  ;;  %v7003_v26 = vld [vmem:[%s9149_s4 + $0x28] sm:$0xff]  }
 0x6ad   :  { %7281 = vrsqrt.f32 %v984_v49  ;;  %v7004_v49 = vld [vmem:[%s9149_s4 + $0xa8] sm:$0xff]  }
 0x6ba   :  { %v7282_v28 = vpop.eup %7281 }
 0x6bb   :  { %v986_v30 = vmul.f32 %v7282_v28, %v978_v19  ;;  %v1019_v19 = vld [vmem:[%s9148_s3 + $0xb0] sm:$0xff]  ;;  %v7005_v28 = vld [vmem:[%s9149_s4 + $0x60] sm:$0xff]  }
 0x6bc   :  { %v6046_v29 = vcombine.high %v1019_v19, %v1027_v21  ;;  %v6045_v36 = vcombine.low %v1019_v19, %v1027_v21 }
 0x6bd   :  { %v991_v54 = vmul.f32 %v6014_v51, %v986_v30  ;;  %v7006_v51 = vld [vmem:[%s9149_s4 + $0xe0] sm:$0xff]  }
 0x6be   :  { %v7007_v30 = vld [vmem:[%s9149_s4 + $0x20] sm:$0xff]  }
 0x6bf   :  { %v7763_v59 = vadd.f32 %v6015_v53, %v991_v54  ;;  %v7008_v53 = vld [vmem:[%s9149_s4 + $0xa0] sm:$0xff]   ;;  %v7009_v54 = vld [vmem:[%s9149_s4 + $0x58] sm:$0xff]  }
 0x6c1   :  { %v7767_v60 = vpack.c.bf16 %v7763_v59, %v7763_v59 }
 0x6c3   :  { %6049 = vmatmul.mubr.msk.bf16.vlgmr.msra.gmra.mxu0 %vm46_vm1, %v7767_v60  ;;  %6050 = vmatmul.mubr.msk.bf16.vlgmr.msra.gmra.mxu1 %vm46_vm1, %v7767_v60 }
 0x6c4   :  { %1629 = vmatpush1.bf16.msra.mxu0 %v6037_v17  ;;  %1670 = vmatpush1.bf16.msra.mxu1 %v6039_v20  ;;  %v6999_v17 = vld [vmem:[%s9149_s4 + $0x30] sm:$0xff]  }
 0x6c5   :  { %1630 = vmatprep.subr.bf16.mxu0 %v6022_v61  ;;  %1671 = vmatprep.subr.bf16.mxu1 %v6024_v63  ;;  %v7000_v20 = vld [vmem:[%s9149_s4 + $0xb0] sm:$0xff]  }
 0x6c6   :  { %1648 = vmatprep.mubr.bf16.mxu0 %v7370_v47  ;;  %1689 = vmatprep.mubr.bf16.mxu1 %v7370_v47  ;;  %v7015_v61 = vld [vmem:[%s9149_s4 + $0x10] sm:$0xff]  }
 0x6c7   :  { %v7016_v63 = vld [vmem:[%s9149_s4 + $0x90] sm:$0xff]  }
 0x6c8   :  { %1631 = vmatpush1.bf16.msra.mxu0 %v6021_v5  ;;  %1672 = vmatpush1.bf16.msra.mxu1 %v6023_v6  ;;  %v7021_v5 = vld [vmem:[%s9149_s4 + $0x40] sm:$0xff]  }
 0x6c9   :  { %1710 = vmatprep.subr.bf16.mxu0 %v6042_v7  ;;  %1751 = vmatprep.subr.bf16.mxu1 %v6044_v8  ;;  %v7022_v6 = vld [vmem:[%s9149_s4 + $0xc0] sm:$0xff]  }
 0x6ca   :  { %v7023_v7 = vld [vmem:[%s9149_s4] sm:$0xff]  }
 0x6cb   :  { %6051 = vmatmul.mubr.msk.bf16.vlgmr.msra.gmra.mxu0 %vm46_vm1, %v7767_v60  ;;  %6052 = vmatmul.mubr.msk.bf16.vlgmr.msra.gmra.mxu1 %vm46_vm1, %v7767_v60  ;;  %v7024_v8 = vld [vmem:[%s9149_s4 + $0x80] sm:$0xff]  }
 0x6cc   :  { %1711 = vmatpush1.bf16.msra.mxu0 %v6041_v14  ;;  %1752 = vmatpush1.bf16.msra.mxu1 %v6043_v15  ;;  %v7950_v14 = vld [vmem:[%s9151_s6] ss:$2 sm:$0xff]  ;;  %v7953_v15 = vsub.s32 1, %v7536_v44 }
 0x6cd   :  { %1712 = vmatprep.subr.bf16.mxu0 %v6026_v16  ;;  %1753 = vmatprep.subr.bf16.mxu1 %v6028_v18  ;;  %v7956_v16 = vsub.s32 3, %v7536_v44  ;;  %v1294_v18 = vrot.slane %v7950_v14, %v7942_v11  ;;  %v1302_v19 = vrot.slane %v7950_v14, %v7945_v13 }
 0x6ce   :  { %1730 = vmatprep.mubr.bf16.mxu0 %v7370_v47  ;;  %1771 = vmatprep.mubr.bf16.mxu1 %v7370_v47  ;;  %v1298_v21 = vrot.slane %v7950_v14, %v7953_v15 }
 0x6cf   :  { %v1306_v23 = vrot.slane %v7950_v14, %v7956_v16 }
 0x6d0   :  { %1713 = vmatpush1.bf16.msra.mxu0 %v6025_v27  ;;  %1754 = vmatpush1.bf16.msra.mxu1 %v6027_v52 }
 0x6d1   :  { %1792 = vmatprep.subr.bf16.mxu0 %v6046_v29  ;;  %1833 = vmatprep.subr.bf16.mxu1 %v6048_v31 }
 0x6d3   :  { %6053 = vmatmul.mubr.msk.bf16.vlgmr.msra.gmra.mxu0 %vm46_vm1, %v7767_v60  ;;  %6054 = vmatmul.mubr.msk.bf16.vlgmr.msra.gmra.mxu1 %vm46_vm1, %v7767_v60 }
 0x6d4   :  { %1793 = vmatpush1.bf16.msra.mxu0 %v6045_v36  ;;  %1834 = vmatpush1.bf16.msra.mxu1 %v6047_v37  ;;  %v7970_v36 = vsub.s32 7, %v7536_v44 }
 0x6d5   :  { %1794 = vmatprep.subr.bf16.mxu0 %v6030_v38  ;;  %1835 = vmatprep.subr.bf16.mxu1 %v6032_v39 }
 0x6d6   :  { %1812 = vmatprep.mubr.bf16.mxu0 %v7370_v47  ;;  %1853 = vmatprep.mubr.bf16.mxu1 %v7370_v47 }
 0x6d8   :  { %1795 = vmatpush1.bf16.msra.mxu0 %v6029_v40  ;;  %1836 = vmatpush1.bf16.msra.mxu1 %v6031_v41 }
 0x6d9   :  { %6419 = vmatprep.subr.bf16.mxu0 %v6993_v42  ;;  %6441 = vmatprep.subr.bf16.mxu1 %v6994_v43 }
 0x6db   :  { %6055 = vmatmul.mubr.msk.bf16.vlgmr.msra.gmra.mxu0 %vm46_vm1, %v7767_v60  ;;  %6056 = vmatmul.mubr.msk.bf16.vlgmr.msra.gmra.mxu1 %vm46_vm1, %v7767_v60  ;;  %v7014_v60 = vld [vmem:[%s9149_s4 + $0xd0] sm:$0xff]  }
 0x6dc   :  { %6420 = vmatpush3.bf16.msra.mxu0 %v6995_v45  ;;  %6442 = vmatpush3.bf16.msra.mxu1 %v6996_v46 }
 0x6dd   :  { %6421 = vmatprep.subr.bf16.mxu0 %v6997_v48  ;;  %6443 = vmatprep.subr.bf16.mxu1 %v6998_v12  ;;  %v1314_v12 = vrot.slane %v7950_v14, %v7967_v35 }
 0x6e0   :  { %6422 = vmatpush3.bf16.msra.mxu0 %v6999_v17  ;;  %6444 = vmatpush3.bf16.msra.mxu1 %v7000_v20  ;;  %v1322_v17 = vrot.slane %v7950_v14, %v7970_v36  ;;  %v7027_v20 = vld [vmem:[%s9149_s4 + $0x138] sm:$0xff]  }
 0x6e1   :  { %6423 = vmatprep.subr.bf16.mxu0 %v7001_v22  ;;  %6445 = vmatprep.subr.bf16.mxu1 %v7002_v24  ;;  %v7028_v22 = vld [vmem:[%s9149_s4 + $0x1b8] sm:$0xff]  }
 0x6e4   :  { %6424 = vmatpush3.bf16.msra.mxu0 %v7003_v26  ;;  %6446 = vmatpush3.bf16.msra.mxu1 %v7004_v49 }
 0x6e5   :  { %6425 = vmatprep.subr.bf16.mxu0 %v7005_v28  ;;  %6447 = vmatprep.subr.bf16.mxu1 %v7006_v51  ;;  %v7029_v51 = vld [vmem:[%s9149_s4 + $0x170] sm:$0xff]  }
 0x6e8   :  { %6426 = vmatpush3.bf16.msra.mxu0 %v7007_v30  ;;  %6448 = vmatpush3.bf16.msra.mxu1 %v7008_v53  ;;  %v7030_v30 = vld [vmem:[%s9149_s4 + $0x1f0] sm:$0xff]  }
 0x6e9   :  { %6427 = vmatprep.subr.bf16.mxu0 %v7009_v54  ;;  %6449 = vmatprep.subr.bf16.mxu1 %v7010_v55 }
 0x6ec   :  { %6428 = vmatpush3.bf16.msra.mxu0 %v7011_v56  ;;  %6450 = vmatpush3.bf16.msra.mxu1 %v7012_v57  ;;  %v7031_v57 = vld [vmem:[%s9149_s4 + $0x130] sm:$0xff]  }
 0x6ed   :  { %6429 = vmatprep.subr.bf16.mxu0 %v7013_v58  ;;  %6451 = vmatprep.subr.bf16.mxu1 %v7014_v60  ;;  %v7032_v58 = vld [vmem:[%s9149_s4 + $0x1b0] sm:$0xff]  }
 0x6f0   :  { %6430 = vmatpush3.bf16.msra.mxu0 %v7015_v61  ;;  %6452 = vmatpush3.bf16.msra.mxu1 %v7016_v63  ;;  %v7033_v63 = vld [vmem:[%s9149_s4 + $0x168] sm:$0xff]  }
 0x6f1   :  { %6431 = vmatprep.subr.bf16.mxu0 %v7017_v0  ;;  %6453 = vmatprep.subr.bf16.mxu1 %v7018_v2  ;;  %v7034_v0 = vld [vmem:[%s9149_s4 + $0x1e8] sm:$0xff]  }
 0x6f4   :  { %6432 = vmatpush3.bf16.msra.mxu0 %v7019_v3  ;;  %6454 = vmatpush3.bf16.msra.mxu1 %v7020_v4 }
 0x6f5   :  { %6433 = vmatprep.subr.bf16.mxu0 %v7021_v5  ;;  %6455 = vmatprep.subr.bf16.mxu1 %v7022_v6 }
 0x6f8   :  { %6434 = vmatpush3.bf16.msra.mxu0 %v7023_v7  ;;  %6456 = vmatpush3.bf16.msra.mxu1 %v7024_v8  ;;  %v7035_v8 = vld [vmem:[%s9149_s4 + $0x128] sm:$0xff]  }
 0x6f9   :  { %6463 = vmatprep.subr.bf16.mxu0 %v7025_v9  ;;  %6485 = vmatprep.subr.bf16.mxu1 %v7026_v10  ;;  %v7036_v9 = vld [vmem:[%s9149_s4 + $0x1a8] sm:$0xff]  }
 0x783   :  { %v1568_v25 = vpop.f32.mrf.mxu0  ;;  %v1609_v27 = vpop.f32.mrf.mxu1 }
 0x784   :  { %v1569_v52 = vadd.f32 %v1568_v25, %v1294_v18  ;;  %v1610_v29 = vadd.f32 %v1609_v27, %v1302_v19  ;;  %v7037_v19 = vld [vmem:[%s9149_s4 + $0x160] sm:$0xff]   ;;  %v8021_v27 = vsub.s32 6, %v7536_v44 }
 0x785   :  { %v1570_v31 = vpop.f32.mrf.mxu0  ;;  %v1611_v32 = vpop.f32.mrf.mxu1 }
 0x786   :  { %v1571_v33 = vadd.f32 %v1570_v31, %v1298_v21  ;;  %v1612_v34 = vadd.f32 %v1611_v32, %v1306_v23  ;;  %v1862_v37 = vmax.f32 %v1569_v52, 0.0  ;;  %v1864_v38 = vmax.f32 %v1610_v29, 0.0  ;;  %v7038_v21 = vld [vmem:[%s9149_s4 + $0x1e0] sm:$0xff]   ;;  %v8032_v31 = vld [vmem:[%s9151_s6 + $0x10] ss:$2 sm:$0xff] }
 0x787   :  { %v1572_v39 = vpop.f32.mrf.mxu0  ;;  %v1613_v40 = vpop.f32.mrf.mxu1  ;;  %v7039_v52 = vld [vmem:[%s9149_s4 + $0x120] sm:$0xff]  }
 0x788   :  { %v1863_v41 = vmax.f32 %v1571_v33, 0.0  ;;  %v1865_v42 = vmax.f32 %v1612_v34, 0.0  ;;  %v1878_v24 = vpack.c.bf16 %v1862_v37, %v1862_v37  ;;  %v1880_v26 = vpack.c.bf16 %v1864_v38, %v1864_v38  ;;  %v7040_v29 = vld [vmem:[%s9149_s4 + $0x1a0] sm:$0xff]   ;;  %v7041_v34 = vld [vmem:[%s9149_s4 + $0x158] sm:$0xff]  }
 0x789   :  { %v1573_v43 = vpop.f32.mrf.mxu0  ;;  %v1614_v45 = vpop.f32.mrf.mxu1  ;;  %v7042_v37 = vld [vmem:[%s9149_s4 + $0x1d8] sm:$0xff]   ;;  %v1350_v38 = vrot.slane %v8032_v31, %v8021_v27 }
 0x78a   :  { %v1879_v46 = vpack.c.bf16 %v1863_v41, %v1863_v41  ;;  %v1881_v48 = vpack.c.bf16 %v1865_v42, %v1865_v42  ;;  %v7043_v41 = vld [vmem:[%s9149_s4 + $0x118] sm:$0xff]   ;;  %v8049_v43 = vsub.s32 4, %v7536_v44  ;;  %v7047_v44 = vld [vmem:[%s9149_s4 + $0x110] sm:$0xff]  }
 0x78b   :  { %v7982_v49 = vpop.f32.mrf.mxu0  ;;  %v7984_v28 = vpop.f32.mrf.mxu1  ;;  %v7044_v42 = vld [vmem:[%s9149_s4 + $0x198] sm:$0xff]  }
 0x78c   :  { %2699 = vmatprep.mubr.bf16.mxu0 %v1879_v46  ;;  %2739 = vmatprep.mubr.bf16.mxu1 %v1881_v48  ;;  %v7045_v48 = vld [vmem:[%s9149_s4 + $0x150] sm:$0xff]  }
 0x78d   :  { %v1652_v53 = vpop.f32.mrf.mxu0  ;;  %v1693_v54 = vpop.f32.mrf.mxu1  ;;  %2700 = vmatmul.mubr.bf16.vlgmr.msra.gmra.mxu0 %v1878_v24  ;;  %2740 = vmatmul.mubr.bf16.vlgmr.msra.gmra.mxu1 %v1880_v26  ;;  %v7048_v24 = vld [vmem:[%s9149_s4 + $0x190] sm:$0xff]   ;;  %v1310_v26 = vrot.slane %v7950_v14, %v8049_v43 }
 0x78e   :  { %v1653_v55 = vadd.f32 %v1652_v53, %v1314_v12  ;;  %v1694_v56 = vadd.f32 %v1693_v54, %v1322_v17  ;;  %6464 = vmatpush3.bf16.msra.mxu0 %v7027_v20  ;;  %6486 = vmatpush3.bf16.msra.mxu1 %v7028_v22  ;;  %v7046_v12 = vld [vmem:[%s9149_s4 + $0x1d0] sm:$0xff]   ;;  %v7049_v54 = vld [vmem:[%s9149_s4 + $0x148] sm:$0xff]  }
 0x78f   :  { %v1654_v60 = vpop.f32.mrf.mxu0  ;;  %v1695_v61 = vpop.f32.mrf.mxu1  ;;  %6465 = vmatprep.subr.bf16.mxu0 %v7029_v51  ;;  %6487 = vmatprep.subr.bf16.mxu1 %v7030_v30  ;;  %v1318_v51 = vrot.slane %v7950_v14, %v8021_v27 }
 0x790   :  { %v1867_v2 = vmax.f32 %v1653_v55, 0.0  ;;  %v1869_v3 = vmax.f32 %v1694_v56, 0.0  ;;  %v7050_v55 = vld [vmem:[%s9149_s4 + $0x1c8] sm:$0xff]   ;;  %v1330_v56 = vrot.slane %v8032_v31, %v7953_v15 }
 0x791   :  { %v1655_v4 = vpop.f32.mrf.mxu0  ;;  %v1696_v5 = vpop.f32.mrf.mxu1  ;;  %v7051_v60 = vld [vmem:[%s9149_s4 + $0x108] sm:$0xff]  }
 0x792   :  { %v1883_v6 = vpack.c.bf16 %v1867_v2, %v1867_v2  ;;  %v1885_v7 = vpack.c.bf16 %v1869_v3, %v1869_v3  ;;  %6466 = vmatpush3.bf16.msra.mxu0 %v7031_v57  ;;  %6488 = vmatpush3.bf16.msra.mxu1 %v7032_v58  ;;  %v1338_v57 = vrot.slane %v8032_v31, %v7956_v16  ;;  %v7052_v61 = vld [vmem:[%s9149_s4 + $0x188] sm:$0xff]   ;;  %v7053_v2 = vld [vmem:[%s9149_s4 + $0x140] sm:$0xff]  }
 0x793   :  { %v8010_v10 = vpop.f32.mrf.mxu0  ;;  %v8012_v18 = vpop.f32.mrf.mxu1  ;;  %6467 = vmatprep.subr.bf16.mxu0 %v7033_v63  ;;  %6489 = vmatprep.subr.bf16.mxu1 %v7034_v0  ;;  %v1651_v63 = vadd.f32 %v7982_v49, %v1310_v26  ;;  %v1692_v0 = vadd.f32 %v7984_v28, %v1318_v51  ;;  %v7054_v3 = vld [vmem:[%s9149_s4 + $0x1c0] sm:$0xff]   ;;  %v7073_v26 = vld [vmem:[%s9149_s4 + $0x258] sm:$0xff]  }
 0x794   :  { %2779 = vmatprep.mubr.bf16.mxu0 %v1883_v6  ;;  %2819 = vmatprep.mubr.bf16.mxu1 %v1885_v7  ;;  %v7055_v49 = vld [vmem:[%s9149_s4 + $0x100] sm:$0xff]   ;;  %v7074_v51 = vld [vmem:[%s9149_s4 + $0x2d8] sm:$0xff]  }
 0x795   :  { %v1734_v23 = vpop.f32.mrf.mxu0  ;;  %v1775_v25 = vpop.f32.mrf.mxu1  ;;  %v7056_v28 = vld [vmem:[%s9149_s4 + $0x180] sm:$0xff]   ;;  %v1866_v6 = vmax.f32 %v1651_v63, 0.0  ;;  %v1868_v7 = vmax.f32 %v1692_v0, 0.0  ;;  %v1346_v63 = vrot.slane %v8032_v31, %v7967_v35  ;;  %v1354_v0 = vrot.slane %v8032_v31, %v7970_v36 }
 0x796   :  { %6468 = vmatpush3.bf16.msra.mxu0 %v7035_v8  ;;  %6490 = vmatpush3.bf16.msra.mxu1 %v7036_v9  ;;  %v1735_v4 = vadd.f32 %v1734_v23, %v1330_v56  ;;  %v1776_v5 = vadd.f32 %v1775_v25, %v1338_v57  ;;  %v7057_v8 = vld [vmem:[%s9149_s4 + $0x278] sm:$0xff]   ;;  %v7079_v56 = vld [vmem:[%s9149_s4 + $0x210] sm:$0xff]   ;;  %v1326_v57 = vrot.slane %v8032_v31, %v7942_v11 }
 0x797   :  { %v1736_v32 = vpop.f32.mrf.mxu0  ;;  %v1777_v33 = vpop.f32.mrf.mxu1  ;;  %6469 = vmatprep.subr.bf16.mxu0 %v7037_v19  ;;  %6491 = vmatprep.subr.bf16.mxu1 %v7038_v21  ;;  %v7058_v9 = vld [vmem:[%s9149_s4 + $0x2f8] sm:$0xff]   ;;  %v1882_v25 = vpack.c.bf16 %v1866_v6, %v1866_v6 }
 0x798   :  { %v1871_v19 = vmax.f32 %v1735_v4, 0.0  ;;  %v1873_v21 = vmax.f32 %v1776_v5, 0.0  ;;  %v7059_v23 = vld [vmem:[%s9149_s4 + $0x238] sm:$0xff]   ;;  %v7061_v33 = vld [vmem:[%s9149_s4 + $0x270] sm:$0xff]   ;;  %v7084_v4 = vld [vmem:[%s9149_s4 + $0x288] sm:$0xff]  }
 0x799   :  { %v1737_v39 = vpop.f32.mrf.mxu0  ;;  %v1778_v40 = vpop.f32.mrf.mxu1  ;;  %v7085_v5 = vld [vmem:[%s9149_s4 + $0x240] sm:$0xff]  }
 0x79a   :  { %6470 = vmatpush3.bf16.msra.mxu0 %v7039_v52  ;;  %6492 = vmatpush3.bf16.msra.mxu1 %v7040_v29  ;;  %v1884_v52 = vpack.c.bf16 %v1868_v7, %v1868_v7  ;;  %v7060_v29 = vld [vmem:[%s9149_s4 + $0x2b8] sm:$0xff]   ;;  %v1887_v32 = vpack.c.bf16 %v1871_v19, %v1871_v19  ;;  %v7064_v39 = vld [vmem:[%s9149_s4 + $0x2b0] sm:$0xff]   ;;  %v7065_v40 = vld [vmem:[%s9149_s4 + $0x268] sm:$0xff]  }
 0x79b   :  { %v8051_v45 = vpop.f32.mrf.mxu0  ;;  %v1855_v46 = vpop.f32.mrf.mxu1  ;;  %6471 = vmatprep.subr.bf16.mxu0 %v7041_v34  ;;  %6493 = vmatprep.subr.bf16.mxu1 %v7042_v37  ;;  %v7062_v34 = vld [vmem:[%s9149_s4 + $0x2f0] sm:$0xff]   ;;  %v1889_v37 = vpack.c.bf16 %v1873_v21, %v1873_v21  ;;  %v7087_v7 = vld [vmem:[%s9149_s4 + $0x200] sm:$0xff]  }
 0x79c   :  { %v8059_v17 = vadd.f32 %v1855_v46, %v1350_v38  ;;  %v7063_v38 = vld [vmem:[%s9149_s4 + $0x230] sm:$0xff]   ;;  %v7068_v46 = vld [vmem:[%s9149_s4 + $0x2a8] sm:$0xff]  }
 0x79d   :  { %v8061_v20 = vpop.f32.mrf.mxu0  ;;  %v8063_v22 = vpop.f32.mrf.mxu1 }
 0x79e   :  { %6472 = vmatpush3.bf16.msra.mxu0 %v7043_v41  ;;  %6494 = vmatpush3.bf16.msra.mxu1 %v7044_v42  ;;  %v7066_v41 = vld [vmem:[%s9149_s4 + $0x2e8] sm:$0xff]   ;;  %v1817_v6 = vadd.f32 %v8061_v20, %v1346_v63  ;;  %v7090_v20 = vld [vmem:[%s9149_s4 + $0x3f8] sm:$0xff]  }
 0x79f   :  { %v1818_v30 = vpop.f32.mrf.mxu0  ;;  %v1859_v53 = vpop.f32.mrf.mxu1  ;;  %6473 = vmatprep.subr.bf16.mxu0 %v7045_v48  ;;  %6495 = vmatprep.subr.bf16.mxu1 %v7046_v12  ;;  %v7067_v42 = vld [vmem:[%s9149_s4 + $0x228] sm:$0xff]   ;;  %v7069_v48 = vld [vmem:[%s9149_s4 + $0x260] sm:$0xff]  }
 0x7a0   :  { %v7070_v12 = vld [vmem:[%s9149_s4 + $0x2e0] sm:$0xff]   ;;  %v7075_v30 = vld [vmem:[%s9149_s4 + $0x218] sm:$0xff]   ;;  %v7116_v63 = vld [vmem:[%s9149_s4 + $0x388] sm:$0xff]  }
 0x7a1   :  { %v1819_v58 = vpop.f32.mrf.mxu0  ;;  %v1860_v14 = vpop.f32.mrf.mxu1  ;;  %v7076_v53 = vld [vmem:[%s9149_s4 + $0x298] sm:$0xff]  }
 0x7a2   :  { %6474 = vmatpush3.bf16.msra.mxu0 %v7047_v44  ;;  %6496 = vmatpush3.bf16.msra.mxu1 %v7048_v24  ;;  %v7071_v44 = vld [vmem:[%s9149_s4 + $0x220] sm:$0xff]   ;;  %v7080_v58 = vld [vmem:[%s9149_s4 + $0x290] sm:$0xff]   ;;  %v7081_v14 = vld [vmem:[%s9149_s4 + $0x248] sm:$0xff]  }
 0x7a3   :  { %6475 = vmatprep.subr.bf16.mxu0 %v7049_v54  ;;  %6497 = vmatprep.subr.bf16.mxu1 %v7050_v55  ;;  %v7072_v24 = vld [vmem:[%s9149_s4 + $0x2a0] sm:$0xff]   ;;  %v7077_v54 = vld [vmem:[%s9149_s4 + $0x250] sm:$0xff]  }
 0x7a4   :  { %v7078_v55 = vld [vmem:[%s9149_s4 + $0x2d0] sm:$0xff]  }
 0x7a6   :  { %6476 = vmatpush3.bf16.msra.mxu0 %v7051_v60  ;;  %6498 = vmatpush3.bf16.msra.mxu1 %v7052_v61  ;;  %v1334_v60 = vrot.slane %v8032_v31, %v7945_v13  ;;  %v7082_v61 = vld [vmem:[%s9149_s4 + $0x2c8] sm:$0xff]  }
 0x7a7   :  { %6477 = vmatprep.subr.bf16.mxu0 %v7053_v2  ;;  %6499 = vmatprep.subr.bf16.mxu1 %v7054_v3  ;;  %v7083_v2 = vld [vmem:[%s9149_s4 + $0x208] sm:$0xff]   ;;  %v1733_v3 = vadd.f32 %v8010_v10, %v1326_v57  ;;  %v1858_v10 = vadd.f32 %v8063_v22, %v1354_v0  ;;  %v1875_v22 = vmax.f32 %v1817_v6, 0.0  ;;  %v1342_v57 = vrot.slane %v8032_v31, %v8049_v43  ;;  %v7117_v0 = vld [vmem:[%s9149_s4 + $0x340] sm:$0xff]  }
 0x7a8   :  { %v7115_v31 = vld [vmem:[%s9149_s4 + $0x308] sm:$0xff]  }
 0x7a9   :  { %v1877_v21 = vmax.f32 %v1858_v10, 0.0 }
 0x7aa   :  { %6478 = vmatpush3.bf16.msra.mxu0 %v7055_v49  ;;  %6500 = vmatpush3.bf16.msra.mxu1 %v7056_v28  ;;  %v1774_v49 = vadd.f32 %v8012_v18, %v1334_v60  ;;  %v7086_v28 = vld [vmem:[%s9149_s4 + $0x2c0] sm:$0xff]   ;;  %v7114_v60 = vld [vmem:[%s9149_s4 + $0x3c8] sm:$0xff]  }
 0x7ab   :  { %6507 = vmatprep.subr.bf16.mxu0 %v7057_v8  ;;  %6529 = vmatprep.subr.bf16.mxu1 %v7058_v9  ;;  %v1870_v8 = vmax.f32 %v1733_v3, 0.0  ;;  %v7088_v18 = vld [vmem:[%s9149_s4 + $0x280] sm:$0xff]   ;;  %v7089_v9 = vld [vmem:[%s9149_s4 + $0x378] sm:$0xff]  }
 0x7ac   :  { %v1872_v19 = vmax.f32 %v1774_v49, 0.0 }
 0x7ad   :  { %2780 = vmatmul.mubr.bf16.vlgmr.msra.gmra.mxu0 %v1882_v25  ;;  %2820 = vmatmul.mubr.bf16.vlgmr.msra.gmra.mxu1 %v1884_v52  ;;  %v1886_v25 = vpack.c.bf16 %v1870_v8, %v1870_v8  ;;  %v7092_v52 = vld [vmem:[%s9149_s4 + $0x3b8] sm:$0xff]  }
 0x7ae   :  { %6508 = vmatpush3.bf16.msra.mxu0 %v7059_v23  ;;  %2859 = vmatprep.mubr.bf16.mxu0 %v1887_v32  ;;  %v7091_v23 = vld [vmem:[%s9149_s4 + $0x338] sm:$0xff]   ;;  %v7093_v32 = vld [vmem:[%s9149_s4 + $0x370] sm:$0xff]  }
 0x7af   :  { %6530 = vmatpush3.bf16.msra.mxu1 %v7060_v29  ;;  %2899 = vmatprep.mubr.bf16.mxu1 %v1889_v37  ;;  %v1888_v29 = vpack.c.bf16 %v1872_v19, %v1872_v19  ;;  %v1893_v37 = vpack.c.bf16 %v1877_v21, %v1877_v21 }
 0x7b0   :  { %6509 = vmatprep.subr.bf16.mxu0 %v7061_v33  ;;  %6531 = vmatprep.subr.bf16.mxu1 %v7062_v34  ;;  %v1891_v33 = vpack.c.bf16 %v1875_v22, %v1875_v22  ;;  %v7094_v34 = vld [vmem:[%s9149_s4 + $0x3f0] sm:$0xff]  }
 0x7b2   :  { %6510 = vmatpush3.bf16.msra.mxu0 %v7063_v38  ;;  %v7095_v38 = vld [vmem:[%s9149_s4 + $0x330] sm:$0xff]  }
 0x7b3   :  { %6532 = vmatpush3.bf16.msra.mxu1 %v7064_v39  ;;  %6511 = vmatprep.subr.bf16.mxu0 %v7065_v40  ;;  %v7096_v39 = vld [vmem:[%s9149_s4 + $0x3b0] sm:$0xff]   ;;  %v7097_v40 = vld [vmem:[%s9149_s4 + $0x368] sm:$0xff]  }
 0x7b4   :  { %6533 = vmatprep.subr.bf16.mxu1 %v7066_v41  ;;  %v7098_v41 = vld [vmem:[%s9149_s4 + $0x3e8] sm:$0xff]  }
 0x7b6   :  { %6512 = vmatpush3.bf16.msra.mxu0 %v7067_v42  ;;  %v7099_v42 = vld [vmem:[%s9149_s4 + $0x328] sm:$0xff]  }
 0x7b7   :  { %6534 = vmatpush3.bf16.msra.mxu1 %v7068_v46  ;;  %6513 = vmatprep.subr.bf16.mxu0 %v7069_v48  ;;  %v7100_v46 = vld [vmem:[%s9149_s4 + $0x3a8] sm:$0xff]   ;;  %v7101_v48 = vld [vmem:[%s9149_s4 + $0x360] sm:$0xff]  }
 0x7b8   :  { %6535 = vmatprep.subr.bf16.mxu1 %v7070_v12  ;;  %v7102_v12 = vld [vmem:[%s9149_s4 + $0x3e0] sm:$0xff]  }
 0x7ba   :  { %6514 = vmatpush3.bf16.msra.mxu0 %v7071_v44  ;;  %v7103_v44 = vld [vmem:[%s9149_s4 + $0x320] sm:$0xff]  }
 0x7bb   :  { %6536 = vmatpush3.bf16.msra.mxu1 %v7072_v24  ;;  %6515 = vmatprep.subr.bf16.mxu0 %v7073_v26  ;;  %v7104_v24 = vld [vmem:[%s9149_s4 + $0x3a0] sm:$0xff]   ;;  %v7105_v26 = vld [vmem:[%s9149_s4 + $0x358] sm:$0xff]  }
 0x7bc   :  { %6537 = vmatprep.subr.bf16.mxu1 %v7074_v51  ;;  %v7106_v51 = vld [vmem:[%s9149_s4 + $0x3d8] sm:$0xff]  }
 0x7be   :  { %6516 = vmatpush3.bf16.msra.mxu0 %v7075_v30  ;;  %v7107_v30 = vld [vmem:[%s9149_s4 + $0x318] sm:$0xff]  }
 0x7bf   :  { %6538 = vmatpush3.bf16.msra.mxu1 %v7076_v53  ;;  %6517 = vmatprep.subr.bf16.mxu0 %v7077_v54  ;;  %v7108_v53 = vld [vmem:[%s9149_s4 + $0x398] sm:$0xff]   ;;  %v7109_v54 = vld [vmem:[%s9149_s4 + $0x350] sm:$0xff]  }
 0x7c0   :  { %6539 = vmatprep.subr.bf16.mxu1 %v7078_v55  ;;  %v7110_v55 = vld [vmem:[%s9149_s4 + $0x3d0] sm:$0xff]  }
 0x7c2   :  { %6518 = vmatpush3.bf16.msra.mxu0 %v7079_v56  ;;  %v7111_v56 = vld [vmem:[%s9149_s4 + $0x310] sm:$0xff]  }
 0x7c3   :  { %6540 = vmatpush3.bf16.msra.mxu1 %v7080_v58  ;;  %6519 = vmatprep.subr.bf16.mxu0 %v7081_v14  ;;  %v7112_v58 = vld [vmem:[%s9149_s4 + $0x390] sm:$0xff]   ;;  %v7113_v14 = vld [vmem:[%s9149_s4 + $0x348] sm:$0xff]  }
 0x7c4   :  { %6541 = vmatprep.subr.bf16.mxu1 %v7082_v61  ;;  %v1815_v61 = vadd.f32 %v8051_v45, %v1342_v57  ;;  %v7119_v45 = vld [vmem:[%s9149_s4 + $0x300] sm:$0xff]  }
 0x7c6   :  { %6520 = vmatpush3.bf16.msra.mxu0 %v7083_v2  ;;  %v7118_v2 = vld [vmem:[%s9149_s4 + $0x3c0] sm:$0xff]   ;;  %v1874_v3 = vmax.f32 %v1815_v61, 0.0 }
 0x7c7   :  { %6542 = vmatpush3.bf16.msra.mxu1 %v7084_v4  ;;  %6521 = vmatprep.subr.bf16.mxu0 %v7085_v5  ;;  %v7120_v4 = vld [vmem:[%s9149_s4 + $0x380] sm:$0xff]   ;;  %v1876_v5 = vmax.f32 %v8059_v17, 0.0 }
 0x7c8   :  { %6543 = vmatprep.subr.bf16.mxu1 %v7086_v28  ;;  %v1890_v49 = vpack.c.bf16 %v1874_v3, %v1874_v3  ;;  %v6057_v17 = vld [vmem:[%s9150_s5 + $0x6] ss:$0 sm:$0xff] }
 0x7c9   :  { %v1892_v28 = vpack.c.bf16 %v1876_v5, %v1876_v5 }
 0x7ca   :  { %6522 = vmatpush3.bf16.msra.mxu0 %v7087_v7 }
 0x7cb   :  { %6544 = vmatpush3.bf16.msra.mxu1 %v7088_v18  ;;  %6551 = vmatprep.subr.bf16.mxu0 %v7089_v9 }
 0x7cc   :  { %6573 = vmatprep.subr.bf16.mxu1 %v7090_v20 }
 0x7cd   :  { %2860 = vmatmul.mubr.bf16.vlgmr.msra.gmra.mxu0 %v1886_v25 }
 0x7ce   :  { %2900 = vmatmul.mubr.bf16.vlgmr.msra.gmra.mxu1 %v1888_v29  ;;  %6552 = vmatpush3.bf16.msra.mxu0 %v7091_v23 }
 0x7cf   :  { %2939 = vmatprep.mubr.bf16.mxu0 %v1891_v33  ;;  %6574 = vmatpush3.bf16.msra.mxu1 %v7092_v52 }
 0x7d0   :  { %2979 = vmatprep.mubr.bf16.mxu1 %v1893_v37  ;;  %6553 = vmatprep.subr.bf16.mxu0 %v7093_v32 }
 0x7d1   :  { %6575 = vmatprep.subr.bf16.mxu1 %v7094_v34 }
 0x7d2   :  { %6554 = vmatpush3.bf16.msra.mxu0 %v7095_v38 }
 0x7d3   :  { %6576 = vmatpush3.bf16.msra.mxu1 %v7096_v39  ;;  %6555 = vmatprep.subr.bf16.mxu0 %v7097_v40 }
 0x7d4   :  { %6577 = vmatprep.subr.bf16.mxu1 %v7098_v41 }
 0x7d6   :  { %6556 = vmatpush3.bf16.msra.mxu0 %v7099_v42 }
 0x7d7   :  { %6578 = vmatpush3.bf16.msra.mxu1 %v7100_v46  ;;  %6557 = vmatprep.subr.bf16.mxu0 %v7101_v48 }
 0x7d8   :  { %6579 = vmatprep.subr.bf16.mxu1 %v7102_v12 }
 0x7da   :  { %6558 = vmatpush3.bf16.msra.mxu0 %v7103_v44 }
 0x7db   :  { %6580 = vmatpush3.bf16.msra.mxu1 %v7104_v24  ;;  %6559 = vmatprep.subr.bf16.mxu0 %v7105_v26 }
 0x7dc   :  { %6581 = vmatprep.subr.bf16.mxu1 %v7106_v51 }
 0x7de   :  { %6560 = vmatpush3.bf16.msra.mxu0 %v7107_v30 }
 0x7df   :  { %6582 = vmatpush3.bf16.msra.mxu1 %v7108_v53  ;;  %6561 = vmatprep.subr.bf16.mxu0 %v7109_v54 }
 0x7e0   :  { %6583 = vmatprep.subr.bf16.mxu1 %v7110_v55 }
 0x7e2   :  { %6562 = vmatpush3.bf16.msra.mxu0 %v7111_v56 }
 0x7e3   :  { %6584 = vmatpush3.bf16.msra.mxu1 %v7112_v58  ;;  %6563 = vmatprep.subr.bf16.mxu0 %v7113_v14 }
 0x7e4   :  { %6585 = vmatprep.subr.bf16.mxu1 %v7114_v60 }
 0x7e6   :  { %6564 = vmatpush3.bf16.msra.mxu0 %v7115_v31 }
 0x7e7   :  { %6586 = vmatpush3.bf16.msra.mxu1 %v7116_v63  ;;  %6565 = vmatprep.subr.bf16.mxu0 %v7117_v0 }
 0x7e8   :  { %6587 = vmatprep.subr.bf16.mxu1 %v7118_v2 }
 0x7ea   :  { %6566 = vmatpush3.bf16.msra.mxu0 %v7119_v45 }
 0x7eb   :  { %6588 = vmatpush3.bf16.msra.mxu1 %v7120_v4  ;;  %6891 = vmatprep.subr.mxu0 %v7352_v1 }
 0x7ec   :  { %6902 = vmatprep.subr.mxu1 %v7352_v1 }
 0x7ed   :  { %2940 = vmatmul.mubr.bf16.vlgmr.msra.gmra.mxu0 %v1890_v49 }
 0x7ee   :  { %2980 = vmatmul.mubr.bf16.vlgmr.msra.gmra.mxu1 %v1892_v28  ;;  %6899 = vmatprep.mubr.msk.f32.mxu0 %vm7353_vm0, %v7352_v1 }
 0x7ef   :  { %6910 = vmatprep.mubr.msk.f32.mxu1 %vm7353_vm0, %v7352_v1 }
 0x84d   :  { %v6435_v6 = vpop.f32.mrf.mxu0  ;;  %v6457_v10 = vpop.f32.mrf.mxu1 }
 0x84f   :  { %v6436_v7 = vpop.f32.mrf.mxu0  ;;  %v6458_v8 = vpop.f32.mrf.mxu1 }
 0x850   :  { %v6437_v18 = vadd.f32 %v6436_v7, %v6435_v6  ;;  %v6459_v9 = vadd.f32 %v6458_v8, %v6457_v10 }
 0x851   :  { %v6438_v19 = vpop.f32.mrf.mxu0  ;;  %v6460_v20 = vpop.f32.mrf.mxu1 }
 0x852   :  { %v2702_v22 = vadd.f32 %v6437_v18, %v6057_v17  ;;  %v3016_v18 = vld [vmem:[%s9147_s2 + $0x98] sm:$0xff]  ;;  %v3097_v19 = vld [vmem:[%s9147_s2 + $0xb0] sm:$0xff]  ;;  %v3014_v20 = vld [vmem:[%s9147_s2 + $0x88] sm:$0xff] }
 0x853   :  { %v6439_v21 = vpop.f32.mrf.mxu0  ;;  %v6461_v23 = vpop.f32.mrf.mxu1  ;;  %6892 = vmatpush3.msra.mxu0 %v3016_v18 }
 0x854   :  { %v2742_v25 = vadd.f32 %v6459_v9, %v2702_v22  ;;  %v3098_v9 = vld [vmem:[%s9147_s2 + $0xb8] sm:$0xff]  ;;  %6893 = vmatprep.subr.mxu0 %v7352_v1  ;;  %v3096_v22 = vld [vmem:[%s9147_s2 + $0xa8] sm:$0xff]  ;;  %v3013_v21 = vld [vmem:[%s9147_s2 + $0x80] sm:$0xff] }
 0x855   :  { %6903 = vmatpush3.msra.mxu1 %v3098_v9  ;;  %v3095_v23 = vld [vmem:[%s9147_s2 + $0xa0] sm:$0xff] }
 0x856   :  { %6904 = vmatprep.subr.mxu1 %v7352_v1 }
 0x857   :  { %6905 = vmatpush3.msra.mxu1 %v3097_v19 }
 0x858   :  { %6906 = vmatprep.subr.mxu1 %v7352_v1 }
 0x859   :  { %6907 = vmatpush3.msra.mxu1 %v3096_v22 }
 0x85a   :  { %6908 = vmatprep.subr.mxu1 %v7352_v1 }
 0x85b   :  { %6909 = vmatpush3.msra.mxu1 %v3095_v23 }
 0x85c   :  { %6924 = vmatprep.subr.mxu1 %v7352_v1 }
 0x86d   :  { %v6479_v52 = vpop.f32.mrf.mxu0  ;;  %v6501_v29 = vpop.f32.mrf.mxu1 }
 0x86f   :  { %v6480_v32 = vpop.f32.mrf.mxu0  ;;  %v6502_v33 = vpop.f32.mrf.mxu1 }
 0x870   :  { %v6481_v26 = vadd.f32 %v6480_v32, %v6479_v52  ;;  %v6503_v30 = vadd.f32 %v6502_v33, %v6501_v29  ;;  %v6186_v33 = vld [vmem:[%s9150_s5 + $0x7] ss:$0 sm:$0xff] }
 0x871   :  { %v6482_v34 = vpop.f32.mrf.mxu0  ;;  %v6504_v37 = vpop.f32.mrf.mxu1 }
 0x872   :  { %v2782_v51 = vadd.f32 %v6481_v26, %v2742_v25  ;;  %v6187_v37 = vld [vmem:[%s9150_s5 + $0x8] ss:$0 sm:$0xff] }
 0x873   :  { %v6483_v38 = vpop.f32.mrf.mxu0  ;;  %v6505_v39 = vpop.f32.mrf.mxu1 }
 0x874   :  { %v2822_v54 = vadd.f32 %v6503_v30, %v2782_v51  ;;  %v7322_v30 = vld [vmem:[%s9146_s1 + $0x38] sm:$0xff] }
 0x88d   :  { %v6523_v40 = vpop.f32.mrf.mxu0 }
 0x88e   :  { %v6545_v41 = vpop.f32.mrf.mxu1 }
 0x88f   :  { %v6524_v42 = vpop.f32.mrf.mxu0 }
 0x890   :  { %v6546_v46 = vpop.f32.mrf.mxu1  ;;  %v6525_v53 = vadd.f32 %v6524_v42, %v6523_v40  ;;  %v3177_v40 = vld [vmem:[%s9147_s2 + $0xd8] sm:$0xff]  ;;  %v3175_v42 = vld [vmem:[%s9147_s2 + $0xc8] sm:$0xff] }
 0x891   :  { %v6526_v48 = vpop.f32.mrf.mxu0  ;;  %v6547_v57 = vadd.f32 %v6546_v46, %v6545_v41  ;;  %v3176_v41 = vld [vmem:[%s9147_s2 + $0xd0] sm:$0xff]  ;;  %v3174_v46 = vld [vmem:[%s9147_s2 + $0xc0] sm:$0xff] }
 0x892   :  { %v6548_v12 = vpop.f32.mrf.mxu1  ;;  %v2862_v55 = vadd.f32 %v6525_v53, %v2822_v54  ;;  %v6190_v48 = vld [vmem:[%s9150_s5 + $0xa] ss:$0 sm:$0xff]  ;;  %v6192_v54 = vld [vmem:[%s9150_s5 + $0xb] ss:$0 sm:$0xff] }
 0x893   :  { %v6527_v44 = vpop.f32.mrf.mxu0 }
 0x894   :  { %v6549_v24 = vpop.f32.mrf.mxu1  ;;  %v2902_v60 = vadd.f32 %v6547_v57, %v2862_v55  ;;  %v7323_v55 = vld [vmem:[%s9146_s1 + $0x30] sm:$0xff] }
 0x8ad   :  { %v6567_v56 = vpop.f32.mrf.mxu0 }
 0x8ae   :  { %v6589_v58 = vpop.f32.mrf.mxu1 }
 0x8af   :  { %v6568_v14 = vpop.f32.mrf.mxu0 }
 0x8b0   :  { %v6569_v31 = vadd.f32 %v6568_v14, %v6567_v56  ;;  %v6590_v61 = vpop.f32.mrf.mxu1 }
 0x8b1   :  { %v6570_v63 = vpop.f32.mrf.mxu0  ;;  %v6591_v2 = vadd.f32 %v6590_v61, %v6589_v58 }
 0x8b2   :  { %v2942_v0 = vadd.f32 %v6569_v31, %v2902_v60  ;;  %v6592_v45 = vpop.f32.mrf.mxu1  ;;  %v7324_v31 = vld [vmem:[%s9146_s1 + $0x28] sm:$0xff] }
 0x8b3   :  { %v6571_v3 = vpop.f32.mrf.mxu0 }
 0x8b4   :  { %v2982_v4 = vadd.f32 %v6591_v2, %v2942_v0  ;;  %v6593_v5 = vpop.f32.mrf.mxu1  ;;  %v7325_v2 = vld [vmem:[%s9146_s1 + $0x20] sm:$0xff] }
 0x8b6   :  { %v2987_v49 = vadd.f32 %v2982_v4, %v7763_v59  ;;  %v3015_v59 = vld [vmem:[%s9147_s2 + $0x90] sm:$0xff]  ;;  %v7326_v4 = vld [vmem:[%s9146_s1 + $0x18] sm:$0xff] }
 0x8b7   :  { %6894 = vmatpush3.msra.mxu0 %v3015_v59  ;;  %v6188_v59 = vld [vmem:[%s9150_s5 + $0x9] ss:$0 sm:$0xff] }
 0x8b8   :  { %v2990_v28 = vsel %vm46_vm1, %v2987_v49, 0.0  ;;  %6895 = vmatprep.subr.mxu0 %v7352_v1 }
 0x8b9   :  { %2991 = vadd.xlane.f32.xlu0 %v2990_v28  ;;  %6896 = vmatpush3.msra.mxu0 %v3014_v20  ;;  %v7327_v28 = vld [vmem:[%s9146_s1 + $0x10] sm:$0xff] }
 0x8ba   :  { %6897 = vmatprep.subr.mxu0 %v7352_v1 }
 0x8bb   :  { %6898 = vmatpush3.msra.mxu0 %v3013_v21 }
 0x8bc   :  { %6913 = vmatprep.subr.mxu0 %v7352_v1 }
 0x942   :  { %v2992_v6 = vpop.xlane.xlu0 %2991 }
 0x943   :  { %v2993_v10 = vmul.f32 0.03125, %v2992_v6 }
 0x945   :  { %v2994_v17 = vsub.f32 %v2987_v49, %v2993_v10  ;;  %v7328_v10 = vld [vmem:[%s9146_s1 + $0x8] sm:$0xff] }
 0x947   :  { %v2995_v7 = vmul.f32 %v2994_v17, %v2994_v17 }
 0x949   :  { %v2996_v8 = vsel %vm46_vm1, %v2995_v7, 0.0 }
 0x94a   :  { %2997 = vadd.xlane.f32.xlu0 %v2996_v8  ;;  %v7329_v8 = vld [vmem:[%s9146_s1] sm:$0xff] }
 0x9d3   :  { %v2998_v25 = vpop.xlane.xlu0 %2997 }
 0x9d4   :  { %v2999_v52 = vmul.f32 0.03125, %v2998_v25 }
 0x9d6   :  { %v3000_v29 = vadd.f32 1e-05, %v2999_v52 }
 0x9d8   :  { %7283 = vrsqrt.f32 %v3000_v29 }
 0x9e5   :  { %v7284_v32 = vpop.eup %7283 }
 0x9e6   :  { %v3002_v34 = vmul.f32 %v7284_v32, %v2994_v17 }
 0x9e8   :  { %v3007_v38 = vmul.f32 %v6186_v33, %v3002_v34 }
 0x9ea   :  { %v8363_v39 = vadd.f32 %v6187_v37, %v3007_v38 }
 0x9ec   :  { %6900 = vmatmul.mubr.msk.f32.vlgmr.msra.gmra.mxu0 %vm46_vm1, %v8363_v39  ;;  %6911 = vmatmul.mubr.msk.f32.vlgmr.msra.gmra.mxu1 %vm46_vm1, %v8363_v39 }
 0x9ed   :  { %6914 = vmatpush3.msra.mxu0 %v3177_v40  ;;  %6921 = vmatprep.mubr.msk.f32.mxu0 %vm7353_vm0, %v7352_v1 }
 0x9ee   :  { %6915 = vmatprep.subr.mxu0 %v7352_v1  ;;  %6940 = vmatprep.mubr.msk.f32.mxu1 %vm7353_vm0, %v7352_v1 }
 0x9ef   :  { %6916 = vmatpush3.msra.mxu0 %v3176_v41 }
 0x9f0   :  { %6917 = vmatprep.subr.mxu0 %v7352_v1 }
 0x9f1   :  { %6918 = vmatpush3.msra.mxu0 %v3175_v42 }
 0x9f2   :  { %6919 = vmatprep.subr.mxu0 %v7352_v1 }
 0x9f3   :  { %6920 = vmatpush3.msra.mxu0 %v3174_v46 }
 0x9f4   :  { %6922 = vmatmul.mubr.msk.f32.vlgmr.msra.gmra.mxu0 %vm46_vm1, %v8363_v39  ;;  %6943 = vmatprep.subr.mxu0 %v7352_v1 }
 0x9f5   :  { %6959 = vmatprep.mubr.msk.f32.mxu0 %vm7353_vm0, %v7352_v1 }
 0xaac   :  { %v8396_v12 = vpop.f32.mrf.mxu0  ;;  %v3170_v44 = vpop.f32.mrf.mxu1 }
 0xaad   :  { %v3171_v24 = vadd.f32 %v6190_v48, %v3170_v44  ;;  %v3092_v20 = vadd.f32 %v6188_v59, %v8396_v12 }
 0xaae   :  { %v6901_v26 = vpop.f32.mrf.mxu0  ;;  %v6912_v51 = vpop.f32.mrf.mxu1 }
 0xaaf   :  { %v3260_v53 = vmul.f32 %v7322_v30, %v3171_v24  ;;  %v3259_v56 = vmul.f32 %v7323_v55, %v3171_v24  ;;  %v3258_v61 = vmul.f32 %v7324_v31, %v3171_v24  ;;  %v3257_v45 = vmul.f32 %v7325_v2, %v3171_v24 }
 0xab0   :  { %v3256_v49 = vmul.f32 %v7326_v4, %v3171_v24  ;;  %v3255_v7 = vmul.f32 %v7327_v28, %v3171_v24  ;;  %v3254_v9 = vmul.f32 %v7328_v10, %v3171_v24  ;;  %v3253_v19 = vmul.f32 %v7329_v8, %v3171_v24 }
 0xab1   :  { %6925 = vmatpush3.xpose.msk.msra.mxu1 %vm46_vm1, %v3260_v53 }
 0xab2   :  { %6926 = vmatprep.subr.mxu1 %v7352_v1 }
 0xab4   :  { %v3249_v57 = vpop.f32.mrf.mxu0 }
 0xab5   :  { %v3250_v58 = vadd.f32 %v6192_v54, %v3249_v57  ;;  %6927 = vmatpush3.xpose.msk.msra.mxu1 %vm46_vm1, %v3259_v56 }
 0xab6   :  { %v6923_v14 = vpop.f32.mrf.mxu0  ;;  %6928 = vmatprep.subr.mxu1 %v7352_v1 }
 0xab7   :  { %v3268_v60 = vmul.f32 %v7322_v30, %v3250_v58  ;;  %v3267_v63 = vmul.f32 %v7323_v55, %v3250_v58  ;;  %v3266_v0 = vmul.f32 %v7324_v31, %v3250_v58  ;;  %v3265_v3 = vmul.f32 %v7325_v2, %v3250_v58 }
 0xab8   :  { %v3264_v5 = vmul.f32 %v7326_v4, %v3250_v58  ;;  %v3263_v6 = vmul.f32 %v7327_v28, %v3250_v58  ;;  %v3262_v17 = vmul.f32 %v7328_v10, %v3250_v58  ;;  %v3261_v18 = vmul.f32 %v7329_v8, %v3250_v58 }
 0xab9   :  { %6944 = vmatpush3.msra.mxu0 %v3268_v60  ;;  %6929 = vmatpush3.xpose.msk.msra.mxu1 %vm46_vm1, %v3258_v61 }
 0xaba   :  { %6945 = vmatprep.subr.mxu0 %v7352_v1  ;;  %6930 = vmatprep.subr.mxu1 %v7352_v1 }
 0xabb   :  { %6946 = vmatpush3.msra.mxu0 %v3267_v63 }
 0xabc   :  { %6947 = vmatprep.subr.mxu0 %v7352_v1 }
 0xabd   :  { %6948 = vmatpush3.msra.mxu0 %v3266_v0  ;;  %6931 = vmatpush3.xpose.msk.msra.mxu1 %vm46_vm1, %v3257_v45 }
 0xabe   :  { %6949 = vmatprep.subr.mxu0 %v7352_v1  ;;  %6932 = vmatprep.subr.mxu1 %v7352_v1 }
 0xabf   :  { %6950 = vmatpush3.msra.mxu0 %v3265_v3 }
 0xac0   :  { %6951 = vmatprep.subr.mxu0 %v7352_v1 }
 0xac1   :  { %6952 = vmatpush3.msra.mxu0 %v3264_v5  ;;  %6933 = vmatpush3.xpose.msk.msra.mxu1 %vm46_vm1, %v3256_v49 }
 0xac2   :  { %6953 = vmatprep.subr.mxu0 %v7352_v1  ;;  %6934 = vmatprep.subr.mxu1 %v7352_v1 }
 0xac3   :  { %6954 = vmatpush3.msra.mxu0 %v3263_v6 }
 0xac4   :  { %6955 = vmatprep.subr.mxu0 %v7352_v1 }
 0xac5   :  { %6956 = vmatpush3.msra.mxu0 %v3262_v17  ;;  %6935 = vmatpush3.xpose.msk.msra.mxu1 %vm46_vm1, %v3255_v7 }
 0xac6   :  { %6957 = vmatprep.subr.mxu0 %v7352_v1  ;;  %6936 = vmatprep.subr.mxu1 %v7352_v1 }
 0xac7   :  { %6958 = vmatpush3.msra.mxu0 %v3261_v18 }
 0xac8   :  { %6962 = vmatprep.subr.mxu0 %v7352_v1 }
 0xac9   :  { %6937 = vmatpush3.xpose.msk.msra.mxu1 %vm46_vm1, %v3254_v9 }
 0xaca   :  { %6938 = vmatprep.subr.mxu1 %v7352_v1 }
 0xacd   :  { %6939 = vmatpush3.xpose.msk.msra.mxu1 %vm46_vm1, %v3253_v19 }
 0xad0   :  { %6941 = vmatmul.mubr.msk.f32.vlgmr.msra.gmra.mxu1 %vm46_vm1, %v3092_v20 }
 0xad1   :  { %4575 = vmatprep.mubr.bf16.mxu1 %v7370_v47 }
 0xb90   :  { %v3362_v22 = vpop.f32.mrf.mxu1 }
 0xb91   :  { %3370 = vrot.lane.b32.xlu0 %v3362_v22, %s7357_s19  ;;  %3367 = vrot.lane.b32.xlu1 %v3362_v22, %s7355_s17 }
 0xb92   :  { %v6942_v21 = vpop.f32.mrf.mxu1 }
 0xb95   :  { %3379 = vrot.lane.b32.xlu0 %v3362_v22, %s7359_s21  ;;  %3373 = vrot.lane.b32.xlu1 %v3362_v22, %s7354_s16 }
 0xb99   :  { %3385 = vrot.lane.b32.xlu0 %v3362_v22, %s7360_s22  ;;  %3376 = vrot.lane.b32.xlu1 %v3362_v22, %s7356_s18 }
 0xb9d   :  { %3382 = vrot.lane.b32.xlu1 %v3362_v22, %s7358_s20 }
 0xc03   :  { %v3371_v23 = vpop.permute.xlu0 %3370  ;;  %v3368_v25 = vpop.permute.xlu1 %3367 }
 0xc04   :  { %v3388_v37 = vcombine.low %v3362_v22, %v3371_v23  ;;  %v3389_v24 = vcombine.high %v3362_v22, %v3371_v23 }
 0xc06   :  { %v3396_v46 = vrot.slane %v3388_v37, %v7539_v50  ;;  %v3403_v60 = vrot.slane %v3389_v24, %v7539_v50 }
 0xc07   :  { %v3380_v52 = vpop.permute.xlu0 %3379  ;;  %v3374_v29 = vpop.permute.xlu1 %3373 }
 0xc08   :  { %v3404_v32 = vcombine.low %v3368_v25, %v3374_v29  ;;  %v3405_v48 = vcombine.high %v3368_v25, %v3374_v29 }
 0xc0a   :  { %v3412_v38 = vrot.slane %v3404_v32, %v7539_v50  ;;  %v3419_v55 = vrot.slane %v3405_v48, %v7539_v50 }
 0xc0b   :  { %v3386_v33 = vpop.permute.xlu0 %3385  ;;  %v3377_v34 = vpop.permute.xlu1 %3376 }
 0xc0c   :  { %v3436_v40 = vcombine.low %v3380_v52, %v3386_v33  ;;  %v3437_v41 = vcombine.high %v3380_v52, %v3386_v33  ;;  %v3452_v26 = vcombine.low %v3396_v46, %v3412_v38  ;;  %v3453_v56 = vcombine.high %v3396_v46, %v3412_v38 }
 0xc0d   :  { %v3468_v0 = vcombine.low %v3403_v60, %v3419_v55  ;;  %v3469_v17 = vcombine.high %v3403_v60, %v3419_v55 }
 0xc0e   :  { %v3444_v51 = vrot.slane %v3436_v40, %v7539_v50  ;;  %v3451_v54 = vrot.slane %v3437_v41, %v7539_v50  ;;  %v3460_v31 = vrot.slane %v3452_v26, %v7544_v62  ;;  %v3467_v3 = vrot.slane %v3453_v56, %v7544_v62 }
 0xc0f   :  { %v3383_v42 = vpop.permute.xlu1 %3382  ;;  %v3476_v7 = vrot.slane %v3468_v0, %v7544_v62  ;;  %v3483_v20 = vrot.slane %v3469_v17, %v7544_v62 }
 0xc10   :  { %v3420_v12 = vcombine.low %v3377_v34, %v3383_v42  ;;  %v3421_v44 = vcombine.high %v3377_v34, %v3383_v42 }
 0xc12   :  { %v3428_v30 = vrot.slane %v3420_v12, %v7539_v50  ;;  %v3435_v53 = vrot.slane %v3421_v44, %v7539_v50 }
 0xc14   :  { %v3484_v57 = vcombine.low %v3428_v30, %v3444_v51  ;;  %v3485_v58 = vcombine.high %v3428_v30, %v3444_v51  ;;  %v3500_v14 = vcombine.low %v3435_v53, %v3451_v54  ;;  %v3501_v4 = vcombine.high %v3435_v53, %v3451_v54 }
 0xc16   :  { %v3492_v61 = vrot.slane %v3484_v57, %v7544_v62  ;;  %v3499_v63 = vrot.slane %v3485_v58, %v7544_v62  ;;  %v3508_v5 = vrot.slane %v3500_v14, %v7544_v62  ;;  %v3515_v8 = vrot.slane %v3501_v4, %v7544_v62 }
 0xc18   :  { %v3517_v2 = vcombine.high %v3460_v31, %v3492_v61  ;;  %v3516_v45 = vcombine.low %v3460_v31, %v3492_v61  ;;  %v3518_v6 = vcombine.low %v3467_v3, %v3499_v63  ;;  %v3519_v10 = vcombine.high %v3467_v3, %v3499_v63 }
 0xc19   :  { %v3520_v59 = vcombine.low %v3476_v7, %v3508_v5  ;;  %v3521_v19 = vcombine.high %v3476_v7, %v3508_v5  ;;  %v3522_v23 = vcombine.low %v3483_v20, %v3515_v8  ;;  %v3523_v25 = vcombine.high %v3483_v20, %v3515_v8 }
 0xc1a   :  { %v3527_v49 = vsel %vm549_vm2, %v3517_v2, -inf  ;;  %v3524_v28 = vsel %vm549_vm2, %v3516_v45, -inf  ;;  %v3530_v18 = vsel %vm549_vm2, %v3518_v6, -inf  ;;  %v3533_v9 = vsel %vm549_vm2, %v3519_v10, -inf }
 0xc1b   :  { %3528 = vmax.xlane.f32.xlu0 %v3527_v49  ;;  %3525 = vmax.xlane.f32.xlu1 %v3524_v28  ;;  %v3536_v22 = vsel %vm549_vm2, %v3520_v59, -inf  ;;  %v3539_v21 = vsel %vm549_vm2, %v3521_v19, -inf  ;;  %v3542_v52 = vsel %vm549_vm2, %v3522_v23, -inf  ;;  %v3545_v29 = vsel %vm549_vm2, %v3523_v25, -inf }
 0xc1f   :  { %3531 = vmax.xlane.f32.xlu0 %v3530_v18  ;;  %3534 = vmax.xlane.f32.xlu1 %v3533_v9 }
 0xc23   :  { %3537 = vmax.xlane.f32.xlu0 %v3536_v22  ;;  %3540 = vmax.xlane.f32.xlu1 %v3539_v21 }
 0xc27   :  { %3543 = vmax.xlane.f32.xlu0 %v3542_v52  ;;  %3546 = vmax.xlane.f32.xlu1 %v3545_v29 }
 0xca4   :  { %v3529_v32 = vpop.xlane.xlu0 %3528  ;;  %v3526_v33 = vpop.xlane.xlu1 %3525 }
 0xca5   :  { %v3549_v34 = vsub.f32 %v3517_v2, %v3529_v32  ;;  %v3548_v37 = vsub.f32 %v3516_v45, %v3526_v33 }
 0xca7   :  { %v3558_v38 = vmul.f32 1.442695, %v3549_v34  ;;  %v3556_v40 = vmul.f32 1.442695, %v3548_v37 }
 0xca8   :  { %v3532_v41 = vpop.xlane.xlu0 %3531  ;;  %v3535_v42 = vpop.xlane.xlu1 %3534 }
 0xca9   :  { %7285 = vpow2.f32 %v3558_v38  ;;  %v3550_v46 = vsub.f32 %v3518_v6, %v3532_v41  ;;  %v3551_v48 = vsub.f32 %v3519_v10, %v3535_v42 }
 0xcaa   :  { %7287 = vpow2.f32 %v3556_v40 }
 0xcab   :  { %v3560_v12 = vmul.f32 1.442695, %v3550_v46  ;;  %v3562_v44 = vmul.f32 1.442695, %v3551_v48 }
 0xcac   :  { %v3538_v24 = vpop.xlane.xlu0 %3537  ;;  %v3541_v26 = vpop.xlane.xlu1 %3540 }
 0xcad   :  { %7289 = vpow2.f32 %v3560_v12  ;;  %v3552_v51 = vsub.f32 %v3520_v59, %v3538_v24  ;;  %v3553_v30 = vsub.f32 %v3521_v19, %v3541_v26 }
 0xcae   :  { %7291 = vpow2.f32 %v3562_v44 }
 0xcaf   :  { %v3564_v53 = vmul.f32 1.442695, %v3552_v51  ;;  %v3566_v54 = vmul.f32 1.442695, %v3553_v30 }
 0xcb0   :  { %v3544_v55 = vpop.xlane.xlu0 %3543  ;;  %v3547_v56 = vpop.xlane.xlu1 %3546 }
 0xcb1   :  { %7293 = vpow2.f32 %v3564_v53  ;;  %v3554_v57 = vsub.f32 %v3522_v23, %v3544_v55  ;;  %v3555_v58 = vsub.f32 %v3523_v25, %v3547_v56 }
 0xcb2   :  { %7295 = vpow2.f32 %v3566_v54 }
 0xcb3   :  { %v3568_v14 = vmul.f32 1.442695, %v3554_v57  ;;  %v3570_v60 = vmul.f32 1.442695, %v3555_v58 }
 0xcb5   :  { %7297 = vpow2.f32 %v3568_v14 }
 0xcb6   :  { %v7286_v31 = vpop.eup %7285  ;;  %7299 = vpow2.f32 %v3570_v60 }
 0xcb7   :  { %v7288_v61 = vpop.eup %7287  ;;  %v3575_v63 = vsel %vm549_vm2, %v7286_v31, 0.0 }
 0xcb8   :  { %3576 = vadd.xlane.f32.xlu1 %v3575_v63  ;;  %v3572_v0 = vsel %vm549_vm2, %v7288_v61, 0.0 }
 0xcb9   :  { %3573 = vadd.xlane.f32.xlu0 %v3572_v0 }
 0xcba   :  { %v7290_v2 = vpop.eup %7289 }
 0xcbb   :  { %v7292_v45 = vpop.eup %7291  ;;  %v3578_v3 = vsel %vm549_vm2, %v7290_v2, 0.0 }
 0xcbc   :  { %v3581_v4 = vsel %vm549_vm2, %v7292_v45, 0.0 }
 0xcbd   :  { %3579 = vadd.xlane.f32.xlu0 %v3578_v3  ;;  %3582 = vadd.xlane.f32.xlu1 %v3581_v4 }
 0xcbe   :  { %v7294_v5 = vpop.eup %7293 }
 0xcbf   :  { %v7296_v49 = vpop.eup %7295  ;;  %v3584_v28 = vsel %vm549_vm2, %v7294_v5, 0.0 }
 0xcc0   :  { %v3587_v6 = vsel %vm549_vm2, %v7296_v49, 0.0 }
 0xcc1   :  { %3585 = vadd.xlane.f32.xlu0 %v3584_v28  ;;  %3588 = vadd.xlane.f32.xlu1 %v3587_v6 }
 0xcc2   :  { %v7298_v10 = vpop.eup %7297 }
 0xcc3   :  { %v7300_v17 = vpop.eup %7299  ;;  %v3590_v7 = vsel %vm549_vm2, %v7298_v10, 0.0 }
 0xcc4   :  { %v3593_v8 = vsel %vm549_vm2, %v7300_v17, 0.0 }
 0xcc5   :  { %3591 = vadd.xlane.f32.xlu0 %v3590_v7  ;;  %3594 = vadd.xlane.f32.xlu1 %v3593_v8 }
 0xd41   :  { %v3577_v18 = vpop.xlane.xlu1 %3576 }
 0xd42   :  { %v3574_v9 = vpop.xlane.xlu0 %3573  ;;  %7301 = vrcp.f32 %v3577_v18 }
 0xd43   :  { %7303 = vrcp.f32 %v3574_v9 }
 0xd46   :  { %v3580_v59 = vpop.xlane.xlu0 %3579  ;;  %v3583_v19 = vpop.xlane.xlu1 %3582 }
 0xd47   :  { %7305 = vrcp.f32 %v3580_v59 }
 0xd48   :  { %7307 = vrcp.f32 %v3583_v19 }
 0xd4a   :  { %v3586_v20 = vpop.xlane.xlu0 %3585  ;;  %v3589_v22 = vpop.xlane.xlu1 %3588 }
 0xd4b   :  { %7309 = vrcp.f32 %v3586_v20 }
 0xd4c   :  { %7311 = vrcp.f32 %v3589_v22 }
 0xd4e   :  { %v3592_v21 = vpop.xlane.xlu0 %3591  ;;  %v3595_v23 = vpop.xlane.xlu1 %3594 }
 0xd4f   :  { %7313 = vrcp.f32 %v3592_v21  ;;  %v7302_v25 = vpop.eup %7301 }
 0xd50   :  { %7315 = vrcp.f32 %v3595_v23  ;;  %v7304_v52 = vpop.eup %7303  ;;  %v3605_v38 = vmul.f32 %v7302_v25, %v7286_v31 }
 0xd51   :  { %v3604_v37 = vmul.f32 %v7304_v52, %v7288_v61 }
 0xd54   :  { %v7306_v29 = vpop.eup %7305 }
 0xd55   :  { %v7308_v32 = vpop.eup %7307  ;;  %v3606_v33 = vmul.f32 %v7306_v29, %v7290_v2 }
 0xd56   :  { %v3607_v34 = vmul.f32 %v7308_v32, %v7292_v45 }
 0xd57   :  { %v3612_v41 = vcombine.low %v3604_v37, %v3606_v33  ;;  %v3613_v26 = vcombine.high %v3604_v37, %v3606_v33 }
 0xd58   :  { %v7310_v40 = vpop.eup %7309  ;;  %v3628_v42 = vcombine.low %v3605_v38, %v3607_v34  ;;  %v3629_v51 = vcombine.high %v3605_v38, %v3607_v34 }
 0xd59   :  { %v7312_v46 = vpop.eup %7311  ;;  %v3608_v44 = vmul.f32 %v7310_v40, %v7294_v5  ;;  %v3620_v54 = vrot.slane %v3612_v41, %v7539_v50  ;;  %v3627_v31 = vrot.slane %v3613_v26, %v7539_v50  ;;  %v3859_v26 = vld [vmem:[%s9147_s2 + $0xf8] sm:$0xff] }
 0xd5a   :  { %v3609_v30 = vmul.f32 %v7312_v46, %v7296_v49  ;;  %v3636_v55 = vrot.slane %v3628_v42, %v7539_v50  ;;  %v3643_v61 = vrot.slane %v3629_v51, %v7539_v50 }
 0xd5c   :  { %v7314_v48 = vpop.eup %7313  ;;  %v3677_v2 = vcombine.high %v3620_v54, %v3636_v55  ;;  %v3676_v45 = vcombine.low %v3620_v54, %v3636_v55  ;;  %v3692_v28 = vcombine.low %v3627_v31, %v3643_v61  ;;  %v3693_v20 = vcombine.high %v3627_v31, %v3643_v61  ;;  %v3856_v54 = vld [vmem:[%s9147_s2 + $0xe0] sm:$0xff] }
 0xd5d   :  { %v7316_v12 = vpop.eup %7315  ;;  %v3610_v24 = vmul.f32 %v7314_v48, %v7298_v10 }
 0xd5e   :  { %v3611_v53 = vmul.f32 %v7316_v12, %v7300_v17  ;;  %v3691_v6 = vrot.slane %v3677_v2, %v7544_v62  ;;  %v3684_v17 = vrot.slane %v3676_v45, %v7544_v62  ;;  %v3707_v25 = vrot.slane %v3693_v20, %v7544_v62  ;;  %v3982_v20 = vld [vmem:[%s9148_s3 + $0x190] sm:$0xff] }
 0xd5f   :  { %v3644_v56 = vcombine.low %v3608_v44, %v3610_v24  ;;  %v3645_v57 = vcombine.high %v3608_v44, %v3610_v24 }
 0xd60   :  { %v3660_v58 = vcombine.low %v3609_v30, %v3611_v53  ;;  %v3661_v14 = vcombine.high %v3609_v30, %v3611_v53  ;;  %v3858_v30 = vld [vmem:[%s9147_s2 + $0xf0] sm:$0xff]  ;;  %v3857_v53 = vld [vmem:[%s9147_s2 + $0xe8] sm:$0xff] }
 0xd61   :  { %v3652_v60 = vrot.slane %v3644_v56, %v7539_v50  ;;  %v3659_v63 = vrot.slane %v3645_v57, %v7539_v50  ;;  %v6204_v57 = vld [vmem:[%s9150_s5 + $0xc] ss:$0 sm:$0xff] }
 0xd62   :  { %v3668_v0 = vrot.slane %v3660_v58, %v7539_v50  ;;  %v3675_v3 = vrot.slane %v3661_v14, %v7539_v50  ;;  %v3700_v50 = vrot.slane %v3692_v28, %v7544_v62 }
 0xd64   :  { %v3709_v4 = vcombine.high %v3652_v60, %v3668_v0  ;;  %v3708_v5 = vcombine.low %v3652_v60, %v3668_v0  ;;  %v3724_v49 = vcombine.low %v3659_v63, %v3675_v3  ;;  %v3725_v59 = vcombine.high %v3659_v63, %v3675_v3  ;;  %v3980_v3 = vld [vmem:[%s9148_s3 + $0x180] sm:$0xff] }
 0xd66   :  { %v3723_v10 = vrot.slane %v3709_v4, %v7544_v62  ;;  %v3716_v7 = vrot.slane %v3708_v5, %v7544_v62  ;;  %v3732_v9 = vrot.slane %v3724_v49, %v7544_v62  ;;  %v3739_v23 = vrot.slane %v3725_v59, %v7544_v62  ;;  %v3988_v4 = vld [vmem:[%s9148_s3 + $0x1c0] sm:$0xff]  ;;  %v3989_v49 = vld [vmem:[%s9148_s3 + $0x1c8] sm:$0xff] }
 0xd67   :  { %v6227_v5 = vcombine.high %v3980_v3, %v3988_v4  ;;  %v6226_v28 = vcombine.low %v3980_v3, %v3988_v4  ;;  %v3986_v4 = vld [vmem:[%s9148_s3 + $0x1b0] sm:$0xff] }
 0xd68   :  { %v3742_v8 = vcombine.low %v3691_v6, %v3723_v10  ;;  %v3741_v18 = vcombine.high %v3684_v17, %v3716_v7  ;;  %v3740_v19 = vcombine.low %v3684_v17, %v3716_v7  ;;  %v3743_v22 = vcombine.high %v3691_v6, %v3723_v10  ;;  %v3964_v17 = vld [vmem:[%s9148_s3 + $0x100] sm:$0xff] }
 0xd69   :  { %v3744_v21 = vcombine.low %v3700_v50, %v3732_v9  ;;  %v3745_v52 = vcombine.high %v3700_v50, %v3732_v9  ;;  %v3746_v29 = vcombine.low %v3707_v25, %v3739_v23  ;;  %v3747_v32 = vcombine.high %v3707_v25, %v3739_v23  ;;  %v3972_v7 = vld [vmem:[%s9148_s3 + $0x140] sm:$0xff]  ;;  %v3973_v9 = vld [vmem:[%s9148_s3 + $0x148] sm:$0xff]  ;;  %v3991_v25 = vld [vmem:[%s9148_s3 + $0x1d8] sm:$0xff] }
 0xd6a   :  { %3753 = vrot.lane.b32.xlu1 %v3742_v8, %s7363_s11  ;;  %3749 = vrot.lane.b32.xlu0 %v3741_v18, %s7364_s12  ;;  %v3965_v8 = vld [vmem:[%s9148_s3 + $0x108] sm:$0xff]  ;;  %v6211_v18 = vcombine.high %v3964_v17, %v3972_v7  ;;  %v6210_v59 = vcombine.low %v3964_v17, %v3972_v7  ;;  %v3970_v7 = vld [vmem:[%s9148_s3 + $0x130] sm:$0xff] }
 0xd6b   :  { %v6213_v50 = vcombine.high %v3965_v8, %v3973_v9 }
 0xd6e   :  { %3757 = vrot.lane.b32.xlu1 %v3743_v22, %s7365_s13  ;;  %3761 = vrot.lane.b32.xlu0 %v3744_v21, %s7366_s14  ;;  %v3990_v22 = vld [vmem:[%s9148_s3 + $0x1d0] sm:$0xff]  ;;  %v3983_v21 = vld [vmem:[%s9148_s3 + $0x198] sm:$0xff] }
 0xd6f   :  { %v6231_v23 = vcombine.high %v3982_v20, %v3990_v22 }
 0xd72   :  { %3765 = vrot.lane.b32.xlu1 %v3745_v52, %s7367_s15  ;;  %3769 = vrot.lane.b32.xlu0 %v3746_v29, %s7368_s23  ;;  %v6230_v52 = vcombine.low %v3982_v20, %v3990_v22  ;;  %v6232_v29 = vcombine.low %v3983_v21, %v3991_v25 }
 0xd76   :  { %3773 = vrot.lane.b32.xlu1 %v3747_v32, %s7369_s24  ;;  %v6233_v32 = vcombine.high %v3983_v21, %v3991_v25  ;;  %v7122_v25 = vld [vmem:[%s9149_s4 + $0x4f8] sm:$0xff]   ;;  %s7371_s24 = smov [#allocation2]  }
 0xd77   :  { %s5988_s25 = sshll.u32 %s7371_s24, 4  ;;  %s5989_s25 = int_to_ptr.vmem [resolvable:$true] %s5988_s25 }
 0xd78   :  { %s7330_s26 = scalar_lea.vmem %s5989_s25, 128  ;;  %p7335_p1 = scmp.lt.s32.totalorder %s5989_s25, %s5989_s25 }
 0xd79   :  { %p7331_p0 = scmp.ne.s32.totalorder %s5989_s25, %s7330_s26  ;;  %p7336_p2 = scmp.lt.s32.totalorder %s7330_s26, %s7330_s26 }
 0xd7b   :  { %p7337_p3 = por %p7336_p2, %p7335_p1 }
 0xd7d   :  { %p7338_p4 = pnand %p7337_p3, %p7331_p0 }
 0xddc   :  { %v3754_v33 = vpop.permute.xlu1 %3753  ;;  %v3750_v34 = vpop.permute.xlu0 %3749 }
 0xddd   :  { %v3776_v37 = vsel %vm549_vm2, %v3740_v19, %v3750_v34  ;;  %v6212_v19 = vcombine.low %v3965_v8, %v3973_v9  ;;  %v3978_v8 = vld [vmem:[%s9148_s3 + $0x170] sm:$0xff]  ;;  %v3979_v9 = vld [vmem:[%s9148_s3 + $0x178] sm:$0xff] }
 0xdde   :  { %v3777_v40 = vsel %vm803_vm3, %v3776_v37, %v3754_v33  ;;  %v6222_v22 = vcombine.low %v3970_v7, %v3978_v8 }
 0xde0   :  { %v3758_v38 = vpop.permute.xlu1 %3757  ;;  %v3762_v41 = vpop.permute.xlu0 %3761 }
 0xde1   :  { %v3778_v42 = vsel %vm805_vm4, %v3777_v40, %v3758_v38  ;;  %v6206_v40 = vld [vmem:[%s9150_s5 + $0xd] ss:$0 sm:$0xff] }
 0xde2   :  { %v3779_v62 = vsel %vm46_vm1, %v3778_v42, %v3762_v41  ;;  %v6207_v42 = vld [vmem:[%s9150_s5 + $0xe] ss:$0 sm:$0xff] }
 0xde4   :  { %v3766_v46 = vpop.permute.xlu1 %3765  ;;  %v3770_v12 = vpop.permute.xlu0 %3769 }
 0xde5   :  { %v3780_v48 = vsel %vm808_vm5, %v3779_v62, %v3766_v46  ;;  %v3966_v46 = vld [vmem:[%s9148_s3 + $0x110] sm:$0xff] }
 0xde6   :  { %v3781_v44 = vsel %vm810_vm6, %v3780_v48, %v3770_v12  ;;  %v3974_v48 = vld [vmem:[%s9148_s3 + $0x150] sm:$0xff]  ;;  %v3967_v12 = vld [vmem:[%s9148_s3 + $0x118] sm:$0xff] }
 0xde8   :  { %v3774_v24 = vpop.permute.xlu1 %3773 }
 0xde9   :  { %v3782_v51 = vsel %vm812_vm7, %v3781_v44, %v3774_v24  ;;  %v3975_v44 = vld [vmem:[%s9148_s3 + $0x158] sm:$0xff] }
 0xdea   :  { %6960 = vmatmul.mubr.msk.f32.vlgmr.msra.gmra.mxu0 %vm814_vm8, %v3782_v51  ;;  %v6215_v51 = vcombine.high %v3966_v46, %v3974_v48 }
 0xdeb   :  { %6963 = vmatpush3.msra.mxu0 %v3859_v26  ;;  %6970 = vmatprep.mubr.msk.f32.mxu0 %vm7353_vm0, %v7352_v1 }
 0xdec   :  { %6964 = vmatprep.subr.mxu0 %v7352_v1 }
 0xded   :  { %6965 = vmatpush3.msra.mxu0 %v3858_v30  ;;  %v6217_v30 = vcombine.high %v3967_v12, %v3975_v44 }
 0xdee   :  { %6966 = vmatprep.subr.mxu0 %v7352_v1 }
 0xdef   :  { %6967 = vmatpush3.msra.mxu0 %v3857_v53  ;;  %v3984_v53 = vld [vmem:[%s9148_s3 + $0x1a0] sm:$0xff] }
 0xdf0   :  { %6968 = vmatprep.subr.mxu0 %v7352_v1 }
 0xdf1   :  { %6969 = vmatpush3.msra.mxu0 %v3856_v54  ;;  %v3992_v54 = vld [vmem:[%s9148_s3 + $0x1e0] sm:$0xff] }
 0xdf2   :  { %4514 = vmatprep.subr.bf16.mxu0 %v6227_v5  ;;  %v3987_v5 = vld [vmem:[%s9148_s3 + $0x1b8] sm:$0xff] }
 0xeaa   :  { %v3852_v55 = vpop.f32.mrf.mxu0 }
 0xeab   :  { %6971 = vmatmul.mubr.msk.f32.vlgmr.msra.gmra.mxu0 %vm46_vm1, %v3852_v55  ;;  %v3985_v55 = vld [vmem:[%s9148_s3 + $0x1a8] sm:$0xff] }
 0xeac   :  { %v6961_v56 = vpop.f32.mrf.mxu0  ;;  %4534 = vmatprep.mubr.bf16.mxu0 %v7370_v47  ;;  %4515 = vmatpush1.bf16.msra.mxu0 %v6226_v28 }
 0xead   :  { %4516 = vmatprep.subr.bf16.mxu0 %v6211_v18  ;;  %v3993_v56 = vld [vmem:[%s9148_s3 + $0x1e8] sm:$0xff]  ;;  %v3971_v18 = vld [vmem:[%s9148_s3 + $0x138] sm:$0xff] }
 0xeae   :  { %v6225_v20 = vcombine.high %v3971_v18, %v3979_v9  ;;  %v6224_v21 = vcombine.low %v3971_v18, %v3979_v9 }
 0xeb0   :  { %4517 = vmatpush1.bf16.msra.mxu0 %v6210_v59 }
 0xeb1   :  { %4596 = vmatprep.subr.bf16.mxu0 %v6231_v23  ;;  %v7121_v23 = vld [vmem:[%s9149_s4 + $0x478] sm:$0xff]  }
 0xf6b   :  { %v3934_v58 = vpop.f32.mrf.mxu0 }
 0xf6c   :  { %v3935_v14 = vadd.f32 %v6204_v57, %v3934_v58  ;;  %v6214_v57 = vcombine.low %v3966_v46, %v3974_v48  ;;  %v6216_v58 = vcombine.low %v3967_v12, %v3975_v44  ;;  %v7135_v46 = vld [vmem:[%s9149_s4 + $0x420] sm:$0xff]   ;;  %v7137_v12 = vld [vmem:[%s9149_s4 + $0x458] sm:$0xff]  }
 0xf6d   :  { %v6972_v60 = vpop.f32.mrf.mxu0  ;;  %v7136_v48 = vld [vmem:[%s9149_s4 + $0x4a0] sm:$0xff]   ;;  %v7138_v44 = vld [vmem:[%s9149_s4 + $0x4d8] sm:$0xff]  }
 0xf6e   :  { %v3938_v1 = vadd.f32 %v3935_v14, %v8363_v39  ;;  %v3981_v39 = vld [vmem:[%s9148_s3 + $0x188] sm:$0xff]  ;;  %v6235_v14 = vcombine.high %v3984_v53, %v3992_v54  ;;  %v6237_v60 = vcombine.high %v3985_v55, %v3993_v56 }
 0xf6f   :  { %v6228_v6 = vcombine.low %v3981_v39, %v3989_v49  ;;  %v6229_v10 = vcombine.high %v3981_v39, %v3989_v49  ;;  %v3994_v39 = vld [vmem:[%s9148_s3 + $0x1f0] sm:$0xff]  ;;  %v3995_v49 = vld [vmem:[%s9148_s3 + $0x1f8] sm:$0xff] }
 0xf70   :  { %v3941_v31 = vsel %vm46_vm1, %v3938_v1, 0.0  ;;  %v6241_v17 = vcombine.high %v3987_v5, %v3995_v49  ;;  %v6238_v59 = vcombine.low %v3986_v4, %v3994_v39 }
 0xf71   :  { %3942 = vadd.xlane.f32.xlu0 %v3941_v31  ;;  %4555 = vmatprep.subr.bf16.mxu1 %v6229_v10  ;;  %v3976_v31 = vld [vmem:[%s9148_s3 + $0x160] sm:$0xff]  ;;  %v6239_v10 = vcombine.high %v3986_v4, %v3994_v39 }
 0xf72   :  { %4556 = vmatpush1.bf16.msra.mxu1 %v6228_v6 }
 0xf73   :  { %4557 = vmatprep.subr.bf16.mxu1 %v6213_v50  ;;  %v6223_v50 = vcombine.high %v3970_v7, %v3978_v8 }
 0xf76   :  { %4558 = vmatpush1.bf16.msra.mxu1 %v6212_v19  ;;  %v6240_v19 = vcombine.low %v3987_v5, %v3995_v49 }
 0xf77   :  { %4637 = vmatprep.subr.bf16.mxu1 %v6233_v32  ;;  %v7125_v32 = vld [vmem:[%s9149_s4 + $0x470] sm:$0xff]  }
 0xffa   :  { %v3943_v61 = vpop.xlane.xlu0 %3942 }
 0xffb   :  { %v3944_v63 = vmul.f32 0.03125, %v3943_v61  ;;  %v3969_v61 = vld [vmem:[%s9148_s3 + $0x128] sm:$0xff] }
 0xffd   :  { %v3945_v0 = vsub.f32 %v3938_v1, %v3944_v63  ;;  %v3968_v1 = vld [vmem:[%s9148_s3 + $0x120] sm:$0xff]  ;;  %v3977_v63 = vld [vmem:[%s9148_s3 + $0x168] sm:$0xff] }
 0xffe   :  { %v6221_v3 = vcombine.high %v3969_v61, %v3977_v63  ;;  %v6218_v28 = vcombine.low %v3968_v1, %v3976_v31  ;;  %v6220_v6 = vcombine.low %v3969_v61, %v3977_v63  ;;  %v7152_v61 = vld [vmem:[%s9149_s4 + $0x480] sm:$0xff]   ;;  %v7153_v63 = vld [vmem:[%s9149_s4 + $0x578] sm:$0xff]  }
 0xfff   :  { %v3946_v2 = vmul.f32 %v3945_v0, %v3945_v0 }
0x1001   :  { %v3947_v45 = vsel %vm46_vm1, %v3946_v2, 0.0  ;;  %v6236_v2 = vcombine.low %v3985_v55, %v3993_v56  ;;  %v7144_v55 = vld [vmem:[%s9149_s4 + $0x490] sm:$0xff]   ;;  %v7145_v56 = vld [vmem:[%s9149_s4 + $0x448] sm:$0xff]  }
0x1002   :  { %3948 = vadd.xlane.f32.xlu1 %v3947_v45  ;;  %v6219_v45 = vcombine.high %v3968_v1, %v3976_v31  ;;  %v7150_v1 = vld [vmem:[%s9149_s4 + $0x4c0] sm:$0xff]  }
0x1003   :  { %v7151_v31 = vld [vmem:[%s9149_s4 + $0x400] sm:$0xff]  }
0x108b   :  { %v3949_v33 = vpop.xlane.xlu1 %3948 }
0x108c   :  { %v3950_v34 = vmul.f32 0.03125, %v3949_v33  ;;  %v7127_v33 = vld [vmem:[%s9149_s4 + $0x430] sm:$0xff]  }
0x108e   :  { %v3951_v37 = vadd.f32 1e-05, %v3950_v34  ;;  %v7128_v34 = vld [vmem:[%s9149_s4 + $0x4b0] sm:$0xff]  }
0x1090   :  { %7317 = vrsqrt.f32 %v3951_v37  ;;  %v7129_v37 = vld [vmem:[%s9149_s4 + $0x468] sm:$0xff]  }
0x109d   :  { %v7318_v38 = vpop.eup %7317 }
0x109e   :  { %v3953_v41 = vmul.f32 %v7318_v38, %v3945_v0  ;;  %v6234_v0 = vcombine.low %v3984_v53, %v3992_v54  ;;  %v7130_v38 = vld [vmem:[%s9149_s4 + $0x4e8] sm:$0xff]   ;;  %v7142_v53 = vld [vmem:[%s9149_s4 + $0x4d0] sm:$0xff]  }
0x109f   :  { %v7143_v54 = vld [vmem:[%s9149_s4 + $0x410] sm:$0xff]  }
0x10a0   :  { %v3958_v62 = vmul.f32 %v6206_v40, %v3953_v41  ;;  %v7131_v40 = vld [vmem:[%s9149_s4 + $0x428] sm:$0xff]  }
0x10a1   :  { %v7132_v41 = vld [vmem:[%s9149_s4 + $0x4a8] sm:$0xff]  }
0x10a2   :  { %v8603_v24 = vadd.f32 %v6207_v42, %v3958_v62  ;;  %v7133_v42 = vld [vmem:[%s9149_s4 + $0x460] sm:$0xff]  }
0x10a3   :  { %v7134_v62 = vld [vmem:[%s9149_s4 + $0x4e0] sm:$0xff]  }
0x10a4   :  { %v8607_v26 = vpack.c.bf16 %v8603_v24, %v8603_v24 }
0x10a6   :  { %6242 = vmatmul.mubr.msk.bf16.vlgmr.msra.gmra.mxu0 %vm46_vm1, %v8607_v26  ;;  %6243 = vmatmul.mubr.msk.bf16.vlgmr.msra.gmra.mxu1 %vm46_vm1, %v8607_v26 }
0x10a7   :  { %4597 = vmatpush1.bf16.msra.mxu0 %v6230_v52  ;;  %4638 = vmatpush1.bf16.msra.mxu1 %v6232_v29  ;;  %v7123_v52 = vld [vmem:[%s9149_s4 + $0x438] sm:$0xff]  }
0x10a8   :  { %4598 = vmatprep.subr.bf16.mxu0 %v6215_v51  ;;  %4639 = vmatprep.subr.bf16.mxu1 %v6217_v30  ;;  %v7124_v29 = vld [vmem:[%s9149_s4 + $0x4b8] sm:$0xff]   ;;  %v7141_v30 = vld [vmem:[%s9149_s4 + $0x450] sm:$0xff]  }
0x10a9   :  { %4616 = vmatprep.mubr.bf16.mxu0 %v7370_v47  ;;  %4657 = vmatprep.mubr.bf16.mxu1 %v7370_v47  ;;  %v7140_v51 = vld [vmem:[%s9149_s4 + $0x498] sm:$0xff]  }
0x10ab   :  { %4599 = vmatpush1.bf16.msra.mxu0 %v6214_v57  ;;  %4640 = vmatpush1.bf16.msra.mxu1 %v6216_v58  ;;  %v7146_v57 = vld [vmem:[%s9149_s4 + $0x4c8] sm:$0xff]  }
0x10ac   :  { %4678 = vmatprep.subr.bf16.mxu0 %v6235_v14  ;;  %4719 = vmatprep.subr.bf16.mxu1 %v6237_v60  ;;  %v7147_v58 = vld [vmem:[%s9149_s4 + $0x408] sm:$0xff]   ;;  %v7149_v60 = vld [vmem:[%s9149_s4 + $0x440] sm:$0xff]  }
0x10ad   :  { %v7148_v14 = vld [vmem:[%s9149_s4 + $0x488] sm:$0xff]  }
0x10ae   :  { %6244 = vmatmul.mubr.msk.bf16.vlgmr.msra.gmra.mxu0 %vm46_vm1, %v8607_v26  ;;  %6245 = vmatmul.mubr.msk.bf16.vlgmr.msra.gmra.mxu1 %vm46_vm1, %v8607_v26 }
0x10af   :  { %4679 = vmatpush1.bf16.msra.mxu0 %v6234_v0  ;;  %4720 = vmatpush1.bf16.msra.mxu1 %v6236_v2  ;;  %v7154_v0 = vld [vmem:[%s9149_s4 + $0x5f8] sm:$0xff]   ;;  %v8784_v2 = vld [vmem:[%s9151_s6 + $0x1] ss:$2 sm:$0xff] }
0x10b0   :  { %4680 = vmatprep.subr.bf16.mxu0 %v6219_v45  ;;  %4721 = vmatprep.subr.bf16.mxu1 %v6221_v3  ;;  %v4262_v45 = vrot.slane %v8784_v2, %v7942_v11  ;;  %v4270_v3 = vrot.slane %v8784_v2, %v7945_v13  ;;  %v4266_v4 = vrot.slane %v8784_v2, %v7953_v15 }
0x10b1   :  { %4698 = vmatprep.mubr.bf16.mxu0 %v7370_v47  ;;  %4739 = vmatprep.mubr.bf16.mxu1 %v7370_v47  ;;  %v4274_v39 = vrot.slane %v8784_v2, %v7956_v16 }
0x10b3   :  { %4681 = vmatpush1.bf16.msra.mxu0 %v6218_v28  ;;  %4722 = vmatpush1.bf16.msra.mxu1 %v6220_v6 }
0x10b4   :  { %4760 = vmatprep.subr.bf16.mxu0 %v6239_v10  ;;  %4801 = vmatprep.subr.bf16.mxu1 %v6241_v17 }
0x10b6   :  { %6246 = vmatmul.mubr.msk.bf16.vlgmr.msra.gmra.mxu0 %vm46_vm1, %v8607_v26  ;;  %6247 = vmatmul.mubr.msk.bf16.vlgmr.msra.gmra.mxu1 %vm46_vm1, %v8607_v26 }
0x10b7   :  { %4761 = vmatpush1.bf16.msra.mxu0 %v6238_v59  ;;  %4802 = vmatpush1.bf16.msra.mxu1 %v6240_v19 }
0x10b8   :  { %4762 = vmatprep.subr.bf16.mxu0 %v6223_v50  ;;  %4803 = vmatprep.subr.bf16.mxu1 %v6225_v20 }
0x10b9   :  { %4780 = vmatprep.mubr.bf16.mxu0 %v7370_v47  ;;  %4821 = vmatprep.mubr.bf16.mxu1 %v7370_v47  ;;  %v7126_v47 = vld [vmem:[%s9149_s4 + $0x4f0] sm:$0xff]  }
0x10bb   :  { %4763 = vmatpush1.bf16.msra.mxu0 %v6222_v22  ;;  %4804 = vmatpush1.bf16.msra.mxu1 %v6224_v21 }
0x10bc   :  { %6633 = vmatprep.subr.bf16.mxu0 %v7121_v23  ;;  %6655 = vmatprep.subr.bf16.mxu1 %v7122_v25 }
0x10be   :  { %6248 = vmatmul.mubr.msk.bf16.vlgmr.msra.gmra.mxu0 %vm46_vm1, %v8607_v26  ;;  %6249 = vmatmul.mubr.msk.bf16.vlgmr.msra.gmra.mxu1 %vm46_vm1, %v8607_v26  ;;  %v7139_v26 = vld [vmem:[%s9149_s4 + $0x418] sm:$0xff]  }
0x10bf   :  { %6634 = vmatpush3.bf16.msra.mxu0 %v7123_v52  ;;  %6656 = vmatpush3.bf16.msra.mxu1 %v7124_v29  ;;  %v4282_v52 = vrot.slane %v8784_v2, %v7967_v35  ;;  %v4290_v29 = vrot.slane %v8784_v2, %v7970_v36 }
0x10c0   :  { %6635 = vmatprep.subr.bf16.mxu0 %v7125_v32  ;;  %6657 = vmatprep.subr.bf16.mxu1 %v7126_v47  ;;  %v7155_v32 = vld [vmem:[%s9149_s4 + $0x538] sm:$0xff]  }
0x10c1   :  { %v7156_v47 = vld [vmem:[%s9149_s4 + $0x5b8] sm:$0xff]  }
0x10c3   :  { %6636 = vmatpush3.bf16.msra.mxu0 %v7127_v33  ;;  %6658 = vmatpush3.bf16.msra.mxu1 %v7128_v34 }
0x10c4   :  { %6637 = vmatprep.subr.bf16.mxu0 %v7129_v37  ;;  %6659 = vmatprep.subr.bf16.mxu1 %v7130_v38 }
0x10c7   :  { %6638 = vmatpush3.bf16.msra.mxu0 %v7131_v40  ;;  %6660 = vmatpush3.bf16.msra.mxu1 %v7132_v41  ;;  %v7157_v40 = vld [vmem:[%s9149_s4 + $0x570] sm:$0xff]  }
0x10c8   :  { %6639 = vmatprep.subr.bf16.mxu0 %v7133_v42  ;;  %6661 = vmatprep.subr.bf16.mxu1 %v7134_v62  ;;  %v7158_v41 = vld [vmem:[%s9149_s4 + $0x5f0] sm:$0xff]  }
0x10cb   :  { %6640 = vmatpush3.bf16.msra.mxu0 %v7135_v46  ;;  %6662 = vmatpush3.bf16.msra.mxu1 %v7136_v48 }
0x10cc   :  { %6641 = vmatprep.subr.bf16.mxu0 %v7137_v12  ;;  %6663 = vmatprep.subr.bf16.mxu1 %v7138_v44  ;;  %v7159_v12 = vld [vmem:[%s9149_s4 + $0x530] sm:$0xff]  }
0x10cd   :  { %v7160_v44 = vld [vmem:[%s9149_s4 + $0x5b0] sm:$0xff]  }
0x10cf   :  { %6642 = vmatpush3.bf16.msra.mxu0 %v7139_v26  ;;  %6664 = vmatpush3.bf16.msra.mxu1 %v7140_v51 }
0x10d0   :  { %6643 = vmatprep.subr.bf16.mxu0 %v7141_v30  ;;  %6665 = vmatprep.subr.bf16.mxu1 %v7142_v53  ;;  %v7161_v30 = vld [vmem:[%s9149_s4 + $0x568] sm:$0xff]  }
0x10d1   :  { %v7162_v53 = vld [vmem:[%s9149_s4 + $0x5e8] sm:$0xff]  }
0x10d3   :  { %6644 = vmatpush3.bf16.msra.mxu0 %v7143_v54  ;;  %6666 = vmatpush3.bf16.msra.mxu1 %v7144_v55 }
0x10d4   :  { %6645 = vmatprep.subr.bf16.mxu0 %v7145_v56  ;;  %6667 = vmatprep.subr.bf16.mxu1 %v7146_v57 }
0x10d7   :  { %6646 = vmatpush3.bf16.msra.mxu0 %v7147_v58  ;;  %6668 = vmatpush3.bf16.msra.mxu1 %v7148_v14 }
0x10d8   :  { %6647 = vmatprep.subr.bf16.mxu0 %v7149_v60  ;;  %6669 = vmatprep.subr.bf16.mxu1 %v7150_v1  ;;  %v7163_v60 = vld [vmem:[%s9149_s4 + $0x528] sm:$0xff]  }
0x10d9   :  { %v7164_v1 = vld [vmem:[%s9149_s4 + $0x5a8] sm:$0xff]  }
0x10db   :  { %6648 = vmatpush3.bf16.msra.mxu0 %v7151_v31  ;;  %6670 = vmatpush3.bf16.msra.mxu1 %v7152_v61 }
0x10dc   :  { %6677 = vmatprep.subr.bf16.mxu0 %v7153_v63  ;;  %6699 = vmatprep.subr.bf16.mxu1 %v7154_v0  ;;  %v7165_v63 = vld [vmem:[%s9149_s4 + $0x560] sm:$0xff]  }
0x10dd   :  { %v7166_v0 = vld [vmem:[%s9149_s4 + $0x5e0] sm:$0xff]  }
0x1166   :  { %v4536_v5 = vpop.f32.mrf.mxu0  ;;  %v4577_v49 = vpop.f32.mrf.mxu1 }
0x1167   :  { %v4537_v28 = vadd.f32 %v4536_v5, %v4262_v45  ;;  %v4578_v6 = vadd.f32 %v4577_v49, %v4270_v3  ;;  %v8851_v5 = vld [vmem:[%s9151_s6 + $0x11] ss:$2 sm:$0xff] }
0x1168   :  { %v4538_v10 = vpop.f32.mrf.mxu0  ;;  %v4579_v17 = vpop.f32.mrf.mxu1 }
0x1169   :  { %v4539_v7 = vadd.f32 %v4538_v10, %v4266_v4  ;;  %v4580_v8 = vadd.f32 %v4579_v17, %v4274_v39  ;;  %v4830_v18 = vmax.f32 %v4537_v28, 0.0  ;;  %v4832_v9 = vmax.f32 %v4578_v6, 0.0  ;;  %v7167_v4 = vld [vmem:[%s9149_s4 + $0x520] sm:$0xff]   ;;  %v7169_v6 = vld [vmem:[%s9149_s4 + $0x558] sm:$0xff]  }
0x116a   :  { %v4540_v59 = vpop.f32.mrf.mxu0  ;;  %v4581_v19 = vpop.f32.mrf.mxu1  ;;  %v7168_v39 = vld [vmem:[%s9149_s4 + $0x5a0] sm:$0xff]   ;;  %v7170_v10 = vld [vmem:[%s9149_s4 + $0x5d8] sm:$0xff]   ;;  %v4318_v17 = vrot.slane %v8851_v5, %v8021_v27 }
0x116b   :  { %v4831_v50 = vmax.f32 %v4539_v7, 0.0  ;;  %v4833_v20 = vmax.f32 %v4580_v8, 0.0  ;;  %v4846_v33 = vpack.c.bf16 %v4830_v18, %v4830_v18  ;;  %v4848_v34 = vpack.c.bf16 %v4832_v9, %v4832_v9  ;;  %v7171_v18 = vld [vmem:[%s9149_s4 + $0x518] sm:$0xff]  }
0x116c   :  { %v4541_v22 = vpop.f32.mrf.mxu0  ;;  %v4582_v21 = vpop.f32.mrf.mxu1  ;;  %v7172_v9 = vld [vmem:[%s9149_s4 + $0x598] sm:$0xff]  }
0x116d   :  { %v4847_v23 = vpack.c.bf16 %v4831_v50, %v4831_v50  ;;  %v4849_v25 = vpack.c.bf16 %v4833_v20, %v4833_v20  ;;  %v7173_v50 = vld [vmem:[%s9149_s4 + $0x550] sm:$0xff]  }
0x116e   :  { %v8804_v37 = vpop.f32.mrf.mxu0  ;;  %v8806_v38 = vpop.f32.mrf.mxu1  ;;  %v7174_v20 = vld [vmem:[%s9149_s4 + $0x5d0] sm:$0xff]  }
0x116f   :  { %5667 = vmatprep.mubr.bf16.mxu0 %v4847_v23  ;;  %5707 = vmatprep.mubr.bf16.mxu1 %v4849_v25  ;;  %v7175_v25 = vld [vmem:[%s9149_s4 + $0x510] sm:$0xff]  }
0x1170   :  { %v4620_v42 = vpop.f32.mrf.mxu0  ;;  %v4661_v62 = vpop.f32.mrf.mxu1  ;;  %5668 = vmatmul.mubr.bf16.vlgmr.msra.gmra.mxu0 %v4846_v33  ;;  %5708 = vmatmul.mubr.bf16.vlgmr.msra.gmra.mxu1 %v4848_v34  ;;  %v7177_v34 = vld [vmem:[%s9149_s4 + $0x548] sm:$0xff]  }
0x1171   :  { %v4621_v46 = vadd.f32 %v4620_v42, %v4282_v52  ;;  %v4662_v48 = vadd.f32 %v4661_v62, %v4290_v29  ;;  %6678 = vmatpush3.bf16.msra.mxu0 %v7155_v32  ;;  %6700 = vmatpush3.bf16.msra.mxu1 %v7156_v47  ;;  %v7176_v52 = vld [vmem:[%s9149_s4 + $0x590] sm:$0xff]   ;;  %v4278_v29 = vrot.slane %v8784_v2, %v8049_v43 }
0x1172   :  { %v4622_v26 = vpop.f32.mrf.mxu0  ;;  %v4663_v51 = vpop.f32.mrf.mxu1  ;;  %6679 = vmatprep.subr.bf16.mxu0 %v7157_v40  ;;  %6701 = vmatprep.subr.bf16.mxu1 %v7158_v41  ;;  %v4286_v32 = vrot.slane %v8784_v2, %v8021_v27  ;;  %v7178_v40 = vld [vmem:[%s9149_s4 + $0x5c8] sm:$0xff]   ;;  %v4298_v41 = vrot.slane %v8851_v5, %v7953_v15  ;;  %v4306_v42 = vrot.slane %v8851_v5, %v7956_v16  ;;  %v7181_v15 = vld [vmem:[%s9149_s4 + $0x540] sm:$0xff]  }
0x1173   :  { %v4835_v54 = vmax.f32 %v4621_v46, 0.0  ;;  %v4837_v55 = vmax.f32 %v4662_v48, 0.0  ;;  %v7179_v2 = vld [vmem:[%s9149_s4 + $0x508] sm:$0xff]   ;;  %v4619_v48 = vadd.f32 %v8804_v37, %v4278_v29  ;;  %v7182_v16 = vld [vmem:[%s9149_s4 + $0x5c0] sm:$0xff]   ;;  %v4294_v29 = vrot.slane %v8851_v5, %v7942_v11 }
0x1174   :  { %v4623_v56 = vpop.f32.mrf.mxu0  ;;  %v4664_v57 = vpop.f32.mrf.mxu1  ;;  %v7180_v46 = vld [vmem:[%s9149_s4 + $0x588] sm:$0xff]   ;;  %v7183_v37 = vld [vmem:[%s9149_s4 + $0x500] sm:$0xff]   ;;  %v4314_v11 = vrot.slane %v8851_v5, %v7967_v35 }
0x1175   :  { %v4851_v58 = vpack.c.bf16 %v4835_v54, %v4835_v54  ;;  %v4853_v14 = vpack.c.bf16 %v4837_v55, %v4837_v55  ;;  %6680 = vmatpush3.bf16.msra.mxu0 %v7159_v12  ;;  %6702 = vmatpush3.bf16.msra.mxu1 %v7160_v44  ;;  %v4660_v12 = vadd.f32 %v8806_v38, %v4286_v32  ;;  %v7184_v38 = vld [vmem:[%s9149_s4 + $0x580] sm:$0xff]   ;;  %v4834_v51 = vmax.f32 %v4619_v48, 0.0  ;;  %v7186_v54 = vld [vmem:[%s9149_s4 + $0x6f8] sm:$0xff]   ;;  %v7208_v32 = vld [vmem:[%s9149_s4 + $0x690] sm:$0xff]  }
0x1176   :  { %v8832_v31 = vpop.f32.mrf.mxu0  ;;  %v8834_v61 = vpop.f32.mrf.mxu1  ;;  %6681 = vmatprep.subr.bf16.mxu0 %v7161_v30  ;;  %6703 = vmatprep.subr.bf16.mxu1 %v7162_v53  ;;  %v7185_v53 = vld [vmem:[%s9149_s4 + $0x678] sm:$0xff]   ;;  %v7213_v35 = vld [vmem:[%s9149_s4 + $0x640] sm:$0xff]  }
0x1177   :  { %5747 = vmatprep.mubr.bf16.mxu0 %v4851_v58  ;;  %5787 = vmatprep.mubr.bf16.mxu1 %v4853_v14  ;;  %v4836_v30 = vmax.f32 %v4660_v12, 0.0  ;;  %v7187_v57 = vld [vmem:[%s9149_s4 + $0x638] sm:$0xff]   ;;  %v4850_v58 = vpack.c.bf16 %v4834_v51, %v4834_v51 }
0x1178   :  { %v4702_v45 = vpop.f32.mrf.mxu0  ;;  %v4743_v3 = vpop.f32.mrf.mxu1  ;;  %v7217_v48 = vld [vmem:[%s9149_s4 + $0x778] sm:$0xff]  }
0x1179   :  { %6682 = vmatpush3.bf16.msra.mxu0 %v7163_v60  ;;  %6704 = vmatpush3.bf16.msra.mxu1 %v7164_v1  ;;  %v4703_v44 = vadd.f32 %v4702_v45, %v4298_v41  ;;  %v4744_v26 = vadd.f32 %v4743_v3, %v4306_v42  ;;  %v4852_v14 = vpack.c.bf16 %v4836_v30, %v4836_v30  ;;  %v7188_v60 = vld [vmem:[%s9149_s4 + $0x6b8] sm:$0xff]   ;;  %v7191_v3 = vld [vmem:[%s9149_s4 + $0x630] sm:$0xff]   ;;  %v7211_v41 = vld [vmem:[%s9149_s4 + $0x608] sm:$0xff]  }
0x117a   :  { %v4704_v49 = vpop.f32.mrf.mxu0  ;;  %v4745_v28 = vpop.f32.mrf.mxu1  ;;  %6683 = vmatprep.subr.bf16.mxu0 %v7165_v63  ;;  %6705 = vmatprep.subr.bf16.mxu1 %v7166_v0  ;;  %v7189_v63 = vld [vmem:[%s9149_s4 + $0x670] sm:$0xff]   ;;  %v4701_v42 = vadd.f32 %v8832_v31, %v4294_v29 }
0x117b   :  { %v4839_v55 = vmax.f32 %v4703_v44, 0.0  ;;  %v4841_v56 = vmax.f32 %v4744_v26, 0.0  ;;  %v7190_v0 = vld [vmem:[%s9149_s4 + $0x6f0] sm:$0xff]   ;;  %v7194_v49 = vld [vmem:[%s9149_s4 + $0x6e8] sm:$0xff]   ;;  %v7220_v26 = vld [vmem:[%s9149_s4 + $0x7b8] sm:$0xff]  }
0x117c   :  { %v4705_v7 = vpop.f32.mrf.mxu0  ;;  %v4746_v8 = vpop.f32.mrf.mxu1  ;;  %v7195_v28 = vld [vmem:[%s9149_s4 + $0x628] sm:$0xff]   ;;  %v7222_v30 = vld [vmem:[%s9149_s4 + $0x7f0] sm:$0xff]  }
0x117d   :  { %6684 = vmatpush3.bf16.msra.mxu0 %v7167_v4  ;;  %6706 = vmatpush3.bf16.msra.mxu1 %v7168_v39  ;;  %v4855_v1 = vpack.c.bf16 %v4839_v55, %v4839_v55  ;;  %v4857_v45 = vpack.c.bf16 %v4841_v56, %v4841_v56  ;;  %v7192_v4 = vld [vmem:[%s9149_s4 + $0x6b0] sm:$0xff]   ;;  %v7193_v39 = vld [vmem:[%s9149_s4 + $0x668] sm:$0xff]   ;;  %v7199_v7 = vld [vmem:[%s9149_s4 + $0x620] sm:$0xff]  }
0x117e   :  { %v8867_v59 = vpop.f32.mrf.mxu0  ;;  %v4823_v19 = vpop.f32.mrf.mxu1  ;;  %6685 = vmatprep.subr.bf16.mxu0 %v7169_v6  ;;  %6707 = vmatprep.subr.bf16.mxu1 %v7170_v10  ;;  %v7196_v6 = vld [vmem:[%s9149_s4 + $0x6a8] sm:$0xff]   ;;  %v7197_v10 = vld [vmem:[%s9149_s4 + $0x660] sm:$0xff]   ;;  %v7224_v55 = vld [vmem:[%s9149_s4 + $0x7b0] sm:$0xff]  }
0x117f   :  { %v8875_v22 = vadd.f32 %v4823_v19, %v4318_v17  ;;  %v7198_v17 = vld [vmem:[%s9149_s4 + $0x6e0] sm:$0xff]   ;;  %v7203_v19 = vld [vmem:[%s9149_s4 + $0x618] sm:$0xff]   ;;  %v7225_v56 = vld [vmem:[%s9149_s4 + $0x768] sm:$0xff]  }
0x1180   :  { %v8877_v21 = vpop.f32.mrf.mxu0  ;;  %v8879_v23 = vpop.f32.mrf.mxu1  ;;  %v7200_v8 = vld [vmem:[%s9149_s4 + $0x6a0] sm:$0xff]  }
0x1181   :  { %6686 = vmatpush3.bf16.msra.mxu0 %v7171_v18  ;;  %6708 = vmatpush3.bf16.msra.mxu1 %v7172_v9  ;;  %v7201_v18 = vld [vmem:[%s9149_s4 + $0x658] sm:$0xff]  }
0x1182   :  { %v4786_v47 = vpop.f32.mrf.mxu0  ;;  %v4827_v33 = vpop.f32.mrf.mxu1  ;;  %6687 = vmatprep.subr.bf16.mxu0 %v7173_v50  ;;  %6709 = vmatprep.subr.bf16.mxu1 %v7174_v20  ;;  %v7202_v9 = vld [vmem:[%s9149_s4 + $0x6d8] sm:$0xff]   ;;  %v7205_v20 = vld [vmem:[%s9149_s4 + $0x650] sm:$0xff]  }
0x1183   :  { %v7204_v50 = vld [vmem:[%s9149_s4 + $0x698] sm:$0xff]   ;;  %v7209_v47 = vld [vmem:[%s9149_s4 + $0x648] sm:$0xff]   ;;  %v4302_v33 = vrot.slane %v8851_v5, %v7945_v13 }
0x1184   :  { %v4787_v62 = vpop.f32.mrf.mxu0  ;;  %v4828_v27 = vpop.f32.mrf.mxu1  ;;  %v7212_v13 = vld [vmem:[%s9149_s4 + $0x688] sm:$0xff]  }
0x1185   :  { %6688 = vmatpush3.bf16.msra.mxu0 %v7175_v25  ;;  %6710 = vmatpush3.bf16.msra.mxu1 %v7176_v52  ;;  %v7206_v25 = vld [vmem:[%s9149_s4 + $0x6d0] sm:$0xff]   ;;  %v4742_v62 = vadd.f32 %v8834_v61, %v4302_v33  ;;  %v4785_v27 = vadd.f32 %v8877_v21, %v4314_v11  ;;  %v7216_v61 = vld [vmem:[%s9149_s4 + $0x680] sm:$0xff]   ;;  %v7218_v21 = vld [vmem:[%s9149_s4 + $0x7f8] sm:$0xff]  }
0x1186   :  { %6689 = vmatprep.subr.bf16.mxu0 %v7177_v34  ;;  %6711 = vmatprep.subr.bf16.mxu1 %v7178_v40  ;;  %v7207_v52 = vld [vmem:[%s9149_s4 + $0x610] sm:$0xff]   ;;  %v7210_v34 = vld [vmem:[%s9149_s4 + $0x6c8] sm:$0xff]   ;;  %v4322_v40 = vrot.slane %v8851_v5, %v7970_v36  ;;  %v7214_v36 = vld [vmem:[%s9149_s4 + $0x6c0] sm:$0xff]  }
0x1187   :  { %v4840_v12 = vmax.f32 %v4742_v62, 0.0  ;;  %v6250_v33 = vld [vmem:[%s9150_s5 + $0xf] ss:$0 sm:$0xff] }
0x1188   :  { %v4826_v31 = vadd.f32 %v8879_v23, %v4322_v40  ;;  %v4843_v23 = vmax.f32 %v4785_v27, 0.0 }
0x1189   :  { %6690 = vmatpush3.bf16.msra.mxu0 %v7179_v2  ;;  %6712 = vmatpush3.bf16.msra.mxu1 %v7180_v46  ;;  %v7215_v2 = vld [vmem:[%s9149_s4 + $0x600] sm:$0xff]   ;;  %v4838_v46 = vmax.f32 %v4701_v42, 0.0 }
0x118a   :  { %6691 = vmatprep.subr.bf16.mxu0 %v7181_v15  ;;  %6713 = vmatprep.subr.bf16.mxu1 %v7182_v16  ;;  %v4845_v15 = vmax.f32 %v4826_v31, 0.0  ;;  %v7219_v16 = vld [vmem:[%s9149_s4 + $0x738] sm:$0xff]   ;;  %v4859_v51 = vpack.c.bf16 %v4843_v23, %v4843_v23 }
0x118b   :  { %v4854_v44 = vpack.c.bf16 %v4838_v46, %v4838_v46 }
0x118d   :  { %6692 = vmatpush3.bf16.msra.mxu0 %v7183_v37  ;;  %6714 = vmatpush3.bf16.msra.mxu1 %v7184_v38  ;;  %v4856_v37 = vpack.c.bf16 %v4840_v12, %v4840_v12  ;;  %v7221_v38 = vld [vmem:[%s9149_s4 + $0x770] sm:$0xff]  }
0x118e   :  { %6721 = vmatprep.subr.bf16.mxu0 %v7185_v53  ;;  %6743 = vmatprep.subr.bf16.mxu1 %v7186_v54  ;;  %v4861_v53 = vpack.c.bf16 %v4845_v15, %v4845_v15  ;;  %v7223_v54 = vld [vmem:[%s9149_s4 + $0x730] sm:$0xff]  }
0x1190   :  { %5748 = vmatmul.mubr.bf16.vlgmr.msra.gmra.mxu0 %v4850_v58  ;;  %5788 = vmatmul.mubr.bf16.vlgmr.msra.gmra.mxu1 %v4852_v14  ;;  %v7227_v58 = vld [vmem:[%s9149_s4 + $0x728] sm:$0xff]  }
0x1191   :  { %6722 = vmatpush3.bf16.msra.mxu0 %v7187_v57  ;;  %5827 = vmatprep.mubr.bf16.mxu0 %v4855_v1  ;;  %v7226_v57 = vld [vmem:[%s9149_s4 + $0x7e8] sm:$0xff]   ;;  %v7230_v1 = vld [vmem:[%s9149_s4 + $0x7e0] sm:$0xff]  }
0x1192   :  { %6744 = vmatpush3.bf16.msra.mxu1 %v7188_v60  ;;  %5867 = vmatprep.mubr.bf16.mxu1 %v4857_v45  ;;  %v7228_v14 = vld [vmem:[%s9149_s4 + $0x7a8] sm:$0xff]   ;;  %v7229_v60 = vld [vmem:[%s9149_s4 + $0x760] sm:$0xff]   ;;  %v7233_v45 = vld [vmem:[%s9149_s4 + $0x758] sm:$0xff]  }
0x1193   :  { %6723 = vmatprep.subr.bf16.mxu0 %v7189_v63  ;;  %6745 = vmatprep.subr.bf16.mxu1 %v7190_v0  ;;  %v7231_v63 = vld [vmem:[%s9149_s4 + $0x720] sm:$0xff]  }
0x1194   :  { %v7232_v0 = vld [vmem:[%s9149_s4 + $0x7a0] sm:$0xff]  }
0x1195   :  { %6724 = vmatpush3.bf16.msra.mxu0 %v7191_v3  ;;  %v7234_v3 = vld [vmem:[%s9149_s4 + $0x7d8] sm:$0xff]  }
0x1196   :  { %6746 = vmatpush3.bf16.msra.mxu1 %v7192_v4  ;;  %6725 = vmatprep.subr.bf16.mxu0 %v7193_v39  ;;  %v7235_v4 = vld [vmem:[%s9149_s4 + $0x718] sm:$0xff]  }
0x1197   :  { %6747 = vmatprep.subr.bf16.mxu1 %v7194_v49  ;;  %v7236_v39 = vld [vmem:[%s9149_s4 + $0x798] sm:$0xff]   ;;  %v7237_v49 = vld [vmem:[%s9149_s4 + $0x750] sm:$0xff]  }
0x1199   :  { %6726 = vmatpush3.bf16.msra.mxu0 %v7195_v28  ;;  %v7238_v28 = vld [vmem:[%s9149_s4 + $0x7d0] sm:$0xff]  }
0x119a   :  { %6748 = vmatpush3.bf16.msra.mxu1 %v7196_v6  ;;  %6727 = vmatprep.subr.bf16.mxu0 %v7197_v10  ;;  %v7239_v6 = vld [vmem:[%s9149_s4 + $0x710] sm:$0xff]   ;;  %v4310_v10 = vrot.slane %v8851_v5, %v8049_v43  ;;  %v7243_v43 = vld [vmem:[%s9149_s4 + $0x708] sm:$0xff]  }
0x119b   :  { %6749 = vmatprep.subr.bf16.mxu1 %v7198_v17  ;;  %v7240_v17 = vld [vmem:[%s9149_s4 + $0x790] sm:$0xff]  }
0x119c   :  { %v4783_v5 = vadd.f32 %v8867_v59, %v4310_v10  ;;  %v7247_v59 = vld [vmem:[%s9149_s4 + $0x700] sm:$0xff]  }
0x119d   :  { %6728 = vmatpush3.bf16.msra.mxu0 %v7199_v7  ;;  %v7241_v7 = vld [vmem:[%s9149_s4 + $0x748] sm:$0xff]  }
0x119e   :  { %6750 = vmatpush3.bf16.msra.mxu1 %v7200_v8  ;;  %6729 = vmatprep.subr.bf16.mxu0 %v7201_v18  ;;  %v7242_v8 = vld [vmem:[%s9149_s4 + $0x7c8] sm:$0xff]  }
0x119f   :  { %6751 = vmatprep.subr.bf16.mxu1 %v7202_v9  ;;  %v7244_v18 = vld [vmem:[%s9149_s4 + $0x788] sm:$0xff]   ;;  %v7245_v9 = vld [vmem:[%s9149_s4 + $0x740] sm:$0xff]  }
0x11a1   :  { %6730 = vmatpush3.bf16.msra.mxu0 %v7203_v19  ;;  %v7246_v19 = vld [vmem:[%s9149_s4 + $0x7c0] sm:$0xff]  }
0x11a2   :  { %6752 = vmatpush3.bf16.msra.mxu1 %v7204_v50  ;;  %6731 = vmatprep.subr.bf16.mxu0 %v7205_v20  ;;  %v4842_v50 = vmax.f32 %v4783_v5, 0.0  ;;  %v7248_v20 = vld [vmem:[%s9149_s4 + $0x780] sm:$0xff]  }
0x11a3   :  { %6753 = vmatprep.subr.bf16.mxu1 %v7206_v25  ;;  %v4844_v25 = vmax.f32 %v8875_v22, 0.0 }
0x11a5   :  { %6732 = vmatpush3.bf16.msra.mxu0 %v7207_v52  ;;  %v4858_v52 = vpack.c.bf16 %v4842_v50, %v4842_v50  ;;  %v4860_v29 = vpack.c.bf16 %v4844_v25, %v4844_v25  ;;  %v6379_v25 = vld [vmem:[%s9150_s5 + $0x10] ss:$0 sm:$0xff] }
0x11a6   :  { %6754 = vmatpush3.bf16.msra.mxu1 %v7208_v32  ;;  %6733 = vmatprep.subr.bf16.mxu0 %v7209_v47 }
0x11a7   :  { %6755 = vmatprep.subr.bf16.mxu1 %v7210_v34 }
0x11a9   :  { %6734 = vmatpush3.bf16.msra.mxu0 %v7211_v41 }
0x11aa   :  { %6756 = vmatpush3.bf16.msra.mxu1 %v7212_v13  ;;  %6735 = vmatprep.subr.bf16.mxu0 %v7213_v35 }
0x11ab   :  { %6757 = vmatprep.subr.bf16.mxu1 %v7214_v36 }
0x11ad   :  { %6736 = vmatpush3.bf16.msra.mxu0 %v7215_v2 }
0x11ae   :  { %6758 = vmatpush3.bf16.msra.mxu1 %v7216_v61  ;;  %6765 = vmatprep.subr.bf16.mxu0 %v7217_v48 }
0x11af   :  { %6787 = vmatprep.subr.bf16.mxu1 %v7218_v21 }
0x11b0   :  { %5828 = vmatmul.mubr.bf16.vlgmr.msra.gmra.mxu0 %v4854_v44 }
0x11b1   :  { %5868 = vmatmul.mubr.bf16.vlgmr.msra.gmra.mxu1 %v4856_v37  ;;  %6766 = vmatpush3.bf16.msra.mxu0 %v7219_v16 }
0x11b2   :  { %5907 = vmatprep.mubr.bf16.mxu0 %v4859_v51  ;;  %6788 = vmatpush3.bf16.msra.mxu1 %v7220_v26 }
0x11b3   :  { %5947 = vmatprep.mubr.bf16.mxu1 %v4861_v53  ;;  %6767 = vmatprep.subr.bf16.mxu0 %v7221_v38 }
0x11b4   :  { %6789 = vmatprep.subr.bf16.mxu1 %v7222_v30 }
0x11b5   :  { %6768 = vmatpush3.bf16.msra.mxu0 %v7223_v54 }
0x11b6   :  { %6790 = vmatpush3.bf16.msra.mxu1 %v7224_v55  ;;  %6769 = vmatprep.subr.bf16.mxu0 %v7225_v56 }
0x11b7   :  { %6791 = vmatprep.subr.bf16.mxu1 %v7226_v57 }
0x11b9   :  { %6770 = vmatpush3.bf16.msra.mxu0 %v7227_v58 }
0x11ba   :  { %6792 = vmatpush3.bf16.msra.mxu1 %v7228_v14  ;;  %6771 = vmatprep.subr.bf16.mxu0 %v7229_v60 }
0x11bb   :  { %6793 = vmatprep.subr.bf16.mxu1 %v7230_v1 }
0x11bd   :  { %6772 = vmatpush3.bf16.msra.mxu0 %v7231_v63 }
0x11be   :  { %6794 = vmatpush3.bf16.msra.mxu1 %v7232_v0  ;;  %6773 = vmatprep.subr.bf16.mxu0 %v7233_v45 }
0x11bf   :  { %6795 = vmatprep.subr.bf16.mxu1 %v7234_v3 }
0x11c1   :  { %6774 = vmatpush3.bf16.msra.mxu0 %v7235_v4 }
0x11c2   :  { %6796 = vmatpush3.bf16.msra.mxu1 %v7236_v39  ;;  %6775 = vmatprep.subr.bf16.mxu0 %v7237_v49 }
0x11c3   :  { %6797 = vmatprep.subr.bf16.mxu1 %v7238_v28 }
0x11c5   :  { %6776 = vmatpush3.bf16.msra.mxu0 %v7239_v6 }
0x11c6   :  { %6798 = vmatpush3.bf16.msra.mxu1 %v7240_v17  ;;  %6777 = vmatprep.subr.bf16.mxu0 %v7241_v7 }
0x11c7   :  { %6799 = vmatprep.subr.bf16.mxu1 %v7242_v8 }
0x11c9   :  { %6778 = vmatpush3.bf16.msra.mxu0 %v7243_v43 }
0x11ca   :  { %6800 = vmatpush3.bf16.msra.mxu1 %v7244_v18  ;;  %6779 = vmatprep.subr.bf16.mxu0 %v7245_v9 }
0x11cb   :  { %6801 = vmatprep.subr.bf16.mxu1 %v7246_v19 }
0x11cd   :  { %6780 = vmatpush3.bf16.msra.mxu0 %v7247_v59 }
0x11ce   :  { %6802 = vmatpush3.bf16.msra.mxu1 %v7248_v20 }
0x11d0   :  { %5908 = vmatmul.mubr.bf16.vlgmr.msra.gmra.mxu0 %v4858_v52  ;;  %v6380_v52 = vld [vmem:[%s9150_s5 + $0x11] ss:$0 sm:$0xff] }
0x11d1   :  { %5948 = vmatmul.mubr.bf16.vlgmr.msra.gmra.mxu1 %v4860_v29 }
0x1230   :  { %v6649_v32 = vpop.f32.mrf.mxu0  ;;  %v6671_v47 = vpop.f32.mrf.mxu1 }
0x1232   :  { %v6650_v34 = vpop.f32.mrf.mxu0  ;;  %v6672_v11 = vpop.f32.mrf.mxu1 }
0x1233   :  { %v6651_v40 = vadd.f32 %v6650_v34, %v6649_v32  ;;  %v6673_v41 = vadd.f32 %v6672_v11, %v6671_v47 }
0x1234   :  { %v6652_v42 = vpop.f32.mrf.mxu0  ;;  %v6674_v13 = vpop.f32.mrf.mxu1 }
0x1235   :  { %v5670_v22 = vadd.f32 %v6651_v40, %v6250_v33 }
0x1236   :  { %v6653_v35 = vpop.f32.mrf.mxu0  ;;  %v6675_v62 = vpop.f32.mrf.mxu1 }
0x1237   :  { %v5710_v36 = vadd.f32 %v6673_v41, %v5670_v22 }
0x1250   :  { %v6693_v27 = vpop.f32.mrf.mxu0  ;;  %v6715_v31 = vpop.f32.mrf.mxu1 }
0x1252   :  { %v6694_v2 = vpop.f32.mrf.mxu0  ;;  %v6716_v46 = vpop.f32.mrf.mxu1 }
0x1253   :  { %v6695_v30 = vadd.f32 %v6694_v2, %v6693_v27  ;;  %v6717_v54 = vadd.f32 %v6716_v46, %v6715_v31 }
0x1254   :  { %v6696_v61 = vpop.f32.mrf.mxu0  ;;  %v6718_v48 = vpop.f32.mrf.mxu1 }
0x1255   :  { %v5750_v53 = vadd.f32 %v6695_v30, %v5710_v36 }
0x1256   :  { %v6697_v12 = vpop.f32.mrf.mxu0  ;;  %v6719_v21 = vpop.f32.mrf.mxu1 }
0x1257   :  { %v5790_v56 = vadd.f32 %v6717_v54, %v5750_v53 }
0x1270   :  { %v6737_v23 = vpop.f32.mrf.mxu0 }
0x1271   :  { %v6759_v15 = vpop.f32.mrf.mxu1 }
0x1272   :  { %v6738_v16 = vpop.f32.mrf.mxu0 }
0x1273   :  { %v6760_v44 = vpop.f32.mrf.mxu1  ;;  %v6739_v55 = vadd.f32 %v6738_v16, %v6737_v23 }
0x1274   :  { %v6740_v26 = vpop.f32.mrf.mxu0  ;;  %v6761_v14 = vadd.f32 %v6760_v44, %v6759_v15 }
0x1275   :  { %v6762_v37 = vpop.f32.mrf.mxu1  ;;  %v5830_v57 = vadd.f32 %v6739_v55, %v5790_v56 }
0x1276   :  { %v6741_v38 = vpop.f32.mrf.mxu0 }
0x1277   :  { %v6763_v51 = vpop.f32.mrf.mxu1  ;;  %v5870_v63 = vadd.f32 %v6761_v14, %v5830_v57 }
0x1290   :  { %v6781_v58 = vpop.f32.mrf.mxu0 }
0x1291   :  { %v6803_v60 = vpop.f32.mrf.mxu1 }
0x1292   :  { %v6782_v1 = vpop.f32.mrf.mxu0 }
0x1293   :  { %v6783_v0 = vadd.f32 %v6782_v1, %v6781_v58  ;;  %v6804_v45 = vpop.f32.mrf.mxu1 }
0x1294   :  { %v6784_v3 = vpop.f32.mrf.mxu0  ;;  %v6805_v39 = vadd.f32 %v6804_v45, %v6803_v60 }
0x1295   :  { %v5910_v4 = vadd.f32 %v6783_v0, %v5870_v63  ;;  %v6806_v49 = vpop.f32.mrf.mxu1 }
0x1296   :  { %v6785_v28 = vpop.f32.mrf.mxu0 }
0x1297   :  { %v5950_v6 = vadd.f32 %v6805_v39, %v5910_v4  ;;  %v6807_v10 = vpop.f32.mrf.mxu1 }
0x1299   :  { %v5955_v17 = vadd.f32 %v5950_v6, %v8603_v24 }
0x129b   :  { %v5958_v7 = vsel %vm46_vm1, %v5955_v17, 0.0 }
0x129c   :  { %5959 = vadd.xlane.f32.xlu0 %v5958_v7 }
0x1325   :  { %v5960_v8 = vpop.xlane.xlu0 %5959 }
0x1326   :  { %v5961_v43 = vmul.f32 0.03125, %v5960_v8 }
0x1328   :  { %v5962_v5 = vsub.f32 %v5955_v17, %v5961_v43 }
0x132a   :  { %v5963_v18 = vmul.f32 %v5962_v5, %v5962_v5 }
0x132c   :  { %v5964_v9 = vsel %vm46_vm1, %v5963_v18, 0.0 }
0x132d   :  { %5965 = vadd.xlane.f32.xlu0 %v5964_v9 }
0x13b6   :  { %v5966_v19 = vpop.xlane.xlu0 %5965 }
0x13b7   :  { %v5967_v59 = vmul.f32 0.03125, %v5966_v19 }
0x13b9   :  { %v5968_v50 = vadd.f32 1e-05, %v5967_v59 }
0x13bb   :  { %7319 = vrsqrt.f32 %v5968_v50 }
0x13c8   :  { %v7320_v20 = vpop.eup %7319 }
0x13c9   :  { %v5970_v24 = vmul.f32 %v7320_v20, %v5962_v5 }
0x13cb   :  { %v5975_v29 = vmul.f32 %v6379_v25, %v5970_v24 }
0x13cd   :  { %v5980_v32 = vadd.f32 %v6380_v52, %v5975_v29 }
0x13cf   :  { %5981 = vst.msk [vmem:[#allocation2] sm:$0xff] %vm46_vm1, %v5980_v32 }
0x13d0   :  { %7341 = shalt.err (!%p7338_p4)
}
0x13d1   :  { %5991 = dma.vmem_to_hbm [thread:$0]  %s5989_s25, 128, %s9152_s7, [#allocation3]  }
0x13d2   :  { %7350 = dma.done.wait [#allocation3], 128  }
0x13d3   :  { %7351 = vsyncadd [#allocation3], 4294967168 }
0x13d4   :  { %5995 = vsyncpa [#allocation3], 1 }

</bundles_post_ra>
